<compile_context>
chip_gen: v6e
topology: v6e:2x2x1
jax: 0.10.0
libtpu: 0.0.40
codegen_flags: <defaults>
</compile_context>

<pallas_src>
import jax
import jax.numpy as jnp
from jax import lax
from jax.experimental import pallas as pl
from jax.experimental.pallas import tpu as pltpu
import numpy as np

LANE = 128
SUB = 8


def _round_up(x, m):
    return (x + m - 1) // m * m


def _pad_to(a, shape):
    if tuple(a.shape) == tuple(shape):
        return a
    pads = [(0, t - s) for s, t in zip(a.shape, shape)]
    return jnp.pad(a, pads)


def _pad_last(a, target):
    if a.shape[-1] == target:
        return a
    pads = [(0, 0)] * (a.ndim - 1) + [(0, target - a.shape[-1])]
    return jnp.pad(a, pads)


# Generation-aware VMEM budget (v7x has 64 MiB per TensorCore).
try:
    _VMEM_CAP = int(getattr(pltpu.get_tpu_info(), "vmem_capacity_bytes",
                            64 * 1024 * 1024))
except Exception:  # conservative fallback
    _VMEM_CAP = 64 * 1024 * 1024


def _make_kernel(H, W, S, DST0, R, HWS, HW, HWc):
    """Kernel factory closing over static spatial geometry.

    Flat-row slab layout: image pixel (h, w) lives at slab row
    DST0 + h*S + w (S = row stride, multiple of 8).  Tap (ky, kx) of the 3x3
    conv is then a contiguous row-shifted view starting at
    TAP0 + ky*S + kx with TAP0 = DST0 - S - 1, feeding a plain MXU matmul.
    """
    TAP0 = DST0 - S - 1
    DST_END = DST0 + (H - 1) * S + W     # one past the last written slab row

    def kernel(x_ref, w1_ref, s1_ref, b1_ref,
               w2_ref, s2_ref, b2_ref,
               w3_ref, s3_ref, b3_ref,
               o_ref, pad_ref, acc_ref, y2c_ref):
        f32 = jnp.float32
        C = pad_ref.shape[1]

        # ---- zero the halo / pad-column regions of the slab (every step) ----
        # Cheap VMEM-only stores; never written by the interior scatter below,
        # and re-zeroing each step is safe under dual-TC grid sharding.
        pad_ref[0:DST0, :] = jnp.zeros((DST0, C), f32)
        pad_ref[DST_END:R, :] = jnp.zeros((R - DST_END, C), f32)
        for h in range(H - 1):
            s0 = DST0 + h * S + W
            pad_ref[s0:s0 + (S - W), :] = jnp.zeros((S - W, C), f32)

        xq = x_ref[0]                                      # (HW, Cin_p) bf16

        # ---- stage 1: 1x1 conv (MXU) + folded BN + ReLU ----
        t1 = jnp.dot(xq, w1_ref[...], preferred_element_type=f32)
        y1 = jnp.maximum(t1 * s1_ref[...] + b1_ref[...], 0.0)
        # Scatter the H image rows into the zero-halo slab (row stride S);
        # every destination start DST0 + h*S is a multiple of 8.
        for h in range(H):
            d0 = DST0 + h * S
            pad_ref[d0:d0 + W, :] = y1[h * W:(h + 1) * W, :]

        # ---- stage 2: 3x3 conv, stride 1, pad 1 -> 9 row-shifted matmuls ----
        for t in range(9):
            ky, kx = divmod(t, 3)
            off = TAP0 + ky * S + kx                       # static offset
            patch = pad_ref[off:off + HWS, :].astype(jnp.bfloat16)
            contrib = jnp.dot(patch, w2_ref[t], preferred_element_type=f32)
            if t == 0:
                acc_ref[...] = contrib
            else:
                acc_ref[...] += contrib
        y2 = jnp.maximum(acc_ref[...] * s2_ref[...] + b2_ref[...], 0.0)
        # Compact the W valid columns of every image row back to a dense
        # (H*W, width) slab so stage 3, the residual add and the output store
        # are each one big lane-dense op.
        for h in range(H):
            y2c_ref[h * W:(h + 1) * W, :] = y2[h * S:h * S + W, :]

        # ---- stage 3: 1x1 conv + folded BN + residual + ReLU ----
        t3 = jnp.dot(y2c_ref[...].astype(jnp.bfloat16), w3_ref[...],
                     preferred_element_type=f32)
        y3 = t3 * s3_ref[...] + b3_ref[...]
        out = jnp.maximum(y3[:HW, :] + xq.astype(f32), 0.0)   # Cout == Cin
        o_ref[0] = out.astype(o_ref.dtype)                     # bf16 writeback

    return kernel


@jax.jit
def bottleneck_pallas(x_nhwc, params):
    """Fused Bottleneck forward. x_nhwc: (N, H, W, C) -> (N, H, W, C) bf16."""
    N, H, W, Cin = x_nhwc.shape
    width = params["w1"].shape[1]
    Cout = params["w3"].shape[1]
    assert Cout == Cin, "residual add requires inplanes == planes*expansion"

    Cin_p = _round_up(Cin, LANE)
    Wd_p = _round_up(width, LANE)
    Cout_p = _round_up(Cout, LANE)
    assert Cin_p == Cout_p

    HW = H * W
    S = _round_up(W + 2, SUB)              # slab row stride (sublane aligned)
    DST0 = _round_up(S + 1, SUB)           # first interior slab row (aligned)
    HWS = H * S                            # tap-patch length (multiple of 8)
    R = _round_up((DST0 - S - 1) + 2 * S + 2 + HWS, SUB)   # slab rows
    HWc = _round_up(HW, SUB)               # compacted stage-2 rows

    # bf16 activations / weights (native MXU rate, f32 accumulation); channels
    # zero-padded to 128-lane multiples only when needed; no spatial padding.
    xq = _pad_last(x_nhwc.astype(jnp.bfloat16), Cin_p).reshape(N, HW, Cin_p)

    w1 = _pad_to(params["w1"], (Cin_p, Wd_p)).astype(jnp.bfloat16)
    w2 = _pad_to(params["w2"], (9, Wd_p, Wd_p)).astype(jnp.bfloat16)
    w3 = _pad_to(params["w3"], (Wd_p, Cout_p)).astype(jnp.bfloat16)
    s1 = _pad_to(params["s1"], (1, Wd_p))
    b1 = _pad_to(params["b1"], (1, Wd_p))
    s2 = _pad_to(params["s2"], (1, Wd_p))
    b2 = _pad_to(params["b2"], (1, Wd_p))
    s3 = _pad_to(params["s3"], (1, Cout_p))
    b3 = _pad_to(params["b3"], (1, Cout_p))

    # Rough per-step VMEM footprint (double-buffered I/O + weights + scratch).
    per_step = (2 * (HW * Cin_p * 2 + HW * Cout_p * 2)
                + 2 * ((Cin_p * Wd_p + 9 * Wd_p * Wd_p + Wd_p * Cout_p) * 2
                       + 4 * Wd_p * 4 + 2 * Cout_p * 4)
                + R * Wd_p * 4 + HWS * Wd_p * 4 + HWc * Wd_p * 4)
    vmem_limit = int(min(max(32 * 1024 * 1024, 2 * per_step),
                         int(0.75 * _VMEM_CAP)))

    out_flat = pl.pallas_call(
        _make_kernel(H, W, S, DST0, R, HWS, HW, HWc),
        out_shape=jax.ShapeDtypeStruct((N, HW, Cout_p), jnp.bfloat16),
        grid_spec=pltpu.PrefetchScalarGridSpec(
            num_scalar_prefetch=0,
            grid=(N,),
            in_specs=[
                pl.BlockSpec((1, HW, Cin_p), lambda b: (b, 0, 0)),
                pl.BlockSpec((Cin_p, Wd_p), lambda b: (0, 0)),
                pl.BlockSpec((1, Wd_p), lambda b: (0, 0)),
                pl.BlockSpec((1, Wd_p), lambda b: (0, 0)),
                pl.BlockSpec((9, Wd_p, Wd_p), lambda b: (0, 0, 0)),
                pl.BlockSpec((1, Wd_p), lambda b: (0, 0)),
                pl.BlockSpec((1, Wd_p), lambda b: (0, 0)),
                pl.BlockSpec((Wd_p, Cout_p), lambda b: (0, 0)),
                pl.BlockSpec((1, Cout_p), lambda b: (0, 0)),
                pl.BlockSpec((1, Cout_p), lambda b: (0, 0)),
            ],
            out_specs=pl.BlockSpec((1, HW, Cout_p), lambda b: (b, 0, 0)),
            scratch_shapes=[
                pltpu.VMEM((R, Wd_p), jnp.float32),     # zero-halo flat slab
                pltpu.VMEM((HWS, Wd_p), jnp.float32),   # conv3x3 accumulator
                pltpu.VMEM((HWc, Wd_p), jnp.float32),   # compacted stage-2 out
            ],
        ),
        compiler_params=pltpu.CompilerParams(
            dimension_semantics=("parallel",),
            vmem_limit_bytes=vmem_limit),
    )(xq, w1, s1, b1, w2, s2, b2, w3, s3, b3)

    out = out_flat.reshape(N, H, W, Cout_p)
    if Cout_p > Cout:
        out = out[..., :Cout]
    return out


def _fold_bn(gamma, beta, mean, var, eps=1e-5):
    scale = gamma / jnp.sqrt(var + eps)
    shift = beta - mean * scale
    return scale.reshape(1, -1), shift.reshape(1, -1)


def make_params(key, inplanes, planes, base_width=64, groups=1):
    width = int(planes * (base_width / 64.0)) * groups
    cout = planes * 4  # expansion
    ks = jax.random.split(key, 16)

    def bn(k, c):
        k1, k2, k3, k4 = jax.random.split(k, 4)
        gamma = jax.random.uniform(k1, (c,), minval=0.5, maxval=1.5)
        beta = 0.1 * jax.random.normal(k2, (c,))
        mean = 0.1 * jax.random.normal(k3, (c,))
        var = jax.random.uniform(k4, (c,), minval=0.5, maxval=1.5)
        return _fold_bn(gamma, beta, mean, var)

    # conv weights stored as (Cin, Cout) for 1x1 and (ky*3+kx, Cin, Cout) for
    # the 3x3 (equivalent to PyTorch (Cout, Cin, 3, 3) transposed).
    w1 = 0.1 * jax.random.normal(ks[0], (inplanes, width), jnp.float32)
    w2 = 0.1 * jax.random.normal(ks[1], (9, width, width), jnp.float32)
    w3 = 0.1 * jax.random.normal(ks[2], (width, cout), jnp.float32)
    s1, b1 = bn(ks[3], width)
    s2, b2 = bn(ks[4], width)
    s3, b3 = bn(ks[5], cout)
    return dict(w1=w1, w2=w2, w3=w3, s1=s1, b1=b1, s2=s2, b2=b2, s3=s3, b3=b3)


def bottleneck_reference(x_nhwc, params):
    """Pure-JAX NHWC reference with the same bf16 matmul-input quantization."""
    width = params["w1"].shape[1]
    xq = x_nhwc.astype(jnp.bfloat16)
    y = jnp.einsum("nhwc,cd->nhwd", xq, params["w1"].astype(jnp.bfloat16),
                   preferred_element_type=jnp.float32)
    y = jnp.maximum(y * params["s1"][0] + params["b1"][0], 0.0)
    w2 = params["w2"].reshape(3, 3, width, width).astype(jnp.bfloat16)  # HWIO
    y = lax.conv_general_dilated(y.astype(jnp.bfloat16), w2, (1, 1), "SAME",
                                 dimension_numbers=("NHWC", "HWIO", "NHWC"),
                                 preferred_element_type=jnp.float32)
    y = jnp.maximum(y * params["s2"][0] + params["b2"][0], 0.0)
    y = jnp.einsum("nhwc,cd->nhwd", y.astype(jnp.bfloat16),
                   params["w3"].astype(jnp.bfloat16),
                   preferred_element_type=jnp.float32)
    y = y * params["s3"][0] + params["b3"][0]
    return jnp.maximum(y + xq.astype(jnp.float32), 0.0)


if __name__ == "__main__":
    # planes=4 -> width=4, Cout=16; inplanes must equal Cout (downsample=None).
    N, inplanes, planes, H, W = 2, 16, 4, 16, 16
    key = jax.random.PRNGKey(0)
    kx, kp = jax.random.split(key)
    x = jax.random.normal(kx, (N, H, W, inplanes), jnp.float32)   # NHWC
    params = make_params(kp, inplanes, planes)

    out = jax.block_until_ready(bottleneck_pallas(x, params))
    ref = jax.block_until_ready(bottleneck_reference(x, params))
    # tolerance reflects bf16 MXU inputs + bf16 output quantization.
    np.testing.assert_allclose(np.asarray(out, dtype=np.float32),
                               np.asarray(ref), rtol=2e-2, atol=2e-2)
    print("KERNEL_OK")
</pallas_src>

<mosaic_0001>
module attributes {stable_mosaic.version = 11 : i64} {
  func.func @kernel(%arg0: i32, %arg1: memref<1x256x128xbf16, #tpu.memory_space<vmem>>, %arg2: memref<128x128xbf16, #tpu.memory_space<vmem>>, %arg3: memref<1x128xf32, #tpu.memory_space<vmem>>, %arg4: memref<1x128xf32, #tpu.memory_space<vmem>>, %arg5: memref<9x128x128xbf16, #tpu.memory_space<vmem>>, %arg6: memref<1x128xf32, #tpu.memory_space<vmem>>, %arg7: memref<1x128xf32, #tpu.memory_space<vmem>>, %arg8: memref<128x128xbf16, #tpu.memory_space<vmem>>, %arg9: memref<1x128xf32, #tpu.memory_space<vmem>>, %arg10: memref<1x128xf32, #tpu.memory_space<vmem>>, %arg11: memref<1x256x128xbf16, #tpu.memory_space<vmem>>, %arg12: memref<448x128xf32, #tpu.memory_space<vmem>>, %arg13: memref<384x128xf32, #tpu.memory_space<vmem>>, %arg14: memref<256x128xf32, #tpu.memory_space<vmem>>) attributes {dimension_semantics = [#tpu.dimension_semantics<parallel>], iteration_bounds = array<i64: 2>, scalar_prefetch = 0 : i64, scratch_operands = 3 : i64, tpu.core_type = #tpu.core_type<tc>, window_params = [{transform_indices = @transform_0, window_bounds = array<i64: 1, 256, 128>}, {pipeline_mode = #tpu.pipeline_mode<synchronous>, transform_indices = @transform_1, window_bounds = array<i64: 128, 128>}, {pipeline_mode = #tpu.pipeline_mode<synchronous>, transform_indices = @transform_2, window_bounds = array<i64: 1, 128>}, {pipeline_mode = #tpu.pipeline_mode<synchronous>, transform_indices = @transform_3, window_bounds = array<i64: 1, 128>}, {pipeline_mode = #tpu.pipeline_mode<synchronous>, transform_indices = @transform_4, window_bounds = array<i64: 9, 128, 128>}, {pipeline_mode = #tpu.pipeline_mode<synchronous>, transform_indices = @transform_5, window_bounds = array<i64: 1, 128>}, {pipeline_mode = #tpu.pipeline_mode<synchronous>, transform_indices = @transform_6, window_bounds = array<i64: 1, 128>}, {pipeline_mode = #tpu.pipeline_mode<synchronous>, transform_indices = @transform_7, window_bounds = array<i64: 128, 128>}, {pipeline_mode = #tpu.pipeline_mode<synchronous>, transform_indices = @transform_8, window_bounds = array<i64: 1, 128>}, {pipeline_mode = #tpu.pipeline_mode<synchronous>, transform_indices = @transform_9, window_bounds = array<i64: 1, 128>}, {transform_indices = @transform_10, window_bounds = array<i64: 1, 256, 128>}]} {
    %cst = arith.constant 0.000000e+00 : f32
    %0 = vector.broadcast %cst : f32 to vector<32x128xf32>
    %c0 = arith.constant 0 : index
    %c0_0 = arith.constant 0 : index
    %1 = vector.load %arg12[%c0, %c0_0] : memref<448x128xf32, #tpu.memory_space<vmem>>, vector<32x128xf32>
    tpu.vector_store %arg12[%c0, %c0_0], %0 {strides = array<i32>} : memref<448x128xf32, #tpu.memory_space<vmem>>, vector<32x128xf32>,
    %cst_1 = arith.constant 0.000000e+00 : f32
    %2 = vector.broadcast %cst_1 : f32 to vector<40x128xf32>
    %c408 = arith.constant 408 : index
    %c0_2 = arith.constant 0 : index
    %3 = vector.load %arg12[%c408, %c0_2] : memref<448x128xf32, #tpu.memory_space<vmem>>, vector<40x128xf32>
    tpu.vector_store %arg12[%c408, %c0_2], %2 {strides = array<i32>} : memref<448x128xf32, #tpu.memory_space<vmem>>, vector<40x128xf32>,
    %cst_3 = arith.constant 0.000000e+00 : f32
    %4 = vector.broadcast %cst_3 : f32 to vector<8x128xf32>
    %c48 = arith.constant 48 : index
    %c0_4 = arith.constant 0 : index
    %5 = vector.load %arg12[%c48, %c0_4] : memref<448x128xf32, #tpu.memory_space<vmem>>, vector<8x128xf32>
    tpu.vector_store %arg12[%c48, %c0_4], %4 {strides = array<i32>} : memref<448x128xf32, #tpu.memory_space<vmem>>, vector<8x128xf32>,
    %cst_5 = arith.constant 0.000000e+00 : f32
    %6 = vector.broadcast %cst_5 : f32 to vector<8x128xf32>
    %c72 = arith.constant 72 : index
    %c0_6 = arith.constant 0 : index
    %7 = vector.load %arg12[%c72, %c0_6] : memref<448x128xf32, #tpu.memory_space<vmem>>, vector<8x128xf32>
    tpu.vector_store %arg12[%c72, %c0_6], %6 {strides = array<i32>} : memref<448x128xf32, #tpu.memory_space<vmem>>, vector<8x128xf32>,
    %cst_7 = arith.constant 0.000000e+00 : f32
    %8 = vector.broadcast %cst_7 : f32 to vector<8x128xf32>
    %c96 = arith.constant 96 : index
    %c0_8 = arith.constant 0 : index
    %9 = vector.load %arg12[%c96, %c0_8] : memref<448x128xf32, #tpu.memory_space<vmem>>, vector<8x128xf32>
    tpu.vector_store %arg12[%c96, %c0_8], %8 {strides = array<i32>} : memref<448x128xf32, #tpu.memory_space<vmem>>, vector<8x128xf32>,
    %cst_9 = arith.constant 0.000000e+00 : f32
    %10 = vector.broadcast %cst_9 : f32 to vector<8x128xf32>
    %c120 = arith.constant 120 : index
    %c0_10 = arith.constant 0 : index
    %11 = vector.load %arg12[%c120, %c0_10] : memref<448x128xf32, #tpu.memory_space<vmem>>, vector<8x128xf32>
    tpu.vector_store %arg12[%c120, %c0_10], %10 {strides = array<i32>} : memref<448x128xf32, #tpu.memory_space<vmem>>, vector<8x128xf32>,
    %cst_11 = arith.constant 0.000000e+00 : f32
    %12 = vector.broadcast %cst_11 : f32 to vector<8x128xf32>
    %c144 = arith.constant 144 : index
    %c0_12 = arith.constant 0 : index
    %13 = vector.load %arg12[%c144, %c0_12] : memref<448x128xf32, #tpu.memory_space<vmem>>, vector<8x128xf32>
    tpu.vector_store %arg12[%c144, %c0_12], %12 {strides = array<i32>} : memref<448x128xf32, #tpu.memory_space<vmem>>, vector<8x128xf32>,
    %cst_13 = arith.constant 0.000000e+00 : f32
    %14 = vector.broadcast %cst_13 : f32 to vector<8x128xf32>
    %c168 = arith.constant 168 : index
    %c0_14 = arith.constant 0 : index
    %15 = vector.load %arg12[%c168, %c0_14] : memref<448x128xf32, #tpu.memory_space<vmem>>, vector<8x128xf32>
    tpu.vector_store %arg12[%c168, %c0_14], %14 {strides = array<i32>} : memref<448x128xf32, #tpu.memory_space<vmem>>, vector<8x128xf32>,
    %cst_15 = arith.constant 0.000000e+00 : f32
    %16 = vector.broadcast %cst_15 : f32 to vector<8x128xf32>
    %c192 = arith.constant 192 : index
    %c0_16 = arith.constant 0 : index
    %17 = vector.load %arg12[%c192, %c0_16] : memref<448x128xf32, #tpu.memory_space<vmem>>, vector<8x128xf32>
    tpu.vector_store %arg12[%c192, %c0_16], %16 {strides = array<i32>} : memref<448x128xf32, #tpu.memory_space<vmem>>, vector<8x128xf32>,
    %cst_17 = arith.constant 0.000000e+00 : f32
    %18 = vector.broadcast %cst_17 : f32 to vector<8x128xf32>
    %c216 = arith.constant 216 : index
    %c0_18 = arith.constant 0 : index
    %19 = vector.load %arg12[%c216, %c0_18] : memref<448x128xf32, #tpu.memory_space<vmem>>, vector<8x128xf32>
    tpu.vector_store %arg12[%c216, %c0_18], %18 {strides = array<i32>} : memref<448x128xf32, #tpu.memory_space<vmem>>, vector<8x128xf32>,
    %cst_19 = arith.constant 0.000000e+00 : f32
    %20 = vector.broadcast %cst_19 : f32 to vector<8x128xf32>
    %c240 = arith.constant 240 : index
    %c0_20 = arith.constant 0 : index
    %21 = vector.load %arg12[%c240, %c0_20] : memref<448x128xf32, #tpu.memory_space<vmem>>, vector<8x128xf32>
    tpu.vector_store %arg12[%c240, %c0_20], %20 {strides = array<i32>} : memref<448x128xf32, #tpu.memory_space<vmem>>, vector<8x128xf32>,
    %cst_21 = arith.constant 0.000000e+00 : f32
    %22 = vector.broadcast %cst_21 : f32 to vector<8x128xf32>
    %c264 = arith.constant 264 : index
    %c0_22 = arith.constant 0 : index
    %23 = vector.load %arg12[%c264, %c0_22] : memref<448x128xf32, #tpu.memory_space<vmem>>, vector<8x128xf32>
    tpu.vector_store %arg12[%c264, %c0_22], %22 {strides = array<i32>} : memref<448x128xf32, #tpu.memory_space<vmem>>, vector<8x128xf32>,
    %cst_23 = arith.constant 0.000000e+00 : f32
    %24 = vector.broadcast %cst_23 : f32 to vector<8x128xf32>
    %c288 = arith.constant 288 : index
    %c0_24 = arith.constant 0 : index
    %25 = vector.load %arg12[%c288, %c0_24] : memref<448x128xf32, #tpu.memory_space<vmem>>, vector<8x128xf32>
    tpu.vector_store %arg12[%c288, %c0_24], %24 {strides = array<i32>} : memref<448x128xf32, #tpu.memory_space<vmem>>, vector<8x128xf32>,
    %cst_25 = arith.constant 0.000000e+00 : f32
    %26 = vector.broadcast %cst_25 : f32 to vector<8x128xf32>
    %c312 = arith.constant 312 : index
    %c0_26 = arith.constant 0 : index
    %27 = vector.load %arg12[%c312, %c0_26] : memref<448x128xf32, #tpu.memory_space<vmem>>, vector<8x128xf32>
    tpu.vector_store %arg12[%c312, %c0_26], %26 {strides = array<i32>} : memref<448x128xf32, #tpu.memory_space<vmem>>, vector<8x128xf32>,
    %cst_27 = arith.constant 0.000000e+00 : f32
    %28 = vector.broadcast %cst_27 : f32 to vector<8x128xf32>
    %c336 = arith.constant 336 : index
    %c0_28 = arith.constant 0 : index
    %29 = vector.load %arg12[%c336, %c0_28] : memref<448x128xf32, #tpu.memory_space<vmem>>, vector<8x128xf32>
    tpu.vector_store %arg12[%c336, %c0_28], %28 {strides = array<i32>} : memref<448x128xf32, #tpu.memory_space<vmem>>, vector<8x128xf32>,
    %cst_29 = arith.constant 0.000000e+00 : f32
    %30 = vector.broadcast %cst_29 : f32 to vector<8x128xf32>
    %c360 = arith.constant 360 : index
    %c0_30 = arith.constant 0 : index
    %31 = vector.load %arg12[%c360, %c0_30] : memref<448x128xf32, #tpu.memory_space<vmem>>, vector<8x128xf32>
    tpu.vector_store %arg12[%c360, %c0_30], %30 {strides = array<i32>} : memref<448x128xf32, #tpu.memory_space<vmem>>, vector<8x128xf32>,
    %cst_31 = arith.constant 0.000000e+00 : f32
    %32 = vector.broadcast %cst_31 : f32 to vector<8x128xf32>
    %c384 = arith.constant 384 : index
    %c0_32 = arith.constant 0 : index
    %33 = vector.load %arg12[%c384, %c0_32] : memref<448x128xf32, #tpu.memory_space<vmem>>, vector<8x128xf32>
    tpu.vector_store %arg12[%c384, %c0_32], %32 {strides = array<i32>} : memref<448x128xf32, #tpu.memory_space<vmem>>, vector<8x128xf32>,
    %c0_33 = arith.constant 0 : index
    %c0_34 = arith.constant 0 : index
    %c0_35 = arith.constant 0 : index
    %34 = vector.load %arg1[%c0_33, %c0_34, %c0_35] : memref<1x256x128xbf16, #tpu.memory_space<vmem>>, vector<1x256x128xbf16>
    %35 = vector.shape_cast %34 : vector<1x256x128xbf16> to vector<256x128xbf16>
    %c0_36 = arith.constant 0 : index
    %c0_37 = arith.constant 0 : index
    %36 = vector.load %arg2[%c0_36, %c0_37] : memref<128x128xbf16, #tpu.memory_space<vmem>>, vector<128x128xbf16>
    %cst_38 = arith.constant dense<0.000000e+00> : vector<256x128xf32>
    %37 = tpu.matmul %35, %36, %cst_38 {dimension_numbers = #tpu.dot_dimension_numbers<[1], [0], [0], [1], [0, 0, 1, 1], [], []>} : vector<256x128xbf16>, vector<128x128xbf16>, vector<256x128xf32> -> vector<256x128xf32>
    %c0_39 = arith.constant 0 : index
    %c0_40 = arith.constant 0 : index
    %38 = vector.load %arg3[%c0_39, %c0_40] : memref<1x128xf32, #tpu.memory_space<vmem>>, vector<1x128xf32>
    %39 = vector.broadcast %38 : vector<1x128xf32> to vector<256x128xf32>
    %40 = arith.mulf %37, %39 : vector<256x128xf32>
    %c0_41 = arith.constant 0 : index
    %c0_42 = arith.constant 0 : index
    %41 = vector.load %arg4[%c0_41, %c0_42] : memref<1x128xf32, #tpu.memory_space<vmem>>, vector<1x128xf32>
    %42 = vector.broadcast %41 : vector<1x128xf32> to vector<256x128xf32>
    %43 = arith.addf %40, %42 : vector<256x128xf32>
    %cst_43 = arith.constant 0.000000e+00 : f32
    %44 = vector.broadcast %cst_43 : f32 to vector<256x128xf32>
    %45 = arith.maximumf %43, %44 : vector<256x128xf32>
    %46 = vector.extract_strided_slice %45 {offsets = [0, 0], sizes = [16, 128], strides = [1, 1]} : vector<256x128xf32> to vector<16x128xf32>
    %c32 = arith.constant 32 : index
    %c0_44 = arith.constant 0 : index
    %47 = vector.load %arg12[%c32, %c0_44] : memref<448x128xf32, #tpu.memory_space<vmem>>, vector<16x128xf32>
    tpu.vector_store %arg12[%c32, %c0_44], %46 {strides = array<i32>} : memref<448x128xf32, #tpu.memory_space<vmem>>, vector<16x128xf32>,
    %48 = vector.extract_strided_slice %45 {offsets = [16, 0], sizes = [16, 128], strides = [1, 1]} : vector<256x128xf32> to vector<16x128xf32>
    %c56 = arith.constant 56 : index
    %c0_45 = arith.constant 0 : index
    %49 = vector.load %arg12[%c56, %c0_45] : memref<448x128xf32, #tpu.memory_space<vmem>>, vector<16x128xf32>
    tpu.vector_store %arg12[%c56, %c0_45], %48 {strides = array<i32>} : memref<448x128xf32, #tpu.memory_space<vmem>>, vector<16x128xf32>,
    %50 = vector.extract_strided_slice %45 {offsets = [32, 0], sizes = [16, 128], strides = [1, 1]} : vector<256x128xf32> to vector<16x128xf32>
    %c80 = arith.constant 80 : index
    %c0_46 = arith.constant 0 : index
    %51 = vector.load %arg12[%c80, %c0_46] : memref<448x128xf32, #tpu.memory_space<vmem>>, vector<16x128xf32>
    tpu.vector_store %arg12[%c80, %c0_46], %50 {strides = array<i32>} : memref<448x128xf32, #tpu.memory_space<vmem>>, vector<16x128xf32>,
    %52 = vector.extract_strided_slice %45 {offsets = [48, 0], sizes = [16, 128], strides = [1, 1]} : vector<256x128xf32> to vector<16x128xf32>
    %c104 = arith.constant 104 : index
    %c0_47 = arith.constant 0 : index
    %53 = vector.load %arg12[%c104, %c0_47] : memref<448x128xf32, #tpu.memory_space<vmem>>, vector<16x128xf32>
    tpu.vector_store %arg12[%c104, %c0_47], %52 {strides = array<i32>} : memref<448x128xf32, #tpu.memory_space<vmem>>, vector<16x128xf32>,
    %54 = vector.extract_strided_slice %45 {offsets = [64, 0], sizes = [16, 128], strides = [1, 1]} : vector<256x128xf32> to vector<16x128xf32>
    %c128 = arith.constant 128 : index
    %c0_48 = arith.constant 0 : index
    %55 = vector.load %arg12[%c128, %c0_48] : memref<448x128xf32, #tpu.memory_space<vmem>>, vector<16x128xf32>
    tpu.vector_store %arg12[%c128, %c0_48], %54 {strides = array<i32>} : memref<448x128xf32, #tpu.memory_space<vmem>>, vector<16x128xf32>,
    %56 = vector.extract_strided_slice %45 {offsets = [80, 0], sizes = [16, 128], strides = [1, 1]} : vector<256x128xf32> to vector<16x128xf32>
    %c152 = arith.constant 152 : index
    %c0_49 = arith.constant 0 : index
    %57 = vector.load %arg12[%c152, %c0_49] : memref<448x128xf32, #tpu.memory_space<vmem>>, vector<16x128xf32>
    tpu.vector_store %arg12[%c152, %c0_49], %56 {strides = array<i32>} : memref<448x128xf32, #tpu.memory_space<vmem>>, vector<16x128xf32>,
    %58 = vector.extract_strided_slice %45 {offsets = [96, 0], sizes = [16, 128], strides = [1, 1]} : vector<256x128xf32> to vector<16x128xf32>
    %c176 = arith.constant 176 : index
    %c0_50 = arith.constant 0 : index
    %59 = vector.load %arg12[%c176, %c0_50] : memref<448x128xf32, #tpu.memory_space<vmem>>, vector<16x128xf32>
    tpu.vector_store %arg12[%c176, %c0_50], %58 {strides = array<i32>} : memref<448x128xf32, #tpu.memory_space<vmem>>, vector<16x128xf32>,
    %60 = vector.extract_strided_slice %45 {offsets = [112, 0], sizes = [16, 128], strides = [1, 1]} : vector<256x128xf32> to vector<16x128xf32>
    %c200 = arith.constant 200 : index
    %c0_51 = arith.constant 0 : index
    %61 = vector.load %arg12[%c200, %c0_51] : memref<448x128xf32, #tpu.memory_space<vmem>>, vector<16x128xf32>
    tpu.vector_store %arg12[%c200, %c0_51], %60 {strides = array<i32>} : memref<448x128xf32, #tpu.memory_space<vmem>>, vector<16x128xf32>,
    %62 = vector.extract_strided_slice %45 {offsets = [128, 0], sizes = [16, 128], strides = [1, 1]} : vector<256x128xf32> to vector<16x128xf32>
    %c224 = arith.constant 224 : index
    %c0_52 = arith.constant 0 : index
    %63 = vector.load %arg12[%c224, %c0_52] : memref<448x128xf32, #tpu.memory_space<vmem>>, vector<16x128xf32>
    tpu.vector_store %arg12[%c224, %c0_52], %62 {strides = array<i32>} : memref<448x128xf32, #tpu.memory_space<vmem>>, vector<16x128xf32>,
    %64 = vector.extract_strided_slice %45 {offsets = [144, 0], sizes = [16, 128], strides = [1, 1]} : vector<256x128xf32> to vector<16x128xf32>
    %c248 = arith.constant 248 : index
    %c0_53 = arith.constant 0 : index
    %65 = vector.load %arg12[%c248, %c0_53] : memref<448x128xf32, #tpu.memory_space<vmem>>, vector<16x128xf32>
    tpu.vector_store %arg12[%c248, %c0_53], %64 {strides = array<i32>} : memref<448x128xf32, #tpu.memory_space<vmem>>, vector<16x128xf32>,
    %66 = vector.extract_strided_slice %45 {offsets = [160, 0], sizes = [16, 128], strides = [1, 1]} : vector<256x128xf32> to vector<16x128xf32>
    %c272 = arith.constant 272 : index
    %c0_54 = arith.constant 0 : index
    %67 = vector.load %arg12[%c272, %c0_54] : memref<448x128xf32, #tpu.memory_space<vmem>>, vector<16x128xf32>
    tpu.vector_store %arg12[%c272, %c0_54], %66 {strides = array<i32>} : memref<448x128xf32, #tpu.memory_space<vmem>>, vector<16x128xf32>,
    %68 = vector.extract_strided_slice %45 {offsets = [176, 0], sizes = [16, 128], strides = [1, 1]} : vector<256x128xf32> to vector<16x128xf32>
    %c296 = arith.constant 296 : index
    %c0_55 = arith.constant 0 : index
    %69 = vector.load %arg12[%c296, %c0_55] : memref<448x128xf32, #tpu.memory_space<vmem>>, vector<16x128xf32>
    tpu.vector_store %arg12[%c296, %c0_55], %68 {strides = array<i32>} : memref<448x128xf32, #tpu.memory_space<vmem>>, vector<16x128xf32>,
    %70 = vector.extract_strided_slice %45 {offsets = [192, 0], sizes = [16, 128], strides = [1, 1]} : vector<256x128xf32> to vector<16x128xf32>
    %c320 = arith.constant 320 : index
    %c0_56 = arith.constant 0 : index
    %71 = vector.load %arg12[%c320, %c0_56] : memref<448x128xf32, #tpu.memory_space<vmem>>, vector<16x128xf32>
    tpu.vector_store %arg12[%c320, %c0_56], %70 {strides = array<i32>} : memref<448x128xf32, #tpu.memory_space<vmem>>, vector<16x128xf32>,
    %72 = vector.extract_strided_slice %45 {offsets = [208, 0], sizes = [16, 128], strides = [1, 1]} : vector<256x128xf32> to vector<16x128xf32>
    %c344 = arith.constant 344 : index
    %c0_57 = arith.constant 0 : index
    %73 = vector.load %arg12[%c344, %c0_57] : memref<448x128xf32, #tpu.memory_space<vmem>>, vector<16x128xf32>
    tpu.vector_store %arg12[%c344, %c0_57], %72 {strides = array<i32>} : memref<448x128xf32, #tpu.memory_space<vmem>>, vector<16x128xf32>,
    %74 = vector.extract_strided_slice %45 {offsets = [224, 0], sizes = [16, 128], strides = [1, 1]} : vector<256x128xf32> to vector<16x128xf32>
    %c368 = arith.constant 368 : index
    %c0_58 = arith.constant 0 : index
    %75 = vector.load %arg12[%c368, %c0_58] : memref<448x128xf32, #tpu.memory_space<vmem>>, vector<16x128xf32>
    tpu.vector_store %arg12[%c368, %c0_58], %74 {strides = array<i32>} : memref<448x128xf32, #tpu.memory_space<vmem>>, vector<16x128xf32>,
    %76 = vector.extract_strided_slice %45 {offsets = [240, 0], sizes = [16, 128], strides = [1, 1]} : vector<256x128xf32> to vector<16x128xf32>
    %c392 = arith.constant 392 : index
    %c0_59 = arith.constant 0 : index
    %77 = vector.load %arg12[%c392, %c0_59] : memref<448x128xf32, #tpu.memory_space<vmem>>, vector<16x128xf32>
    tpu.vector_store %arg12[%c392, %c0_59], %76 {strides = array<i32>} : memref<448x128xf32, #tpu.memory_space<vmem>>, vector<16x128xf32>,
    %c7 = arith.constant 7 : index
    %c0_60 = arith.constant 0 : index
    %78 = vector.load %arg12[%c7, %c0_60] : memref<448x128xf32, #tpu.memory_space<vmem>>, vector<384x128xf32>
    %79 = arith.truncf %78 : vector<384x128xf32> to vector<384x128xbf16>
    %c0_61 = arith.constant 0 : index
    %c0_62 = arith.constant 0 : index
    %c0_63 = arith.constant 0 : index
    %80 = vector.load %arg5[%c0_61, %c0_62, %c0_63] : memref<9x128x128xbf16, #tpu.memory_space<vmem>>, vector<1x128x128xbf16>
    %81 = vector.shape_cast %80 : vector<1x128x128xbf16> to vector<128x128xbf16>
    %cst_64 = arith.constant dense<0.000000e+00> : vector<384x128xf32>
    %82 = tpu.matmul %79, %81, %cst_64 {dimension_numbers = #tpu.dot_dimension_numbers<[1], [0], [0], [1], [0, 0, 1, 1], [], []>} : vector<384x128xbf16>, vector<128x128xbf16>, vector<384x128xf32> -> vector<384x128xf32>
    %c0_65 = arith.constant 0 : index
    %c0_66 = arith.constant 0 : index
    %83 = vector.load %arg13[%c0_65, %c0_66] : memref<384x128xf32, #tpu.memory_space<vmem>>, vector<384x128xf32>
    tpu.vector_store %arg13[%c0_65, %c0_66], %82 {strides = array<i32>} : memref<384x128xf32, #tpu.memory_space<vmem>>, vector<384x128xf32>,
    %c8 = arith.constant 8 : index
    %c0_67 = arith.constant 0 : index
    %84 = vector.load %arg12[%c8, %c0_67] : memref<448x128xf32, #tpu.memory_space<vmem>>, vector<384x128xf32>
    %85 = arith.truncf %84 : vector<384x128xf32> to vector<384x128xbf16>
    %c1 = arith.constant 1 : index
    %c0_68 = arith.constant 0 : index
    %c0_69 = arith.constant 0 : index
    %86 = vector.load %arg5[%c1, %c0_68, %c0_69] : memref<9x128x128xbf16, #tpu.memory_space<vmem>>, vector<1x128x128xbf16>
    %87 = vector.shape_cast %86 : vector<1x128x128xbf16> to vector<128x128xbf16>
    %cst_70 = arith.constant dense<0.000000e+00> : vector<384x128xf32>
    %88 = tpu.matmul %85, %87, %cst_70 {dimension_numbers = #tpu.dot_dimension_numbers<[1], [0], [0], [1], [0, 0, 1, 1], [], []>} : vector<384x128xbf16>, vector<128x128xbf16>, vector<384x128xf32> -> vector<384x128xf32>
    %c0_71 = arith.constant 0 : index
    %c0_72 = arith.constant 0 : index
    %89 = vector.load %arg13[%c0_71, %c0_72] : memref<384x128xf32, #tpu.memory_space<vmem>>, vector<384x128xf32>
    %90 = arith.addf %89, %88 : vector<384x128xf32>
    %c0_73 = arith.constant 0 : index
    %c0_74 = arith.constant 0 : index
    %91 = vector.load %arg13[%c0_73, %c0_74] : memref<384x128xf32, #tpu.memory_space<vmem>>, vector<384x128xf32>
    tpu.vector_store %arg13[%c0_73, %c0_74], %90 {strides = array<i32>} : memref<384x128xf32, #tpu.memory_space<vmem>>, vector<384x128xf32>,
    %c9 = arith.constant 9 : index
    %c0_75 = arith.constant 0 : index
    %92 = vector.load %arg12[%c9, %c0_75] : memref<448x128xf32, #tpu.memory_space<vmem>>, vector<384x128xf32>
    %93 = arith.truncf %92 : vector<384x128xf32> to vector<384x128xbf16>
    %c2 = arith.constant 2 : index
    %c0_76 = arith.constant 0 : index
    %c0_77 = arith.constant 0 : index
    %94 = vector.load %arg5[%c2, %c0_76, %c0_77] : memref<9x128x128xbf16, #tpu.memory_space<vmem>>, vector<1x128x128xbf16>
    %95 = vector.shape_cast %94 : vector<1x128x128xbf16> to vector<128x128xbf16>
    %cst_78 = arith.constant dense<0.000000e+00> : vector<384x128xf32>
    %96 = tpu.matmul %93, %95, %cst_78 {dimension_numbers = #tpu.dot_dimension_numbers<[1], [0], [0], [1], [0, 0, 1, 1], [], []>} : vector<384x128xbf16>, vector<128x128xbf16>, vector<384x128xf32> -> vector<384x128xf32>
    %c0_79 = arith.constant 0 : index
    %c0_80 = arith.constant 0 : index
    %97 = vector.load %arg13[%c0_79, %c0_80] : memref<384x128xf32, #tpu.memory_space<vmem>>, vector<384x128xf32>
    %98 = arith.addf %97, %96 : vector<384x128xf32>
    %c0_81 = arith.constant 0 : index
    %c0_82 = arith.constant 0 : index
    %99 = vector.load %arg13[%c0_81, %c0_82] : memref<384x128xf32, #tpu.memory_space<vmem>>, vector<384x128xf32>
    tpu.vector_store %arg13[%c0_81, %c0_82], %98 {strides = array<i32>} : memref<384x128xf32, #tpu.memory_space<vmem>>, vector<384x128xf32>,
    %c31 = arith.constant 31 : index
    %c0_83 = arith.constant 0 : index
    %100 = vector.load %arg12[%c31, %c0_83] : memref<448x128xf32, #tpu.memory_space<vmem>>, vector<384x128xf32>
    %101 = arith.truncf %100 : vector<384x128xf32> to vector<384x128xbf16>
    %c3 = arith.constant 3 : index
    %c0_84 = arith.constant 0 : index
    %c0_85 = arith.constant 0 : index
    %102 = vector.load %arg5[%c3, %c0_84, %c0_85] : memref<9x128x128xbf16, #tpu.memory_space<vmem>>, vector<1x128x128xbf16>
    %103 = vector.shape_cast %102 : vector<1x128x128xbf16> to vector<128x128xbf16>
    %cst_86 = arith.constant dense<0.000000e+00> : vector<384x128xf32>
    %104 = tpu.matmul %101, %103, %cst_86 {dimension_numbers = #tpu.dot_dimension_numbers<[1], [0], [0], [1], [0, 0, 1, 1], [], []>} : vector<384x128xbf16>, vector<128x128xbf16>, vector<384x128xf32> -> vector<384x128xf32>
    %c0_87 = arith.constant 0 : index
    %c0_88 = arith.constant 0 : index
    %105 = vector.load %arg13[%c0_87, %c0_88] : memref<384x128xf32, #tpu.memory_space<vmem>>, vector<384x128xf32>
    %106 = arith.addf %105, %104 : vector<384x128xf32>
    %c0_89 = arith.constant 0 : index
    %c0_90 = arith.constant 0 : index
    %107 = vector.load %arg13[%c0_89, %c0_90] : memref<384x128xf32, #tpu.memory_space<vmem>>, vector<384x128xf32>
    tpu.vector_store %arg13[%c0_89, %c0_90], %106 {strides = array<i32>} : memref<384x128xf32, #tpu.memory_space<vmem>>, vector<384x128xf32>,
    %c32_91 = arith.constant 32 : index
    %c0_92 = arith.constant 0 : index
    %108 = vector.load %arg12[%c32_91, %c0_92] : memref<448x128xf32, #tpu.memory_space<vmem>>, vector<384x128xf32>
    %109 = arith.truncf %108 : vector<384x128xf32> to vector<384x128xbf16>
    %c4 = arith.constant 4 : index
    %c0_93 = arith.constant 0 : index
    %c0_94 = arith.constant 0 : index
    %110 = vector.load %arg5[%c4, %c0_93, %c0_94] : memref<9x128x128xbf16, #tpu.memory_space<vmem>>, vector<1x128x128xbf16>
    %111 = vector.shape_cast %110 : vector<1x128x128xbf16> to vector<128x128xbf16>
    %cst_95 = arith.constant dense<0.000000e+00> : vector<384x128xf32>
    %112 = tpu.matmul %109, %111, %cst_95 {dimension_numbers = #tpu.dot_dimension_numbers<[1], [0], [0], [1], [0, 0, 1, 1], [], []>} : vector<384x128xbf16>, vector<128x128xbf16>, vector<384x128xf32> -> vector<384x128xf32>
    %c0_96 = arith.constant 0 : index
    %c0_97 = arith.constant 0 : index
    %113 = vector.load %arg13[%c0_96, %c0_97] : memref<384x128xf32, #tpu.memory_space<vmem>>, vector<384x128xf32>
    %114 = arith.addf %113, %112 : vector<384x128xf32>
    %c0_98 = arith.constant 0 : index
    %c0_99 = arith.constant 0 : index
    %115 = vector.load %arg13[%c0_98, %c0_99] : memref<384x128xf32, #tpu.memory_space<vmem>>, vector<384x128xf32>
    tpu.vector_store %arg13[%c0_98, %c0_99], %114 {strides = array<i32>} : memref<384x128xf32, #tpu.memory_space<vmem>>, vector<384x128xf32>,
    %c33 = arith.constant 33 : index
    %c0_100 = arith.constant 0 : index
    %116 = vector.load %arg12[%c33, %c0_100] : memref<448x128xf32, #tpu.memory_space<vmem>>, vector<384x128xf32>
    %117 = arith.truncf %116 : vector<384x128xf32> to vector<384x128xbf16>
    %c5 = arith.constant 5 : index
    %c0_101 = arith.constant 0 : index
    %c0_102 = arith.constant 0 : index
    %118 = vector.load %arg5[%c5, %c0_101, %c0_102] : memref<9x128x128xbf16, #tpu.memory_space<vmem>>, vector<1x128x128xbf16>
    %119 = vector.shape_cast %118 : vector<1x128x128xbf16> to vector<128x128xbf16>
    %cst_103 = arith.constant dense<0.000000e+00> : vector<384x128xf32>
    %120 = tpu.matmul %117, %119, %cst_103 {dimension_numbers = #tpu.dot_dimension_numbers<[1], [0], [0], [1], [0, 0, 1, 1], [], []>} : vector<384x128xbf16>, vector<128x128xbf16>, vector<384x128xf32> -> vector<384x128xf32>
    %c0_104 = arith.constant 0 : index
    %c0_105 = arith.constant 0 : index
    %121 = vector.load %arg13[%c0_104, %c0_105] : memref<384x128xf32, #tpu.memory_space<vmem>>, vector<384x128xf32>
    %122 = arith.addf %121, %120 : vector<384x128xf32>
    %c0_106 = arith.constant 0 : index
    %c0_107 = arith.constant 0 : index
    %123 = vector.load %arg13[%c0_106, %c0_107] : memref<384x128xf32, #tpu.memory_space<vmem>>, vector<384x128xf32>
    tpu.vector_store %arg13[%c0_106, %c0_107], %122 {strides = array<i32>} : memref<384x128xf32, #tpu.memory_space<vmem>>, vector<384x128xf32>,
    %c55 = arith.constant 55 : index
    %c0_108 = arith.constant 0 : index
    %124 = vector.load %arg12[%c55, %c0_108] : memref<448x128xf32, #tpu.memory_space<vmem>>, vector<384x128xf32>
    %125 = arith.truncf %124 : vector<384x128xf32> to vector<384x128xbf16>
    %c6 = arith.constant 6 : index
    %c0_109 = arith.constant 0 : index
    %c0_110 = arith.constant 0 : index
    %126 = vector.load %arg5[%c6, %c0_109, %c0_110] : memref<9x128x128xbf16, #tpu.memory_space<vmem>>, vector<1x128x128xbf16>
    %127 = vector.shape_cast %126 : vector<1x128x128xbf16> to vector<128x128xbf16>
    %cst_111 = arith.constant dense<0.000000e+00> : vector<384x128xf32>
    %128 = tpu.matmul %125, %127, %cst_111 {dimension_numbers = #tpu.dot_dimension_numbers<[1], [0], [0], [1], [0, 0, 1, 1], [], []>} : vector<384x128xbf16>, vector<128x128xbf16>, vector<384x128xf32> -> vector<384x128xf32>
    %c0_112 = arith.constant 0 : index
    %c0_113 = arith.constant 0 : index
    %129 = vector.load %arg13[%c0_112, %c0_113] : memref<384x128xf32, #tpu.memory_space<vmem>>, vector<384x128xf32>
    %130 = arith.addf %129, %128 : vector<384x128xf32>
    %c0_114 = arith.constant 0 : index
    %c0_115 = arith.constant 0 : index
    %131 = vector.load %arg13[%c0_114, %c0_115] : memref<384x128xf32, #tpu.memory_space<vmem>>, vector<384x128xf32>
    tpu.vector_store %arg13[%c0_114, %c0_115], %130 {strides = array<i32>} : memref<384x128xf32, #tpu.memory_space<vmem>>, vector<384x128xf32>,
    %c56_116 = arith.constant 56 : index
    %c0_117 = arith.constant 0 : index
    %132 = vector.load %arg12[%c56_116, %c0_117] : memref<448x128xf32, #tpu.memory_space<vmem>>, vector<384x128xf32>
    %133 = arith.truncf %132 : vector<384x128xf32> to vector<384x128xbf16>
    %c7_118 = arith.constant 7 : index
    %c0_119 = arith.constant 0 : index
    %c0_120 = arith.constant 0 : index
    %134 = vector.load %arg5[%c7_118, %c0_119, %c0_120] : memref<9x128x128xbf16, #tpu.memory_space<vmem>>, vector<1x128x128xbf16>
    %135 = vector.shape_cast %134 : vector<1x128x128xbf16> to vector<128x128xbf16>
    %cst_121 = arith.constant dense<0.000000e+00> : vector<384x128xf32>
    %136 = tpu.matmul %133, %135, %cst_121 {dimension_numbers = #tpu.dot_dimension_numbers<[1], [0], [0], [1], [0, 0, 1, 1], [], []>} : vector<384x128xbf16>, vector<128x128xbf16>, vector<384x128xf32> -> vector<384x128xf32>
    %c0_122 = arith.constant 0 : index
    %c0_123 = arith.constant 0 : index
    %137 = vector.load %arg13[%c0_122, %c0_123] : memref<384x128xf32, #tpu.memory_space<vmem>>, vector<384x128xf32>
    %138 = arith.addf %137, %136 : vector<384x128xf32>
    %c0_124 = arith.constant 0 : index
    %c0_125 = arith.constant 0 : index
    %139 = vector.load %arg13[%c0_124, %c0_125] : memref<384x128xf32, #tpu.memory_space<vmem>>, vector<384x128xf32>
    tpu.vector_store %arg13[%c0_124, %c0_125], %138 {strides = array<i32>} : memref<384x128xf32, #tpu.memory_space<vmem>>, vector<384x128xf32>,
    %c57 = arith.constant 57 : index
    %c0_126 = arith.constant 0 : index
    %140 = vector.load %arg12[%c57, %c0_126] : memref<448x128xf32, #tpu.memory_space<vmem>>, vector<384x128xf32>
    %141 = arith.truncf %140 : vector<384x128xf32> to vector<384x128xbf16>
    %c8_127 = arith.constant 8 : index
    %c0_128 = arith.constant 0 : index
    %c0_129 = arith.constant 0 : index
    %142 = vector.load %arg5[%c8_127, %c0_128, %c0_129] : memref<9x128x128xbf16, #tpu.memory_space<vmem>>, vector<1x128x128xbf16>
    %143 = vector.shape_cast %142 : vector<1x128x128xbf16> to vector<128x128xbf16>
    %cst_130 = arith.constant dense<0.000000e+00> : vector<384x128xf32>
    %144 = tpu.matmul %141, %143, %cst_130 {dimension_numbers = #tpu.dot_dimension_numbers<[1], [0], [0], [1], [0, 0, 1, 1], [], []>} : vector<384x128xbf16>, vector<128x128xbf16>, vector<384x128xf32> -> vector<384x128xf32>
    %c0_131 = arith.constant 0 : index
    %c0_132 = arith.constant 0 : index
    %145 = vector.load %arg13[%c0_131, %c0_132] : memref<384x128xf32, #tpu.memory_space<vmem>>, vector<384x128xf32>
    %146 = arith.addf %145, %144 : vector<384x128xf32>
    %c0_133 = arith.constant 0 : index
    %c0_134 = arith.constant 0 : index
    %147 = vector.load %arg13[%c0_133, %c0_134] : memref<384x128xf32, #tpu.memory_space<vmem>>, vector<384x128xf32>
    tpu.vector_store %arg13[%c0_133, %c0_134], %146 {strides = array<i32>} : memref<384x128xf32, #tpu.memory_space<vmem>>, vector<384x128xf32>,
    %c0_135 = arith.constant 0 : index
    %c0_136 = arith.constant 0 : index
    %148 = vector.load %arg13[%c0_135, %c0_136] : memref<384x128xf32, #tpu.memory_space<vmem>>, vector<384x128xf32>
    %c0_137 = arith.constant 0 : index
    %c0_138 = arith.constant 0 : index
    %149 = vector.load %arg6[%c0_137, %c0_138] : memref<1x128xf32, #tpu.memory_space<vmem>>, vector<1x128xf32>
    %150 = vector.broadcast %149 : vector<1x128xf32> to vector<384x128xf32>
    %151 = arith.mulf %148, %150 : vector<384x128xf32>
    %c0_139 = arith.constant 0 : index
    %c0_140 = arith.constant 0 : index
    %152 = vector.load %arg7[%c0_139, %c0_140] : memref<1x128xf32, #tpu.memory_space<vmem>>, vector<1x128xf32>
    %153 = vector.broadcast %152 : vector<1x128xf32> to vector<384x128xf32>
    %154 = arith.addf %151, %153 : vector<384x128xf32>
    %cst_141 = arith.constant 0.000000e+00 : f32
    %155 = vector.broadcast %cst_141 : f32 to vector<384x128xf32>
    %156 = arith.maximumf %154, %155 : vector<384x128xf32>
    %157 = vector.extract_strided_slice %156 {offsets = [0, 0], sizes = [16, 128], strides = [1, 1]} : vector<384x128xf32> to vector<16x128xf32>
    %c0_142 = arith.constant 0 : index
    %c0_143 = arith.constant 0 : index
    %158 = vector.load %arg14[%c0_142, %c0_143] : memref<256x128xf32, #tpu.memory_space<vmem>>, vector<16x128xf32>
    tpu.vector_store %arg14[%c0_142, %c0_143], %157 {strides = array<i32>} : memref<256x128xf32, #tpu.memory_space<vmem>>, vector<16x128xf32>,
    %159 = vector.extract_strided_slice %156 {offsets = [24, 0], sizes = [16, 128], strides = [1, 1]} : vector<384x128xf32> to vector<16x128xf32>
    %c16 = arith.constant 16 : index
    %c0_144 = arith.constant 0 : index
    %160 = vector.load %arg14[%c16, %c0_144] : memref<256x128xf32, #tpu.memory_space<vmem>>, vector<16x128xf32>
    tpu.vector_store %arg14[%c16, %c0_144], %159 {strides = array<i32>} : memref<256x128xf32, #tpu.memory_space<vmem>>, vector<16x128xf32>,
    %161 = vector.extract_strided_slice %156 {offsets = [48, 0], sizes = [16, 128], strides = [1, 1]} : vector<384x128xf32> to vector<16x128xf32>
    %c32_145 = arith.constant 32 : index
    %c0_146 = arith.constant 0 : index
    %162 = vector.load %arg14[%c32_145, %c0_146] : memref<256x128xf32, #tpu.memory_space<vmem>>, vector<16x128xf32>
    tpu.vector_store %arg14[%c32_145, %c0_146], %161 {strides = array<i32>} : memref<256x128xf32, #tpu.memory_space<vmem>>, vector<16x128xf32>,
    %163 = vector.extract_strided_slice %156 {offsets = [72, 0], sizes = [16, 128], strides = [1, 1]} : vector<384x128xf32> to vector<16x128xf32>
    %c48_147 = arith.constant 48 : index
    %c0_148 = arith.constant 0 : index
    %164 = vector.load %arg14[%c48_147, %c0_148] : memref<256x128xf32, #tpu.memory_space<vmem>>, vector<16x128xf32>
    tpu.vector_store %arg14[%c48_147, %c0_148], %163 {strides = array<i32>} : memref<256x128xf32, #tpu.memory_space<vmem>>, vector<16x128xf32>,
    %165 = vector.extract_strided_slice %156 {offsets = [96, 0], sizes = [16, 128], strides = [1, 1]} : vector<384x128xf32> to vector<16x128xf32>
    %c64 = arith.constant 64 : index
    %c0_149 = arith.constant 0 : index
    %166 = vector.load %arg14[%c64, %c0_149] : memref<256x128xf32, #tpu.memory_space<vmem>>, vector<16x128xf32>
    tpu.vector_store %arg14[%c64, %c0_149], %165 {strides = array<i32>} : memref<256x128xf32, #tpu.memory_space<vmem>>, vector<16x128xf32>,
    %167 = vector.extract_strided_slice %156 {offsets = [120, 0], sizes = [16, 128], strides = [1, 1]} : vector<384x128xf32> to vector<16x128xf32>
    %c80_150 = arith.constant 80 : index
    %c0_151 = arith.constant 0 : index
    %168 = vector.load %arg14[%c80_150, %c0_151] : memref<256x128xf32, #tpu.memory_space<vmem>>, vector<16x128xf32>
    tpu.vector_store %arg14[%c80_150, %c0_151], %167 {strides = array<i32>} : memref<256x128xf32, #tpu.memory_space<vmem>>, vector<16x128xf32>,
    %169 = vector.extract_strided_slice %156 {offsets = [144, 0], sizes = [16, 128], strides = [1, 1]} : vector<384x128xf32> to vector<16x128xf32>
    %c96_152 = arith.constant 96 : index
    %c0_153 = arith.constant 0 : index
    %170 = vector.load %arg14[%c96_152, %c0_153] : memref<256x128xf32, #tpu.memory_space<vmem>>, vector<16x128xf32>
    tpu.vector_store %arg14[%c96_152, %c0_153], %169 {strides = array<i32>} : memref<256x128xf32, #tpu.memory_space<vmem>>, vector<16x128xf32>,
    %171 = vector.extract_strided_slice %156 {offsets = [168, 0], sizes = [16, 128], strides = [1, 1]} : vector<384x128xf32> to vector<16x128xf32>
    %c112 = arith.constant 112 : index
    %c0_154 = arith.constant 0 : index
    %172 = vector.load %arg14[%c112, %c0_154] : memref<256x128xf32, #tpu.memory_space<vmem>>, vector<16x128xf32>
    tpu.vector_store %arg14[%c112, %c0_154], %171 {strides = array<i32>} : memref<256x128xf32, #tpu.memory_space<vmem>>, vector<16x128xf32>,
    %173 = vector.extract_strided_slice %156 {offsets = [192, 0], sizes = [16, 128], strides = [1, 1]} : vector<384x128xf32> to vector<16x128xf32>
    %c128_155 = arith.constant 128 : index
    %c0_156 = arith.constant 0 : index
    %174 = vector.load %arg14[%c128_155, %c0_156] : memref<256x128xf32, #tpu.memory_space<vmem>>, vector<16x128xf32>
    tpu.vector_store %arg14[%c128_155, %c0_156], %173 {strides = array<i32>} : memref<256x128xf32, #tpu.memory_space<vmem>>, vector<16x128xf32>,
    %175 = vector.extract_strided_slice %156 {offsets = [216, 0], sizes = [16, 128], strides = [1, 1]} : vector<384x128xf32> to vector<16x128xf32>
    %c144_157 = arith.constant 144 : index
    %c0_158 = arith.constant 0 : index
    %176 = vector.load %arg14[%c144_157, %c0_158] : memref<256x128xf32, #tpu.memory_space<vmem>>, vector<16x128xf32>
    tpu.vector_store %arg14[%c144_157, %c0_158], %175 {strides = array<i32>} : memref<256x128xf32, #tpu.memory_space<vmem>>, vector<16x128xf32>,
    %177 = vector.extract_strided_slice %156 {offsets = [240, 0], sizes = [16, 128], strides = [1, 1]} : vector<384x128xf32> to vector<16x128xf32>
    %c160 = arith.constant 160 : index
    %c0_159 = arith.constant 0 : index
    %178 = vector.load %arg14[%c160, %c0_159] : memref<256x128xf32, #tpu.memory_space<vmem>>, vector<16x128xf32>
    tpu.vector_store %arg14[%c160, %c0_159], %177 {strides = array<i32>} : memref<256x128xf32, #tpu.memory_space<vmem>>, vector<16x128xf32>,
    %179 = vector.extract_strided_slice %156 {offsets = [264, 0], sizes = [16, 128], strides = [1, 1]} : vector<384x128xf32> to vector<16x128xf32>
    %c176_160 = arith.constant 176 : index
    %c0_161 = arith.constant 0 : index
    %180 = vector.load %arg14[%c176_160, %c0_161] : memref<256x128xf32, #tpu.memory_space<vmem>>, vector<16x128xf32>
    tpu.vector_store %arg14[%c176_160, %c0_161], %179 {strides = array<i32>} : memref<256x128xf32, #tpu.memory_space<vmem>>, vector<16x128xf32>,
    %181 = vector.extract_strided_slice %156 {offsets = [288, 0], sizes = [16, 128], strides = [1, 1]} : vector<384x128xf32> to vector<16x128xf32>
    %c192_162 = arith.constant 192 : index
    %c0_163 = arith.constant 0 : index
    %182 = vector.load %arg14[%c192_162, %c0_163] : memref<256x128xf32, #tpu.memory_space<vmem>>, vector<16x128xf32>
    tpu.vector_store %arg14[%c192_162, %c0_163], %181 {strides = array<i32>} : memref<256x128xf32, #tpu.memory_space<vmem>>, vector<16x128xf32>,
    %183 = vector.extract_strided_slice %156 {offsets = [312, 0], sizes = [16, 128], strides = [1, 1]} : vector<384x128xf32> to vector<16x128xf32>
    %c208 = arith.constant 208 : index
    %c0_164 = arith.constant 0 : index
    %184 = vector.load %arg14[%c208, %c0_164] : memref<256x128xf32, #tpu.memory_space<vmem>>, vector<16x128xf32>
    tpu.vector_store %arg14[%c208, %c0_164], %183 {strides = array<i32>} : memref<256x128xf32, #tpu.memory_space<vmem>>, vector<16x128xf32>,
    %185 = vector.extract_strided_slice %156 {offsets = [336, 0], sizes = [16, 128], strides = [1, 1]} : vector<384x128xf32> to vector<16x128xf32>
    %c224_165 = arith.constant 224 : index
    %c0_166 = arith.constant 0 : index
    %186 = vector.load %arg14[%c224_165, %c0_166] : memref<256x128xf32, #tpu.memory_space<vmem>>, vector<16x128xf32>
    tpu.vector_store %arg14[%c224_165, %c0_166], %185 {strides = array<i32>} : memref<256x128xf32, #tpu.memory_space<vmem>>, vector<16x128xf32>,
    %187 = vector.extract_strided_slice %156 {offsets = [360, 0], sizes = [16, 128], strides = [1, 1]} : vector<384x128xf32> to vector<16x128xf32>
    %c240_167 = arith.constant 240 : index
    %c0_168 = arith.constant 0 : index
    %188 = vector.load %arg14[%c240_167, %c0_168] : memref<256x128xf32, #tpu.memory_space<vmem>>, vector<16x128xf32>
    tpu.vector_store %arg14[%c240_167, %c0_168], %187 {strides = array<i32>} : memref<256x128xf32, #tpu.memory_space<vmem>>, vector<16x128xf32>,
    %c0_169 = arith.constant 0 : index
    %c0_170 = arith.constant 0 : index
    %189 = vector.load %arg14[%c0_169, %c0_170] : memref<256x128xf32, #tpu.memory_space<vmem>>, vector<256x128xf32>
    %190 = arith.truncf %189 : vector<256x128xf32> to vector<256x128xbf16>
    %c0_171 = arith.constant 0 : index
    %c0_172 = arith.constant 0 : index
    %191 = vector.load %arg8[%c0_171, %c0_172] : memref<128x128xbf16, #tpu.memory_space<vmem>>, vector<128x128xbf16>
    %cst_173 = arith.constant dense<0.000000e+00> : vector<256x128xf32>
    %192 = tpu.matmul %190, %191, %cst_173 {dimension_numbers = #tpu.dot_dimension_numbers<[1], [0], [0], [1], [0, 0, 1, 1], [], []>} : vector<256x128xbf16>, vector<128x128xbf16>, vector<256x128xf32> -> vector<256x128xf32>
    %c0_174 = arith.constant 0 : index
    %c0_175 = arith.constant 0 : index
    %193 = vector.load %arg9[%c0_174, %c0_175] : memref<1x128xf32, #tpu.memory_space<vmem>>, vector<1x128xf32>
    %194 = vector.broadcast %193 : vector<1x128xf32> to vector<256x128xf32>
    %195 = arith.mulf %192, %194 : vector<256x128xf32>
    %c0_176 = arith.constant 0 : index
    %c0_177 = arith.constant 0 : index
    %196 = vector.load %arg10[%c0_176, %c0_177] : memref<1x128xf32, #tpu.memory_space<vmem>>, vector<1x128xf32>
    %197 = vector.broadcast %196 : vector<1x128xf32> to vector<256x128xf32>
    %198 = arith.addf %195, %197 : vector<256x128xf32>
    %199 = arith.extf %35 : vector<256x128xbf16> to vector<256x128xf32>
    %200 = arith.addf %198, %199 : vector<256x128xf32>
    %cst_178 = arith.constant 0.000000e+00 : f32
    %201 = vector.broadcast %cst_178 : f32 to vector<256x128xf32>
    %202 = arith.maximumf %200, %201 : vector<256x128xf32>
    %203 = arith.truncf %202 : vector<256x128xf32> to vector<256x128xbf16>
    %c0_179 = arith.constant 0 : index
    %c0_180 = arith.constant 0 : index
    %c0_181 = arith.constant 0 : index
    %204 = vector.load %arg11[%c0_179, %c0_180, %c0_181] : memref<1x256x128xbf16, #tpu.memory_space<vmem>>, vector<1x256x128xbf16>
    %205 = vector.shape_cast %204 : vector<1x256x128xbf16> to vector<256x128xbf16>
    %206 = vector.shape_cast %203 : vector<256x128xbf16> to vector<1x256x128xbf16>
    tpu.vector_store %arg11[%c0_179, %c0_180, %c0_181], %206 {strides = array<i32>} : memref<1x256x128xbf16, #tpu.memory_space<vmem>>, vector<1x256x128xbf16>,
    return
  }
  func.func @transform_0(%arg0: i32) -> (i32, i32, i32) {
    %c0_i32 = arith.constant 0 : i32
    %c0_i32_0 = arith.constant 0 : i32
    %c0_i32_1 = arith.constant 0 : i32
    return %arg0, %c0_i32, %c0_i32_0 : i32, i32, i32
  }
  func.func @transform_1(%arg0: i32) -> (i32, i32) {
    %c0_i32 = arith.constant 0 : i32
    %c0_i32_0 = arith.constant 0 : i32
    %c0_i32_1 = arith.constant 0 : i32
    return %c0_i32, %c0_i32_0 : i32, i32
  }
  func.func @transform_2(%arg0: i32) -> (i32, i32) {
    %c0_i32 = arith.constant 0 : i32
    %c0_i32_0 = arith.constant 0 : i32
    %c0_i32_1 = arith.constant 0 : i32
    return %c0_i32, %c0_i32_0 : i32, i32
  }
  func.func @transform_3(%arg0: i32) -> (i32, i32) {
    %c0_i32 = arith.constant 0 : i32
    %c0_i32_0 = arith.constant 0 : i32
    %c0_i32_1 = arith.constant 0 : i32
    return %c0_i32, %c0_i32_0 : i32, i32
  }
  func.func @transform_4(%arg0: i32) -> (i32, i32, i32) {
    %c0_i32 = arith.constant 0 : i32
    %c0_i32_0 = arith.constant 0 : i32
    %c0_i32_1 = arith.constant 0 : i32
    %c0_i32_2 = arith.constant 0 : i32
    return %c0_i32, %c0_i32_0, %c0_i32_1 : i32, i32, i32
  }
  func.func @transform_5(%arg0: i32) -> (i32, i32) {
    %c0_i32 = arith.constant 0 : i32
    %c0_i32_0 = arith.constant 0 : i32
    %c0_i32_1 = arith.constant 0 : i32
    return %c0_i32, %c0_i32_0 : i32, i32
  }
  func.func @transform_6(%arg0: i32) -> (i32, i32) {
    %c0_i32 = arith.constant 0 : i32
    %c0_i32_0 = arith.constant 0 : i32
    %c0_i32_1 = arith.constant 0 : i32
    return %c0_i32, %c0_i32_0 : i32, i32
  }
  func.func @transform_7(%arg0: i32) -> (i32, i32) {
    %c0_i32 = arith.constant 0 : i32
    %c0_i32_0 = arith.constant 0 : i32
    %c0_i32_1 = arith.constant 0 : i32
    return %c0_i32, %c0_i32_0 : i32, i32
  }
  func.func @transform_8(%arg0: i32) -> (i32, i32) {
    %c0_i32 = arith.constant 0 : i32
    %c0_i32_0 = arith.constant 0 : i32
    %c0_i32_1 = arith.constant 0 : i32
    return %c0_i32, %c0_i32_0 : i32, i32
  }
  func.func @transform_9(%arg0: i32) -> (i32, i32) {
    %c0_i32 = arith.constant 0 : i32
    %c0_i32_0 = arith.constant 0 : i32
    %c0_i32_1 = arith.constant 0 : i32
    return %c0_i32, %c0_i32_0 : i32, i32
  }
  func.func @transform_10(%arg0: i32) -> (i32, i32, i32) {
    %c0_i32 = arith.constant 0 : i32
    %c0_i32_0 = arith.constant 0 : i32
    %c0_i32_1 = arith.constant 0 : i32
    return %arg0, %c0_i32, %c0_i32_0 : i32, i32, i32
  }
}

</mosaic_0001>

<bundles_post_ra>
// kernel: bottleneck_pallas.1
= control target key start
LH: loop header
LB: loop body
LE: loop exit
PB: predicated region body
PF: predicated region fallthrough
CT: control target
= control target key end

     0   :  { %15 = vsyncpa [#allocation6], 0  ;;  %s9867_s0 = inlined_call_operand.vmem [shape: bf16[2,256,128], index: 0, kind: input, shape index: {}]   ;;  %s9868_s1 = inlined_call_operand.vmem [shape: bf16[128,128], index: 1, kind: input, shape index: {}]   ;;  %s9869_s2 = inlined_call_operand.vmem [shape: f32[1,128], index: 2, kind: input, shape index: {}]   ;;  %s9870_s3 = inlined_call_operand.vmem [shape: f32[1,128], index: 3, kind: input, shape index: {}]   ;;  %s9871_s4 = inlined_call_operand.vmem [shape: bf16[9,128,128], index: 4, kind: input, shape index: {}]   ;;  %s9872_s5 = inlined_call_operand.vmem [shape: f32[1,128], index: 5, kind: input, shape index: {}]   ;;  %s9873_s6 = inlined_call_operand.vmem [shape: f32[1,128], index: 6, kind: input, shape index: {}]   ;;  %s9874_s7 = inlined_call_operand.vmem [shape: bf16[128,128], index: 7, kind: input, shape index: {}]   ;;  %s9875_s8 = inlined_call_operand.vmem [shape: f32[1,128], index: 8, kind: input, shape index: {}]   ;;  %s9876_s9 = inlined_call_operand.vmem [shape: f32[1,128], index: 9, kind: input, shape index: {}]   ;;  %s9877_s10 = inlined_call_operand.hbm [shape: bf16[2,256,128], index: 10, kind: output, shape index: {}]  }
   0x1   :  { %17 = vsyncpa [#allocation6 + $0x1], 0  ;;  %s7928_s13 = smov 0   ;;  %s7930_s14 = smov 0  }
   0x2   :  { %s7932_s15 = smov 0   ;;  %s7934_s16 = smov 0  }
   0x3 LB: > { %s7949_s17 = sadd.s32 4294967295, %s7866_s16   ;;  %s6192_s18 = sadd.s32 4294967294, %s7866_s16   ;;  %s7866_s16 = sphi %s7934_s16, %s10222_s16   ;;  %s7862_s15 = sphi %s7932_s15, %s10221_s15   ;;  %s7858_s14 = sphi %s7930_s14, %s10220_s14   ;;  %s7854_s13 = sphi %s7928_s13, %s10219_s13  }
   0x4   : > { %s7953_s19 = sadd.s32 1, %s7866_s16   ;;  %s245_s20 = sadd.s32 1, %s7862_s15 }
   0x5   : > { %s242_s21 = ssub.s32 %s7866_s16, %s7953_s19  ;;  %p255_p0 = scmp.ne.s32.totalorder %s7862_s15, %s7858_s14 }
   0x6   : > { %p243_p1 = scmp.eq.s32.totalorder %s242_s21, 0  ;;  %p256_p2 = scmp.eq.s32.totalorder %s7949_s17, 1 }
   0x7   : > { %p261_p3 = scmp.ne.s32.totalorder %s7858_s14, %s7854_s13  ;;  %p262_p4 = scmp.eq.s32.totalorder %s6192_s18, 1 }
   0x8   : > { %s7964_s22 = scalar_select %p243_p1, %s7862_s15, %s245_s20  }
   0x9   : > { %p7966_p5 = por %p256_p2, %p255_p0  ;;  %p7970_p6 = por %p262_p4, %p261_p3 }
   0xa   : > { %p6195_p7 = scmp.ge.s32.totalorder %s7866_s16, 1  ;;  %p315_p8 = scmp.lt.s32.totalorder %s7866_s16, 3 }
   0xc   : > { %p316_p9 = pnand %p6195_p7, %p315_p8 }
   0xe   : > { %319 = sbr.rel (%p316_p9) target bundleno = 1167 (0x48f), region = 60 }
  0x13   : > { %v7669_v0 = vld [vmem:[%s9868_s1 + $0x38] sm:$0xff]   ;;  %p353_p10 = scmp.lt.s32.totalorder %s7949_s17, 1  ;;  %v7670_v1 = vld [vmem:[%s9868_s1 + $0x30] sm:$0xff]   ;;  %v7671_v2 = vld [vmem:[%s9868_s1 + $0x28] sm:$0xff]   ;;  %v9882_v38 = vmov 0.0   ;;  %v7869_v40 = vmov 0.0|0.0  }
  0x14   : > { %6939 = vmatprep.subr.bf16.mxu0 %v7669_v0  ;;  %v7672_v3 = vld [vmem:[%s9868_s1 + $0x20] sm:$0xff]   ;;  %v7673_v5 = vld [vmem:[%s9868_s1 + $0x18] sm:$0xff]   ;;  %v7674_v7 = vld [vmem:[%s9868_s1 + $0x10] sm:$0xff]   ;;  %359 = vst [vmem:[#allocation2] sm:$0xff] %v9882_v38  ;;  %s350_s27 = sand.u32 1, %s7858_s14   ;;  %s7870_s25 = smov [#allocation5]  }
  0x15   : > { %s354_s29 = scalar_select %p353_p10, %s7949_s17, 1  ;;  %6940 = vmatpush3.bf16.msra.mxu0 %v7669_v0  ;;  %v7693_v6 = vld [vmem:[%s9871_s4 + $0x38] sm:$0xff]   ;;  %v7695_v8 = vld [vmem:[%s9871_s4 + $0x30] sm:$0xff]   ;;  %v7697_v9 = vld [vmem:[%s9871_s4 + $0x28] sm:$0xff]   ;;  %360 = vst [vmem:[#allocation2 + $0x8] sm:$0xff] %v9882_v38 }
  0x16   : > { %6941 = vmatprep.subr.bf16.mxu0 %v7670_v1  ;;  %6987 = vmatprep.subr.bf16.mxu1 %v7693_v6  ;;  %v7675_v10 = vld [vmem:[%s9868_s1 + $0x8] sm:$0xff]   ;;  %v7699_v11 = vld [vmem:[%s9871_s4 + $0x20] sm:$0xff]   ;;  %v7694_v15 = vld [vmem:[%s9871_s4 + $0x78] sm:$0xff]   ;;  %361 = vst [vmem:[#allocation2 + $0x10] sm:$0xff] %v9882_v38  ;;  %s6196_s28 = sshll.u32 %s350_s27, 7  ;;  %s9827_s20 = scalar_lea.sflag [#allocation6], %s350_s27 }
  0x17   : > { %s6474_s12 = sshll.u32 %s354_s29, 7  ;;  %6988 = vmatpush3.bf16.msra.mxu1 %v7693_v6  ;;  %v7676_v12 = vld [vmem:[%s9868_s1] sm:$0xff]   ;;  %v7696_v16 = vld [vmem:[%s9871_s4 + $0x70] sm:$0xff]   ;;  %v7698_v19 = vld [vmem:[%s9871_s4 + $0x68] sm:$0xff]   ;;  %362 = vst [vmem:[#allocation2 + $0x18] sm:$0xff] %v9882_v38  ;;  %s9730_s29 = scalar_lea.vmem [#allocation5], %s6196_s28 }
  0x18   : > { %s7990_s21 = scalar_lea.vmem %s9867_s0, %s6474_s12  ;;  %6989 = vmatprep.subr.bf16.mxu1 %v7695_v8  ;;  %v7700_v20 = vld [vmem:[%s9871_s4 + $0x60] sm:$0xff]   ;;  %v7702_v32 = vld [vmem:[%s9871_s4 + $0x58] sm:$0xff]   ;;  %v7704_v33 = vld [vmem:[%s9871_s4 + $0x50] sm:$0xff]   ;;  %363 = vst [vmem:[#allocation2 + $0x198] sm:$0xff] %v9882_v38  ;;  %s6130_s30 = sshll.u32 %s9730_s29, 4  ;;  %s9821_s30 = int_to_ptr.vmem [resolvable:$true] %s6130_s30 }
  0x19   : > { %6942 = vmatpush3.bf16.msra.mxu0 %v7670_v1  ;;  %v383_v4 = vld [vmem:[%s7990_s21] sm:$0xff]   ;;  %v385_v13 = vld [vmem:[%s7990_s21 + $0x8] sm:$0xff]   ;;  %v387_v14 = vld [vmem:[%s7990_s21 + $0x10] sm:$0xff]   ;;  %364 = vst [vmem:[#allocation2 + $0x1a0] sm:$0xff] %v9882_v38  ;;  %s7810_s26 = sshll.u32 %s7870_s25, 4  ;;  %s7811_s26 = int_to_ptr.vmem [resolvable:$false] %s7810_s26 }
  0x1a   : > { %6943 = vmatprep.subr.bf16.mxu0 %v7671_v2  ;;  %6955 = vmatprep.mubr.bf16.mxu0 %v383_v4  ;;  %v389_v17 = vld [vmem:[%s7990_s21 + $0x18] sm:$0xff]   ;;  %v391_v18 = vld [vmem:[%s7990_s21 + $0x20] sm:$0xff]   ;;  %v393_v21 = vld [vmem:[%s7990_s21 + $0x28] sm:$0xff]   ;;  %365 = vst [vmem:[#allocation2 + $0x1a8] sm:$0xff] %v9882_v38  ;;  %s7812_s28 = scalar_lea.vmem %s7811_s26, 4096  ;;  %p7813_p0 = scmp.lt.s32.totalorder %s9821_s30, %s7811_s26 }
  0x1b   : > { %6990 = vmatpush3.bf16.msra.mxu1 %v7695_v8  ;;  %v395_v22 = vld [vmem:[%s7990_s21 + $0x30] sm:$0xff]   ;;  %v397_v23 = vld [vmem:[%s7990_s21 + $0x38] sm:$0xff]   ;;  %v399_v24 = vld [vmem:[%s7990_s21 + $0x40] sm:$0xff]   ;;  %366 = vst [vmem:[#allocation2 + $0x1b0] sm:$0xff] %v9882_v38 }
  0x1c   : > { %6991 = vmatprep.subr.bf16.mxu1 %v7697_v9  ;;  %v401_v25 = vld [vmem:[%s7990_s21 + $0x48] sm:$0xff]   ;;  %v403_v26 = vld [vmem:[%s7990_s21 + $0x50] sm:$0xff]   ;;  %v405_v27 = vld [vmem:[%s7990_s21 + $0x58] sm:$0xff]   ;;  %367 = vst [vmem:[#allocation2 + $0x1b8] sm:$0xff] %v9882_v38 }
  0x1d   : > { %6944 = vmatpush3.bf16.msra.mxu0 %v7671_v2  ;;  %v407_v28 = vld [vmem:[%s7990_s21 + $0x60] sm:$0xff]   ;;  %v409_v29 = vld [vmem:[%s7990_s21 + $0x68] sm:$0xff]   ;;  %v411_v30 = vld [vmem:[%s7990_s21 + $0x70] sm:$0xff]   ;;  %368 = vst [vmem:[#allocation2 + $0x30] sm:$0xff] %v9882_v38 }
  0x1e   : > { %6945 = vmatprep.subr.bf16.mxu0 %v7672_v3  ;;  %v413_v31 = vld [vmem:[%s7990_s21 + $0x78] sm:$0xff]   ;;  %v7706_v35 = vld [vmem:[%s9871_s4 + $0x48] sm:$0xff]   ;;  %v7703_v36 = vld [vmem:[%s9871_s4 + $0x10] sm:$0xff]   ;;  %369 = vst [vmem:[#allocation2 + $0x48] sm:$0xff] %v9882_v38 }
  0x1f   : > { %6992 = vmatpush3.bf16.msra.mxu1 %v7697_v9  ;;  %v7701_v34 = vld [vmem:[%s9871_s4 + $0x18] sm:$0xff]   ;;  %v7708_v37 = vld [vmem:[%s9871_s4 + $0x40] sm:$0xff]   ;;  %370 = vst [vmem:[#allocation2 + $0x60] sm:$0xff] %v9882_v38  ;;  %371 = vst [vmem:[#allocation2 + $0x78] sm:$0xff] %v9882_v38 }
  0x20   : > { %6993 = vmatprep.subr.bf16.mxu1 %v7699_v11  ;;  %372 = vst [vmem:[#allocation2 + $0x90] sm:$0xff] %v9882_v38  ;;  %373 = vst [vmem:[#allocation2 + $0xa8] sm:$0xff] %v9882_v38  ;;  %v7705_v39 = vld [vmem:[%s9871_s4 + $0x8] sm:$0xff]   ;;  %v7707_v41 = vld [vmem:[%s9871_s4] sm:$0xff]  }
  0x21   : > { %6946 = vmatpush3.bf16.msra.mxu0 %v7672_v3  ;;  %374 = vst [vmem:[#allocation2 + $0xc0] sm:$0xff] %v9882_v38  ;;  %375 = vst [vmem:[#allocation2 + $0xd8] sm:$0xff] %v9882_v38  ;;  %v878_v42 = vld [vmem:[#allocation2 + $0x7] sm:$0xff]  ;;  %v879_v43 = vld [vmem:[#allocation2 + $0xf] sm:$0xff] }
  0x22   : > { %6947 = vmatprep.subr.bf16.mxu0 %v7673_v5  ;;  %376 = vst [vmem:[#allocation2 + $0xf0] sm:$0xff] %v9882_v38  ;;  %377 = vst [vmem:[#allocation2 + $0x108] sm:$0xff] %v9882_v38  ;;  %v926_v44 = vpack.c.bf16 %v879_v43, %v878_v42  ;;  %v8098_v45 = vld [vmem:[%s9871_s4 + $0xb8] sm:$0xff]   ;;  %v8107_v47 = vld [vmem:[%s9869_s2] ss:$0 sm:$0xff] }
  0x23   : > { %6994 = vmatpush3.bf16.msra.mxu1 %v7699_v11  ;;  %378 = vst [vmem:[#allocation2 + $0x120] sm:$0xff] %v9882_v38  ;;  %379 = vst [vmem:[#allocation2 + $0x138] sm:$0xff] %v9882_v38  ;;  %v7715_v46 = vld [vmem:[%s9871_s4 + $0xf8] sm:$0xff]   ;;  %v8112_v49 = vld [vmem:[%s9870_s3] ss:$0 sm:$0xff] }
  0x24   : > { %6995 = vmatprep.subr.bf16.mxu1 %v7701_v34  ;;  %380 = vst [vmem:[#allocation2 + $0x150] sm:$0xff] %v9882_v38  ;;  %381 = vst [vmem:[#allocation2 + $0x168] sm:$0xff] %v9882_v38  ;;  %7003 = vmatprep.mubr.bf16.mxu1 %v926_v44  ;;  %v7716_v3 = vld [vmem:[%s9871_s4 + $0xf0] sm:$0xff]  }
  0x25   : > { %6948 = vmatpush3.bf16.msra.mxu0 %v7673_v5  ;;  %382 = vst [vmem:[#allocation2 + $0x180] sm:$0xff] %v9882_v38 }
  0x26   : > { %6949 = vmatprep.subr.bf16.mxu0 %v7674_v7 }
  0x27   : > { %6996 = vmatpush3.bf16.msra.mxu1 %v7701_v34 }
  0x28   : > { %6997 = vmatprep.subr.bf16.mxu1 %v7703_v36 }
  0x29   : > { %6950 = vmatpush3.bf16.msra.mxu0 %v7674_v7 }
  0x2a   : > { %6951 = vmatprep.subr.bf16.mxu0 %v7675_v10 }
  0x2b   : > { %6998 = vmatpush3.bf16.msra.mxu1 %v7703_v36 }
  0x2c   : > { %6999 = vmatprep.subr.bf16.mxu1 %v7705_v39 }
  0x2d   : > { %6952 = vmatpush3.bf16.msra.mxu0 %v7675_v10 }
  0x2e   : > { %6953 = vmatprep.subr.bf16.mxu0 %v7676_v12 }
  0x2f   : > { %7000 = vmatpush3.bf16.msra.mxu1 %v7705_v39 }
  0x30   : > { %7001 = vmatprep.subr.bf16.mxu1 %v7707_v41 }
  0x31   : > { %6954 = vmatpush3.bf16.msra.mxu0 %v7676_v12 }
  0x32   : > { %7051 = vmatprep.subr.bf16.mxu0 %v7694_v15 }
  0x33   : > { %7002 = vmatpush3.bf16.msra.mxu1 %v7707_v41 }
  0x34   : > { %6956 = vmatmul.mubr.bf16.vlgmr.msra.gmra.mxu0 %v385_v13  ;;  %7115 = vmatprep.subr.bf16.mxu1 %v8098_v45  ;;  %v7718_v13 = vld [vmem:[%s9871_s4 + $0xe8] sm:$0xff]  }
  0x35   : > { %6959 = vmatprep.mubr.bf16.mxu0 %v387_v14  ;;  %7052 = vmatpush3.bf16.msra.mxu0 %v7694_v15  ;;  %v880_v15 = vld [vmem:[#allocation2 + $0x17] sm:$0xff] }
  0x36   : > { %7053 = vmatprep.subr.bf16.mxu0 %v7696_v16 }
  0x39   : > { %7054 = vmatpush3.bf16.msra.mxu0 %v7696_v16 }
  0x3a   : > { %7055 = vmatprep.subr.bf16.mxu0 %v7698_v19 }
  0x3c   : > { %6960 = vmatmul.mubr.bf16.gmra.mxu0 %v389_v17 }
  0x3d   : > { %6963 = vmatprep.mubr.bf16.mxu0 %v391_v18  ;;  %7056 = vmatpush3.bf16.msra.mxu0 %v7698_v19 }
  0x3e   : > { %7057 = vmatprep.subr.bf16.mxu0 %v7700_v20 }
  0x41   : > { %7058 = vmatpush3.bf16.msra.mxu0 %v7700_v20 }
  0x42   : > { %7059 = vmatprep.subr.bf16.mxu0 %v7702_v32 }
  0x44   : > { %6964 = vmatmul.mubr.bf16.gmra.mxu0 %v393_v21 }
  0x45   : > { %6967 = vmatprep.mubr.bf16.mxu0 %v395_v22  ;;  %7060 = vmatpush3.bf16.msra.mxu0 %v7702_v32 }
  0x46   : > { %7061 = vmatprep.subr.bf16.mxu0 %v7704_v33 }
  0x49   : > { %7062 = vmatpush3.bf16.msra.mxu0 %v7704_v33 }
  0x4a   : > { %7063 = vmatprep.subr.bf16.mxu0 %v7706_v35 }
  0x4c   : > { %6968 = vmatmul.mubr.bf16.gmra.mxu0 %v397_v23 }
  0x4d   : > { %6971 = vmatprep.mubr.bf16.mxu0 %v399_v24  ;;  %7064 = vmatpush3.bf16.msra.mxu0 %v7706_v35  ;;  %v8170_v35 = vld [vmem:[%s9871_s4 + $0xa8] sm:$0xff]  }
  0x4e   : > { %7065 = vmatprep.subr.bf16.mxu0 %v7708_v37 }
  0x51   : > { %7066 = vmatpush3.bf16.msra.mxu0 %v7708_v37 }
  0x52   : > { %7179 = vmatprep.subr.bf16.mxu0 %v7715_v46 }
  0x54   : > { %6972 = vmatmul.mubr.bf16.gmra.mxu0 %v401_v25 }
  0x55   : > { %6975 = vmatprep.mubr.bf16.mxu0 %v403_v26  ;;  %v7710_v26 = vld [vmem:[%s9871_s4 + $0xb0] sm:$0xff]  }
  0x5c   : > { %6976 = vmatmul.mubr.bf16.gmra.mxu0 %v405_v27 }
  0x5d   : > { %6979 = vmatprep.mubr.bf16.mxu0 %v407_v28 }
  0x64   : > { %6980 = vmatmul.mubr.bf16.gmra.mxu0 %v409_v29 }
  0x65   : > { %6983 = vmatprep.mubr.bf16.mxu0 %v411_v30 }
  0x6c   : > { %6984 = vmatmul.mubr.bf16.gmra.mxu0 %v413_v31  ;;  %v7719_v31 = vld [vmem:[%s9871_s4 + $0xe0] sm:$0xff]  }
  0x6d   : > { %7067 = vmatprep.mubr.bf16.mxu0 %v7869_v40 }
  0xf4   : > { %v6957_v48 = vpop.f32.mrf.mxu0 }
  0xf5   : > { %v745_v50 = vmul.f32 %v6957_v48, %v8107_v47 }
  0xf6   : > { %v609_v51 = vpop.f32.mrf.mxu0 }
  0xf7   : > { %v784_v52 = vadd.f32 %v8112_v49, %v745_v50  ;;  %v743_v53 = vmul.f32 %v8107_v47, %v609_v51 }
  0xf8   : > { %v6958_v54 = vpop.f32.mrf.mxu0 }
  0xf9   : > { %v816_v55 = vmax.f32 %v784_v52, 0.0  ;;  %v782_v56 = vadd.f32 %v8112_v49, %v743_v53  ;;  %v746_v57 = vmul.f32 %v6958_v54, %v8107_v47  ;;  %v7720_v52 = vld [vmem:[%s9871_s4 + $0xd8] sm:$0xff]  }
  0xfa   : > { %v612_v58 = vpop.f32.mrf.mxu0 }
  0xfb   : > { %848 = vst [vmem:[#allocation2 + $0x38] sm:$0xff] %v816_v55  ;;  %v814_v59 = vmax.f32 %v782_v56, 0.0  ;;  %v785_v60 = vadd.f32 %v8112_v49, %v746_v57  ;;  %v744_v61 = vmul.f32 %v8107_v47, %v612_v58 }
  0xfc   : > { %v6961_v62 = vpop.f32.mrf.mxu0 }
  0xfd   : > { %846 = vst [vmem:[#allocation2 + $0x20] sm:$0xff] %v814_v59  ;;  %v817_v63 = vmax.f32 %v785_v60, 0.0  ;;  %v783_v0 = vadd.f32 %v8112_v49, %v744_v61  ;;  %v749_v1 = vmul.f32 %v6961_v62, %v8107_v47  ;;  %v1336_v2 = vpack.c.bf16 %v814_v59, %v9882_v38 }
  0xfe   : > { %v625_v4 = vpop.f32.mrf.mxu0 }
  0xff   : > { %849 = vst [vmem:[#allocation2 + $0x40] sm:$0xff] %v817_v63  ;;  %v815_v5 = vmax.f32 %v783_v0, 0.0  ;;  %v8128_v6 = vadd.f32 %v8112_v49, %v749_v1  ;;  %v747_v7 = vmul.f32 %v8107_v47, %v625_v4  ;;  %7068 = vmatmul.mubr.bf16.vlgmr.msra.gmra.mxu0 %v1336_v2  ;;  %v1338_v21 = vpack.c.bf16 %v817_v63, %v816_v55  ;;  %v7717_v0 = vld [vmem:[%s9871_s4 + $0x88] sm:$0xff]  }
 0x100   : > { %v6962_v8 = vpop.f32.mrf.mxu0  ;;  %7180 = vmatpush3.bf16.msra.mxu0 %v7715_v46 }
 0x101   : > { %847 = vst [vmem:[#allocation2 + $0x28] sm:$0xff] %v815_v5  ;;  %v820_v9 = vmax.f32 %v8128_v6, 0.0  ;;  %v786_v10 = vadd.f32 %v8112_v49, %v747_v7  ;;  %v750_v11 = vmul.f32 %v6962_v8, %v8107_v47  ;;  %v1337_v12 = vpack.c.bf16 %v9882_v38, %v815_v5  ;;  %7181 = vmatprep.subr.bf16.mxu0 %v7716_v3  ;;  %v7712_v7 = vld [vmem:[%s9871_s4 + $0xa0] sm:$0xff]  }
 0x102   : > { %v628_v14 = vpop.f32.mrf.mxu0  ;;  %v8177_v40 = vld [vmem:[#allocation2 + $0x37] sm:$0xff] }
 0x103   : > { %852 = vst [vmem:[#allocation2 + $0x68] sm:$0xff] %v820_v9  ;;  %v818_v16 = vmax.f32 %v786_v10, 0.0  ;;  %v8141_v17 = vadd.f32 %v8112_v49, %v750_v11  ;;  %v748_v18 = vmul.f32 %v8107_v47, %v628_v14  ;;  %7071 = vmatprep.mubr.bf16.mxu0 %v1337_v12  ;;  %v8208_v58 = vld [vmem:[#allocation2 + $0x31] sm:$0xff] }
 0x104   : > { %v6965_v19 = vpop.f32.mrf.mxu0  ;;  %v8144_v20 = vld [vmem:[#allocation2 + $0x1f] sm:$0xff]  ;;  %7182 = vmatpush3.bf16.msra.mxu0 %v7716_v3  ;;  %v7722_v14 = vld [vmem:[%s9871_s4 + $0xd0] sm:$0xff]  }
 0x105   : > { %850 = vst [vmem:[#allocation2 + $0x50] sm:$0xff] %v818_v16  ;;  %v821_v22 = vmax.f32 %v8141_v17, 0.0  ;;  %v787_v23 = vadd.f32 %v8112_v49, %v748_v18  ;;  %v753_v24 = vmul.f32 %v6965_v19, %v8107_v47  ;;  %v927_v25 = vpack.c.bf16 %v8144_v20, %v880_v15  ;;  %7183 = vmatprep.subr.bf16.mxu0 %v7718_v13 }
 0x106   : > { %v641_v27 = vpop.f32.mrf.mxu0  ;;  %v8153_v28 = vld [vmem:[#allocation2 + $0x3f] sm:$0xff]  ;;  %v8155_v29 = vld [vmem:[#allocation2 + $0x47] sm:$0xff]  ;;  %v1339_v30 = vpack.c.bf16 %v818_v16, %v9882_v38 }
 0x107   : > { %853 = vst [vmem:[#allocation2 + $0x70] sm:$0xff] %v821_v22  ;;  %v819_v32 = vmax.f32 %v787_v23, 0.0  ;;  %v8164_v33 = vadd.f32 %v8112_v49, %v753_v24  ;;  %v751_v34 = vmul.f32 %v8107_v47, %v641_v27  ;;  %7004 = vmatmul.mubr.bf16.vlgmr.msra.gmra.mxu1 %v927_v25  ;;  %7072 = vmatmul.mubr.bf16.gmra.mxu0 %v1338_v21  ;;  %v8192_v50 = vld [vmem:[#allocation2 + $0x39] sm:$0xff]  ;;  %v8234_v8 = vld [vmem:[#allocation2 + $0x41] sm:$0xff] }
 0x108   : > { %7116 = vmatpush3.bf16.msra.mxu1 %v8098_v45  ;;  %v6966_v36 = vpop.f32.mrf.mxu0  ;;  %v8173_v37 = vld [vmem:[#allocation2 + $0x27] sm:$0xff]  ;;  %v8175_v39 = vld [vmem:[#allocation2 + $0x2f] sm:$0xff]  ;;  %7075 = vmatprep.mubr.bf16.mxu0 %v1339_v30  ;;  %v929_v60 = vpack.c.bf16 %v8153_v28, %v8177_v40  ;;  %v1341_v12 = vpack.c.bf16 %v821_v22, %v820_v9 }
 0x109   : > { %851 = vst [vmem:[#allocation2 + $0x58] sm:$0xff] %v819_v32  ;;  %v824_v42 = vmax.f32 %v8164_v33, 0.0  ;;  %v8183_v43 = vadd.f32 %v8112_v49, %v751_v34  ;;  %v754_v44 = vmul.f32 %v6966_v36, %v8107_v47  ;;  %v928_v45 = vpack.c.bf16 %v8175_v39, %v8173_v37  ;;  %7117 = vmatprep.subr.bf16.mxu1 %v7710_v26  ;;  %v8188_v46 = vld [vmem:[#allocation2 + $0x21] sm:$0xff]  ;;  %v8190_v48 = vld [vmem:[#allocation2 + $0x29] sm:$0xff]  ;;  %v7713_v34 = vld [vmem:[%s9871_s4 + $0x98] sm:$0xff]  }
 0x10a   : > { %7184 = vmatpush3.bf16.msra.mxu0 %v7718_v13  ;;  %v644_v51 = vpop.f32.mrf.mxu0  ;;  %v1340_v62 = vpack.c.bf16 %v9882_v38, %v819_v32  ;;  %v8260_v21 = vld [vmem:[#allocation2 + $0x61] sm:$0xff] }
 0x10b   : > { %7185 = vmatprep.subr.bf16.mxu0 %v7719_v31  ;;  %856 = vst [vmem:[#allocation2 + $0x98] sm:$0xff] %v824_v42  ;;  %v822_v55 = vmax.f32 %v8183_v43, 0.0  ;;  %v8205_v56 = vadd.f32 %v8112_v49, %v754_v44  ;;  %v752_v57 = vmul.f32 %v8107_v47, %v644_v51  ;;  %7007 = vmatprep.mubr.bf16.mxu1 %v928_v45  ;;  %10002 = vst [vmem:[#allocation9_spill] sm:$0xff] %v8260_v21  ;;  %v8276_v32 = vld [vmem:[#allocation2 + $0x67] sm:$0xff] }
 0x10c   : > { %v6969_v59 = vpop.f32.mrf.mxu0  ;;  %v8212_v61 = vld [vmem:[#allocation2 + $0x4f] sm:$0xff]  ;;  %7118 = vmatpush3.bf16.msra.mxu1 %v7710_v26 }
 0x10d   : > { %v8215_v63 = vld [vmem:[#allocation2 + $0x49] sm:$0xff]  ;;  %854 = vst [vmem:[#allocation2 + $0x80] sm:$0xff] %v822_v55  ;;  %v825_v2 = vmax.f32 %v8205_v56, 0.0  ;;  %v8225_v3 = vadd.f32 %v8112_v49, %v752_v57  ;;  %v757_v4 = vmul.f32 %v6969_v59, %v8107_v47  ;;  %v930_v5 = vpack.c.bf16 %v8212_v61, %v8155_v29  ;;  %7119 = vmatprep.subr.bf16.mxu1 %v8170_v35 }
 0x10e   : > { %7186 = vmatpush3.bf16.msra.mxu0 %v7719_v31  ;;  %v657_v10 = vpop.f32.mrf.mxu0  ;;  %v8236_v11 = vld [vmem:[#allocation2 + $0x6f] sm:$0xff]  ;;  %v8242_v13 = vld [vmem:[#allocation2 + $0x77] sm:$0xff]  ;;  %v1342_v59 = vpack.c.bf16 %v822_v55, %v9882_v38 }
 0x10f   : > { %10001 = vst [vmem:[#allocation8_spill] sm:$0xff] %v8236_v11  ;;  %7187 = vmatprep.subr.bf16.mxu0 %v7720_v52  ;;  %857 = vst [vmem:[#allocation2 + $0xa0] sm:$0xff] %v825_v2  ;;  %v823_v16 = vmax.f32 %v8225_v3, 0.0  ;;  %v8253_v6 = vadd.f32 %v8112_v49, %v757_v4  ;;  %v755_v9 = vmul.f32 %v8107_v47, %v657_v10  ;;  %7008 = vmatmul.mubr.bf16.gmra.mxu1 %v929_v60  ;;  %v8274_v30 = vld [vmem:[#allocation2 + $0x69] sm:$0xff] }
 0x110   : > { %7076 = vmatmul.mubr.bf16.gmra.mxu0 %v1340_v62  ;;  %7011 = vmatprep.mubr.bf16.mxu1 %v930_v5  ;;  %v6970_v17 = vpop.f32.mrf.mxu0  ;;  %v8256_v18 = vld [vmem:[#allocation2 + $0x57] sm:$0xff]  ;;  %v8258_v19 = vld [vmem:[#allocation2 + $0x5f] sm:$0xff]  ;;  %10004 = vst [vmem:[#allocation11_spill] sm:$0xff] %v8274_v30 }
 0x111   : > { %7079 = vmatprep.mubr.bf16.mxu0 %v1341_v12  ;;  %855 = vst [vmem:[#allocation2 + $0x88] sm:$0xff] %v823_v16  ;;  %v9881_v23 = vmax.f32 %v8253_v6, 0.0  ;;  %v8266_v24 = vadd.f32 %v8112_v49, %v755_v9  ;;  %v758_v25 = vmul.f32 %v6970_v17, %v8107_v47  ;;  %7120 = vmatpush3.bf16.msra.mxu1 %v8170_v35  ;;  %v8270_v26 = vld [vmem:[#allocation2 + $0x51] sm:$0xff]  ;;  %v8272_v27 = vld [vmem:[#allocation2 + $0x59] sm:$0xff]  ;;  %v7723_v35 = vld [vmem:[%s9871_s4 + $0xc8] sm:$0xff]  }
 0x112   : > { %7188 = vmatpush3.bf16.msra.mxu0 %v7720_v52  ;;  %10003 = vst [vmem:[#allocation10_spill] sm:$0xff] %v8272_v27  ;;  %v660_v31 = vpop.f32.mrf.mxu0  ;;  %7121 = vmatprep.subr.bf16.mxu1 %v7712_v7  ;;  %v931_v43 = vpack.c.bf16 %v8258_v19, %v8256_v18  ;;  %v7714_v55 = vld [vmem:[%s9871_s4 + $0x90] sm:$0xff]   ;;  %v932_v17 = vpack.c.bf16 %v8236_v11, %v8276_v32 }
 0x113   : > { %7189 = vmatprep.subr.bf16.mxu0 %v7722_v14  ;;  %860 = vst [vmem:[#allocation2 + $0xc8] sm:$0xff] %v9881_v23  ;;  %v826_v44 = vmax.f32 %v8266_v24, 0.0  ;;  %v8290_v45 = vadd.f32 %v8112_v49, %v758_v25  ;;  %v756_v51 = vmul.f32 %v8107_v47, %v660_v31  ;;  %v8316_v12 = vld [vmem:[#allocation2 + $0x71] sm:$0xff]  ;;  %v1343_v25 = vpack.c.bf16 %v9882_v38, %v823_v16 }
 0x114   : > { %v6973_v57 = vpop.f32.mrf.mxu0  ;;  %v8298_v60 = vld [vmem:[#allocation2 + $0x79] sm:$0xff]  ;;  %10006 = vst [vmem:[#allocation13_spill] sm:$0xff] %v8316_v12  ;;  %v8372_v36 = vld [vmem:[#allocation2 + $0x91] sm:$0xff] }
 0x115   : > { %10005 = vst [vmem:[#allocation12_spill] sm:$0xff] %v8298_v60  ;;  %858 = vst [vmem:[#allocation2 + $0xb0] sm:$0xff] %v826_v44  ;;  %v9880_v4 = vmax.f32 %v8290_v45, 0.0  ;;  %v8308_v5 = vadd.f32 %v8112_v49, %v756_v51  ;;  %v761_v10 = vmul.f32 %v6973_v57, %v8107_v47  ;;  %7122 = vmatpush3.bf16.msra.mxu1 %v7712_v7  ;;  %v7724_v7 = vld [vmem:[%s9871_s4 + $0xc0] sm:$0xff]  }
 0x116   : > { %7190 = vmatpush3.bf16.msra.mxu0 %v7722_v14  ;;  %v673_v9 = vpop.f32.mrf.mxu0  ;;  %v8321_v31 = vld [vmem:[#allocation2 + $0x9f] sm:$0xff]  ;;  %v8323_v51 = vld [vmem:[#allocation2 + $0xa7] sm:$0xff]  ;;  %7123 = vmatprep.subr.bf16.mxu1 %v7713_v34  ;;  %v8341_v14 = vld [vmem:[#allocation2 + $0x97] sm:$0xff]  ;;  %10015 = vst [vmem:[#allocation22_spill] sm:$0xff] %v8372_v36 }
 0x117   : > { %10007 = vst [vmem:[#allocation14_spill] sm:$0xff] %v8321_v31  ;;  %10008 = vst [vmem:[#allocation15_spill] sm:$0xff] %v8323_v51  ;;  %7191 = vmatprep.subr.bf16.mxu0 %v7723_v35  ;;  %v9884_v57 = vmax.f32 %v8308_v5, 0.0  ;;  %v8334_v16 = vadd.f32 %v8112_v49, %v761_v10  ;;  %7012 = vmatmul.mubr.bf16.gmra.mxu1 %v931_v43  ;;  %v759_v3 = vmul.f32 %v8107_v47, %v673_v9  ;;  %v8352_v9 = vld [vmem:[#allocation2 + $0x7f] sm:$0xff] }
 0x118   : > { %861 = vst [vmem:[#allocation2 + $0xd0] sm:$0xff] %v9880_v4  ;;  %7080 = vmatmul.mubr.bf16.gmra.mxu0 %v1342_v59  ;;  %7015 = vmatprep.mubr.bf16.mxu1 %v932_v17  ;;  %v6974_v62 = vpop.f32.mrf.mxu0  ;;  %v8337_v15 = vld [vmem:[#allocation2 + $0x87] sm:$0xff]  ;;  %v8339_v1 = vld [vmem:[#allocation2 + $0x8f] sm:$0xff]  ;;  %10011 = vst [vmem:[#allocation18_spill] sm:$0xff] %v8341_v14  ;;  %v933_v33 = vpack.c.bf16 %v8352_v9, %v8242_v13 }
 0x119   : > { %10009 = vst [vmem:[#allocation16_spill] sm:$0xff] %v8337_v15  ;;  %10010 = vst [vmem:[#allocation17_spill] sm:$0xff] %v8339_v1  ;;  %7083 = vmatprep.mubr.bf16.mxu0 %v1343_v25  ;;  %v9878_v10 = vmax.f32 %v8334_v16, 0.0  ;;  %v8349_v43 = vadd.f32 %v8112_v49, %v759_v3  ;;  %v762_v59 = vmul.f32 %v6974_v62, %v8107_v47  ;;  %7124 = vmatpush3.bf16.msra.mxu1 %v7713_v34  ;;  %v8354_v17 = vld [vmem:[#allocation2 + $0x81] sm:$0xff]  ;;  %v8356_v25 = vld [vmem:[#allocation2 + $0x89] sm:$0xff] }
 0x11a   : > { %859 = vst [vmem:[#allocation2 + $0xb8] sm:$0xff] %v9884_v57  ;;  %10012 = vst [vmem:[#allocation19_spill] sm:$0xff] %v8352_v9  ;;  %7192 = vmatpush3.bf16.msra.mxu0 %v7723_v35  ;;  %v676_v22 = vpop.f32.mrf.mxu0  ;;  %7125 = vmatprep.subr.bf16.mxu1 %v7714_v55  ;;  %v8374_v41 = vld [vmem:[#allocation2 + $0x99] sm:$0xff]  ;;  %v1344_v3 = vpack.c.bf16 %v825_v2, %v824_v42  ;;  %v8396_v2 = vld [vmem:[#allocation2 + $0xa1] sm:$0xff]  ;;  %v934_v24 = vpack.c.bf16 %v8339_v1, %v8337_v15 }
 0x11b   : > { %10013 = vst [vmem:[#allocation20_spill] sm:$0xff] %v8354_v17  ;;  %10014 = vst [vmem:[#allocation21_spill] sm:$0xff] %v8356_v25  ;;  %7193 = vmatprep.subr.bf16.mxu0 %v7724_v7  ;;  %v9879_v34 = vmax.f32 %v8349_v43, 0.0  ;;  %v8367_v35 = vadd.f32 %v8112_v49, %v762_v59  ;;  %v760_v62 = vmul.f32 %v8107_v47, %v676_v22  ;;  %v8563_v9 = vld [vmem:[#allocation2 + $0x38] sm:$0xff] }
 0x11c   : > { %864 = vst [vmem:[#allocation2 + $0xf8] sm:$0xff] %v9878_v10  ;;  %10016 = vst [vmem:[#allocation23_spill] sm:$0xff] %v8374_v41  ;;  %v6977_v54 = vpop.f32.mrf.mxu0  ;;  %v1345_v59 = vpack.c.bf16 %v826_v44, %v9882_v38  ;;  %v8383_v53 = vld [vmem:[#allocation2 + $0xa9] sm:$0xff] }
 0x11d   : > { %10017 = vst [vmem:[#allocation24_spill] sm:$0xff] %v8383_v53  ;;  %862 = vst [vmem:[#allocation2 + $0xe0] sm:$0xff] %v9879_v34  ;;  %v9885_v52 = vmax.f32 %v8367_v35, 0.0  ;;  %v8393_v56 = vadd.f32 %v8112_v49, %v760_v62  ;;  %v765_v42 = vmul.f32 %v6977_v54, %v8107_v47  ;;  %7126 = vmatpush3.bf16.msra.mxu1 %v7714_v55  ;;  %v7721_v62 = vld [vmem:[%s9871_s4 + $0x80] sm:$0xff]   ;;  %v8418_v23 = vld [vmem:[#allocation2 + $0xaf] sm:$0xff] }
 0x11e   : > { %7194 = vmatpush3.bf16.msra.mxu0 %v7724_v7  ;;  %10018 = vst [vmem:[#allocation25_spill] sm:$0xff] %v8396_v2  ;;  %v689_v44 = vpop.f32.mrf.mxu0  ;;  %7127 = vmatprep.subr.bf16.mxu1 %v7717_v0  ;;  %10020 = vst [vmem:[#allocation27_spill] sm:$0xff] %v8418_v23  ;;  %v8420_v38 = vld [vmem:[#allocation2 + $0xc7] sm:$0xff] }
 0x11f   : > { %v8400_v22 = vld [vmem:[#allocation2 + $0xcf] sm:$0xff]  ;;  %v8402_v10 = vld [vmem:[#allocation2 + $0xd7] sm:$0xff]  ;;  %865 = vst [vmem:[#allocation2 + $0x100] sm:$0xff] %v9885_v52  ;;  %7016 = vmatmul.mubr.bf16.gmra.mxu1 %v933_v33  ;;  %v9890_v7 = vmax.f32 %v8393_v56, 0.0  ;;  %v8415_v34 = vadd.f32 %v8112_v49, %v765_v42  ;;  %v763_v4 = vmul.f32 %v8107_v47, %v689_v44  ;;  %10021 = vst [vmem:[#allocation28_spill] sm:$0xff] %v8420_v38 }
 0x120   : > { %10019 = vst [vmem:[#allocation26_spill] sm:$0xff] %v8400_v22  ;;  %7084 = vmatmul.mubr.bf16.gmra.mxu0 %v1344_v3  ;;  %v8422_v54 = vld [vmem:[#allocation2 + $0xc1] sm:$0xff]  ;;  %7019 = vmatprep.mubr.bf16.mxu1 %v934_v24  ;;  %v6978_v55 = vpop.f32.mrf.mxu0  ;;  %v8430_v52 = vld [vmem:[#allocation2 + $0xc9] sm:$0xff]  ;;  %v8446_v42 = vld [vmem:[%s9871_s4 + $0x178] sm:$0xff]  }
 0x121   : > { %10022 = vst [vmem:[#allocation29_spill] sm:$0xff] %v8422_v54  ;;  %7087 = vmatprep.mubr.bf16.mxu0 %v1345_v59  ;;  %v8424_v57 = vld [vmem:[#allocation2 + $0xb7] sm:$0xff]  ;;  %v8426_v33 = vld [vmem:[#allocation2 + $0xbf] sm:$0xff]  ;;  %10025 = vst [vmem:[#allocation32_spill] sm:$0xff] %v8430_v52  ;;  %v9901_v3 = vmax.f32 %v8415_v34, 0.0  ;;  %v8436_v44 = vadd.f32 %v8112_v49, %v763_v4  ;;  %v766_v59 = vmul.f32 %v6978_v55, %v8107_v47  ;;  %7128 = vmatpush3.bf16.msra.mxu1 %v7717_v0 }
 0x122   : > { %10023 = vst [vmem:[#allocation30_spill] sm:$0xff] %v8424_v57  ;;  %10024 = vst [vmem:[#allocation31_spill] sm:$0xff] %v8426_v33  ;;  %v8439_v24 = vld [vmem:[#allocation2 + $0xb1] sm:$0xff]  ;;  %v8441_v53 = vld [vmem:[#allocation2 + $0xb9] sm:$0xff]  ;;  %v692_v2 = vpop.f32.mrf.mxu0  ;;  %7129 = vmatprep.subr.bf16.mxu1 %v7721_v62  ;;  %7307 = vmatprep.subr.bf16.mxu0 %v8446_v42  ;;  %v935_v4 = vpack.c.bf16 %v8321_v31, %v8341_v14  ;;  %v10030_v31 = vmax.f32 %v8308_v5, 0.0  ;;  %v10031_v14 = vmov 0.0   ;;  %v936_v0 = vpack.c.bf16 %v8418_v23, %v8323_v51 }
 0x123   : > { %863 = vst [vmem:[#allocation2 + $0xe8] sm:$0xff] %v9890_v7  ;;  %10026 = vst [vmem:[#allocation33_spill] sm:$0xff] %v8439_v24  ;;  %v8451_v7 = vld [vmem:[%s9871_s4 + $0x138] sm:$0xff]   ;;  %v9909_v55 = vmax.f32 %v8436_v44, 0.0  ;;  %v8461_v41 = vadd.f32 %v8112_v49, %v766_v59  ;;  %v764_v36 = vmul.f32 %v8107_v47, %v692_v2  ;;  %v8543_v51 = vld [vmem:[#allocation2 + $0x40] sm:$0xff] }
 0x124   : > { %10027 = vst [vmem:[#allocation34_spill] sm:$0xff] %v8441_v53  ;;  %868 = vst [vmem:[#allocation2 + $0x128] sm:$0xff] %v9901_v3  ;;  %v8464_v25 = vld [vmem:[#allocation2 + $0xd1] sm:$0xff]  ;;  %v6981_v17 = vpop.f32.mrf.mxu0  ;;  %v8469_v60 = vld [vmem:[#allocation2 + $0xd9] sm:$0xff]  ;;  %v1346_v12 = vpack.c.bf16 %v10031_v14, %v10030_v31  ;;  %v10032_v3 = vmax.f32 %v8253_v6, 0.0 }
 0x125   : > { %10028 = vst [vmem:[#allocation35_spill] sm:$0xff] %v8464_v25  ;;  %10029 = vst [vmem:[#allocation36_spill] sm:$0xff] %v8469_v60  ;;  %v8479_v59 = vadd.f32 %v8112_v49, %v764_v36  ;;  %v769_v1 = vmul.f32 %v6981_v17, %v8107_v47  ;;  %7130 = vmatpush3.bf16.msra.mxu1 %v7721_v62  ;;  %v10034_v31 = vmax.f32 %v8461_v41, 0.0  ;;  %v8505_v62 = vld [vmem:[#allocation2 + $0xf7] sm:$0xff]  ;;  %v8509_v5 = vld [vmem:[#allocation2 + $0xdf] sm:$0xff] }
 0x126   : > { %866 = vst [vmem:[#allocation2 + $0x110] sm:$0xff] %v9909_v55  ;;  %v705_v53 = vpop.f32.mrf.mxu0  ;;  %v10033_v55 = vmax.f32 %v8290_v45, 0.0  ;;  %v8491_v2 = vld [vmem:[#allocation2 + $0xff] sm:$0xff]  ;;  %v8493_v36 = vld [vmem:[#allocation2 + $0x107] sm:$0xff]  ;;  %7243 = vmatprep.subr.bf16.mxu1 %v8451_v7  ;;  %10041 = vst [vmem:[#allocation43_spill] sm:$0xff] %v8543_v51 }
 0x127   : > { %7020 = vmatmul.mubr.bf16.gmra.mxu1 %v935_v4  ;;  %869 = vst [vmem:[#allocation2 + $0x130] sm:$0xff] %v10034_v31  ;;  %v9918_v17 = vmax.f32 %v8479_v59, 0.0  ;;  %v8502_v6 = vadd.f32 %v8112_v49, %v769_v1  ;;  %v767_v45 = vmul.f32 %v8107_v47, %v705_v53  ;;  %v8528_v25 = vld [vmem:[#allocation2 + $0xf9] sm:$0xff]  ;;  %v8541_v23 = vld [vmem:[#allocation2 + $0x101] sm:$0xff]  ;;  %v10042_v1 = vmax.f32 %v8349_v43, 0.0  ;;  %10044 = vst [vmem:[#allocation45_spill] sm:$0xff] %v8563_v9 }
 0x128   : > { %v1347_v52 = vpack.c.bf16 %v10033_v55, %v10032_v3  ;;  %7088 = vmatmul.mubr.bf16.gmra.mxu0 %v1346_v12  ;;  %v8507_v3 = vld [vmem:[#allocation2 + $0xf1] sm:$0xff]  ;;  %7023 = vmatprep.mubr.bf16.mxu1 %v936_v0  ;;  %v6982_v55 = vpop.f32.mrf.mxu0  ;;  %10039 = vst [vmem:[#allocation41_spill] sm:$0xff] %v8528_v25  ;;  %10040 = vst [vmem:[#allocation42_spill] sm:$0xff] %v8541_v23 }
 0x129   : > { %10035 = vst [vmem:[#allocation37_spill] sm:$0xff] %v8507_v3  ;;  %867 = vst [vmem:[#allocation2 + $0x118] sm:$0xff] %v9918_v17  ;;  %v9927_v53 = vmax.f32 %v8502_v6, 0.0  ;;  %v8521_v12 = vadd.f32 %v8112_v49, %v767_v45  ;;  %v1348_v30 = vpack.c.bf16 %v10042_v1, %v10031_v14 }
 0x12a   : > { %7091 = vmatprep.mubr.bf16.mxu0 %v1347_v52  ;;  %v8511_v4 = vld [vmem:[#allocation2 + $0xe7] sm:$0xff]  ;;  %v8513_v31 = vld [vmem:[#allocation2 + $0xef] sm:$0xff]  ;;  %v770_v52 = vmul.f32 %v6982_v55, %v8107_v47  ;;  %v708_v54 = vpop.f32.mrf.mxu0 }
 0x12b   : > { %10036 = vst [vmem:[#allocation38_spill] sm:$0xff] %v8513_v31  ;;  %v8524_v0 = vld [vmem:[#allocation2 + $0xe1] sm:$0xff]  ;;  %v8526_v60 = vld [vmem:[#allocation2 + $0xe9] sm:$0xff]  ;;  %872 = vst [vmem:[#allocation2 + $0x158] sm:$0xff] %v9927_v53  ;;  %v9937_v45 = vmax.f32 %v8521_v12, 0.0  ;;  %v768_v24 = vmul.f32 %v8107_v47, %v708_v54  ;;  %v937_v54 = vpack.c.bf16 %v8426_v33, %v8424_v57  ;;  %v938_v53 = vpack.c.bf16 %v8400_v22, %v8420_v38 }
 0x12c   : > { %10037 = vst [vmem:[#allocation39_spill] sm:$0xff] %v8524_v0  ;;  %10038 = vst [vmem:[#allocation40_spill] sm:$0xff] %v8526_v60  ;;  %v8538_v55 = vadd.f32 %v8112_v49, %v770_v52  ;;  %v6985_v21 = vpop.f32.mrf.mxu0  ;;  %v10045_v52 = vmax.f32 %v8393_v56, 0.0  ;;  %v8583_v22 = vld [vmem:[#allocation2 + $0x127] sm:$0xff]  ;;  %v10051_v38 = vmax.f32 %v8436_v44, 0.0 }
 0x12d   : > { %v8548_v17 = vld [vmem:[#allocation2 + $0x109] sm:$0xff]  ;;  %870 = vst [vmem:[#allocation2 + $0x140] sm:$0xff] %v9937_v45  ;;  %v8560_v43 = vadd.f32 %v8112_v49, %v768_v24  ;;  %v773_v1 = vmul.f32 %v6985_v21, %v8107_v47  ;;  %v8585_v33 = vld [vmem:[#allocation2 + $0x121] sm:$0xff] }
 0x12e   : > { %10043 = vst [vmem:[#allocation44_spill] sm:$0xff] %v8548_v17  ;;  %v9944_v27 = vmax.f32 %v8538_v55, 0.0  ;;  %v1349_v25 = vpack.c.bf16 %v10031_v14, %v10045_v52  ;;  %v721_v3 = vpop.f32.mrf.mxu0  ;;  %v8570_v60 = vld [vmem:[#allocation2 + $0x12f] sm:$0xff]  ;;  %v8572_v45 = vld [vmem:[#allocation2 + $0x137] sm:$0xff]  ;;  %10046 = vst [vmem:[#allocation46_spill] sm:$0xff] %v8585_v33  ;;  %v1351_v57 = vpack.c.bf16 %v10051_v38, %v10031_v14  ;;  %v10055_v38 = vmax.f32 %v8367_v35, 0.0 }
 0x12f   : > { %7024 = vmatmul.mubr.bf16.gmra.mxu1 %v937_v54  ;;  %v9951_v56 = vmax.f32 %v8560_v43, 0.0  ;;  %v812_v52 = vadd.f32 %v8112_v49, %v773_v1  ;;  %v771_v0 = vmul.f32 %v8107_v47, %v721_v3  ;;  %v8587_v24 = vld [vmem:[#allocation2 + $0x10f] sm:$0xff] }
 0x130   : > { %873 = vst [vmem:[#allocation2 + $0x160] sm:$0xff] %v9944_v27  ;;  %7092 = vmatmul.mubr.bf16.gmra.mxu0 %v1348_v30  ;;  %7027 = vmatprep.mubr.bf16.mxu1 %v938_v53  ;;  %v6986_v21 = vpop.f32.mrf.mxu0  ;;  %v8589_v54 = vld [vmem:[#allocation2 + $0x117] sm:$0xff]  ;;  %v8591_v51 = vld [vmem:[#allocation2 + $0x11f] sm:$0xff]  ;;  %v8605_v9 = vld [vmem:[#allocation2 + $0x129] sm:$0xff]  ;;  %v940_v30 = vpack.c.bf16 %v8513_v31, %v8511_v4 }
 0x131   : > { %7095 = vmatprep.mubr.bf16.mxu0 %v1349_v25  ;;  %871 = vst [vmem:[#allocation2 + $0x148] sm:$0xff] %v9951_v56  ;;  %v844_v3 = vmax.f32 %v812_v52, 0.0  ;;  %v8598_v1 = vadd.f32 %v8112_v49, %v771_v0  ;;  %v774_v53 = vmul.f32 %v6986_v21, %v8107_v47  ;;  %v8601_v25 = vld [vmem:[#allocation2 + $0x111] sm:$0xff]  ;;  %v8603_v27 = vld [vmem:[#allocation2 + $0x119] sm:$0xff]  ;;  %10049 = vst [vmem:[#allocation49_spill] sm:$0xff] %v8605_v9 }
 0x132   : > { %10047 = vst [vmem:[#allocation47_spill] sm:$0xff] %v8601_v25  ;;  %10048 = vst [vmem:[#allocation48_spill] sm:$0xff] %v8603_v27  ;;  %v724_v17 = vpop.f32.mrf.mxu0  ;;  %v8614_v56 = vld [vmem:[#allocation2 + $0x131] sm:$0xff]  ;;  %v8646_v33 = vld [vmem:[#allocation2 + $0x68] sm:$0xff] }
 0x133   : > { %876 = vst [vmem:[#allocation2 + $0x188] sm:$0xff] %v844_v3  ;;  %v9962_v52 = vmax.f32 %v8598_v1, 0.0  ;;  %v813_v0 = vadd.f32 %v8112_v49, %v774_v53  ;;  %v772_v21 = vmul.f32 %v8107_v47, %v724_v17  ;;  %10050 = vst [vmem:[#allocation50_spill] sm:$0xff] %v8614_v56  ;;  %v8621_v11 = vld [vmem:[#allocation2 + $0x151] sm:$0xff]  ;;  %v939_v53 = vpack.c.bf16 %v8509_v5, %v8402_v10  ;;  %v8692_v56 = vld [vmem:[#allocation2 + $0xc8] sm:$0xff] }
 0x134   : > { %v8619_v15 = vld [vmem:[#allocation2 + $0x139] sm:$0xff]  ;;  %10053 = vst [vmem:[#allocation52_spill] sm:$0xff] %v8621_v11  ;;  %v10054_v47 = vmax.f32 %v8334_v16, 0.0  ;;  %10057 = vst [vmem:[#allocation54_spill] sm:$0xff] %v8646_v33  ;;  %v8694_v25 = vld [vmem:[#allocation2 + $0xd0] sm:$0xff]  ;;  %v10067_v33 = vmax.f32 %v8461_v41, 0.0 }
 0x135   : > { %10052 = vst [vmem:[#allocation51_spill] sm:$0xff] %v8619_v15  ;;  %874 = vst [vmem:[#allocation2 + $0x170] sm:$0xff] %v9962_v52  ;;  %v845_v17 = vmax.f32 %v813_v0, 0.0  ;;  %v8636_v23 = vadd.f32 %v8112_v49, %v772_v21  ;;  %v8651_v35 = vld [vmem:[#allocation2 + $0x13f] sm:$0xff]  ;;  %v8653_v0 = vld [vmem:[#allocation2 + $0x157] sm:$0xff]  ;;  %v10063_v15 = vmax.f32 %v8479_v59, 0.0 }
 0x136   : > { %v1350_v44 = vpack.c.bf16 %v10055_v38, %v10054_v47  ;;  %v8657_v47 = vld [vmem:[#allocation2 + $0x70] sm:$0xff]  ;;  %10064 = vst [vmem:[#allocation60_spill] sm:$0xff] %v8692_v56  ;;  %10065 = vst [vmem:[#allocation61_spill] sm:$0xff] %v8694_v25  ;;  %v8718_v41 = vld [vmem:[#allocation2 + $0xf8] sm:$0xff]  ;;  %v10071_v25 = vmax.f32 %v8521_v12, 0.0 }
 0x137   : > { %v8640_v27 = vld [vmem:[#allocation2 + $0x15f] sm:$0xff]  ;;  %v8642_v3 = vld [vmem:[#allocation2 + $0x167] sm:$0xff]  ;;  %7028 = vmatmul.mubr.bf16.gmra.mxu1 %v939_v53  ;;  %877 = vst [vmem:[#allocation2 + $0x190] sm:$0xff] %v845_v17  ;;  %v9965_v49 = vmax.f32 %v8636_v23, 0.0  ;;  %10058 = vst [vmem:[#allocation55_spill] sm:$0xff] %v8657_v47  ;;  %v941_v17 = vpack.c.bf16 %v8491_v2, %v8505_v62  ;;  %v1352_v52 = vpack.c.bf16 %v10031_v14, %v10063_v15  ;;  %v10066_v47 = vmax.f32 %v8415_v34, 0.0 }
 0x138   : > { %v8644_v9 = vld [vmem:[#allocation2 + $0x159] sm:$0xff]  ;;  %7096 = vmatmul.mubr.bf16.gmra.mxu0 %v1350_v44  ;;  %7031 = vmatprep.mubr.bf16.mxu1 %v940_v30  ;;  %v8661_v16 = vld [vmem:[#allocation2 + $0x147] sm:$0xff]  ;;  %v8663_v53 = vld [vmem:[#allocation2 + $0x14f] sm:$0xff]  ;;  %v1354_v56 = vpack.c.bf16 %v10071_v25, %v10031_v14 }
 0x139   : > { %10056 = vst [vmem:[#allocation53_spill] sm:$0xff] %v8644_v9  ;;  %7099 = vmatprep.mubr.bf16.mxu0 %v1351_v57  ;;  %v8665_v44 = vld [vmem:[#allocation2 + $0x141] sm:$0xff]  ;;  %875 = vst [vmem:[#allocation2 + $0x178] sm:$0xff] %v9965_v49  ;;  %v8671_v21 = vld [vmem:[#allocation2 + $0x149] sm:$0xff]  ;;  %v942_v49 = vpack.c.bf16 %v8587_v24, %v8493_v36  ;;  %v1353_v59 = vpack.c.bf16 %v10067_v33, %v10066_v47  ;;  %v944_v47 = vpack.c.bf16 %v8570_v60, %v8583_v22 }
 0x13a   : > { %10059 = vst [vmem:[#allocation56_spill] sm:$0xff] %v8671_v21  ;;  %v8675_v38 = vld [vmem:[#allocation2 + $0x161] sm:$0xff]  ;;  %v8677_v57 = vld [vmem:[#allocation2 + $0x98] sm:$0xff]  ;;  %v946_v12 = vpack.c.bf16 %v8663_v53, %v8661_v16 }
 0x13b   : > { %10060 = vst [vmem:[#allocation57_spill] sm:$0xff] %v8677_v57  ;;  %v8679_v30 = vld [vmem:[#allocation2 + $0xa0] sm:$0xff]  ;;  %v10074_v57 = vmax.f32 %v8598_v1, 0.0  ;;  %v10077_v1 = vmax.f32 %v8636_v23, 0.0 }
 0x13c   : > { %10061 = vst [vmem:[#allocation58_spill] sm:$0xff] %v8679_v30  ;;  %v8685_v11 = vld [vmem:[#allocation2 + $0x169] sm:$0xff]  ;;  %v8720_v33 = vld [vmem:[#allocation2 + $0x100] sm:$0xff]  ;;  %v943_v30 = vpack.c.bf16 %v8591_v51, %v8589_v54 }
 0x13d   : > { %10062 = vst [vmem:[#allocation59_spill] sm:$0xff] %v8685_v11  ;;  %v8706_v15 = vld [vmem:[#allocation2 + $0x16f] sm:$0xff] }
 0x13e   : > { %v8746_v11 = vld [vmem:[#allocation2 + $0x188] sm:$0xff]  ;;  %v8748_v9 = vld [vmem:[#allocation2 + $0x190] sm:$0xff] }
 0x13f   : > { %7032 = vmatmul.mubr.bf16.gmra.mxu1 %v941_v17  ;;  %v8728_v17 = vld [vmem:[#allocation2 + $0x158] sm:$0xff]  ;;  %10073 = vst [vmem:[#allocation65_spill] sm:$0xff] %v8748_v9 }
 0x140   : > { %7100 = vmatmul.mubr.bf16.gmra.mxu0 %v1352_v52  ;;  %7035 = vmatprep.mubr.bf16.mxu1 %v942_v49  ;;  %v8708_v21 = vld [vmem:[#allocation2 + $0x177] sm:$0xff]  ;;  %v8722_v52 = vld [vmem:[#allocation2 + $0x128] sm:$0xff] }
 0x141   : > { %7103 = vmatprep.mubr.bf16.mxu0 %v1353_v59  ;;  %v8710_v31 = vld [vmem:[#allocation2 + $0x171] sm:$0xff]  ;;  %v8716_v34 = vld [vmem:[#allocation2 + $0x179] sm:$0xff] }
 0x142   : > { %10068 = vst [vmem:[#allocation62_spill] sm:$0xff] %v8710_v31  ;;  %10069 = vst [vmem:[#allocation63_spill] sm:$0xff] %v8716_v34  ;;  %v8724_v49 = vld [vmem:[#allocation2 + $0x130] sm:$0xff]  ;;  %v8730_v59 = vld [vmem:[#allocation2 + $0x160] sm:$0xff]  ;;  %v10072_v34 = vmax.f32 %v8560_v43, 0.0  ;;  %v1357_v43 = vpack.c.bf16 %v10074_v57, %v10031_v14  ;;  %v1358_v57 = vpack.c.bf16 %v10031_v14, %v10077_v1 }
 0x143   : > { %10070 = vst [vmem:[#allocation64_spill] sm:$0xff] %v8724_v49  ;;  %v10075_v49 = vmax.f32 %v8502_v6, 0.0  ;;  %v948_v6 = vpack.c.bf16 %v8706_v15, %v8642_v3 }
 0x144   : > { %v1355_v31 = vpack.c.bf16 %v10031_v14, %v10072_v34  ;;  %v945_v34 = vpack.c.bf16 %v8651_v35, %v8572_v45  ;;  %v7732_v14 = vld [vmem:[%s9871_s4 + $0x170] sm:$0xff]  }
 0x147   : > { %7036 = vmatmul.mubr.bf16.gmra.mxu1 %v943_v30  ;;  %v10076_v30 = vmax.f32 %v8538_v55, 0.0  ;;  %v10078_v55 = vpack.c.bf16 %v8173_v37, %v8144_v20  ;;  %v10080_v20 = vpack.c.bf16 %v8155_v29, %v8153_v28  ;;  %v7734_v37 = vld [vmem:[%s9871_s4 + $0x168] sm:$0xff]   ;;  %v10081_v28 = vpack.c.bf16 %v8256_v18, %v8212_v61  ;;  %v7735_v29 = vld [vmem:[%s9871_s4 + $0x160] sm:$0xff]   ;;  %v7736_v18 = vld [vmem:[%s9871_s4 + $0x158] sm:$0xff]  }
 0x148   : > { %7104 = vmatmul.mubr.bf16.gmra.mxu0 %v1354_v56  ;;  %7039 = vmatprep.mubr.bf16.mxu1 %v944_v47  ;;  %v1794_v47 = vld [vmem:[#allocation2 + $0x11] sm:$0xff]  ;;  %v1844_v61 = vpack.c.bf16 %v8234_v8, %v8192_v50 }
 0x149   : > { %7107 = vmatprep.mubr.bf16.mxu0 %v1355_v31  ;;  %v1356_v56 = vpack.c.bf16 %v10076_v30, %v10075_v49  ;;  %v947_v31 = vpack.c.bf16 %v8640_v27, %v8653_v0  ;;  %v1793_v49 = vld [vmem:[#allocation2 + $0x9] sm:$0xff]  ;;  %v1795_v30 = vld [vmem:[#allocation2 + $0x19] sm:$0xff] }
 0x14f   : > { %7040 = vmatmul.mubr.bf16.gmra.mxu1 %v945_v34  ;;  %v10079_v34 = vpack.c.bf16 %v8177_v40, %v8175_v39  ;;  %v7726_v39 = vld [vmem:[%s9871_s4 + $0x130] sm:$0xff]   ;;  %v1843_v40 = vpack.c.bf16 %v8208_v58, %v8190_v48 }
 0x150   : > { %7108 = vmatmul.mubr.bf16.gmra.mxu0 %v1356_v56  ;;  %7043 = vmatprep.mubr.bf16.mxu1 %v946_v12  ;;  %v8775_v12 = vld [vmem:[#allocation2 + $0x17f] sm:$0xff]  ;;  %v1842_v56 = vpack.c.bf16 %v8188_v46, %v1795_v30  ;;  %v7730_v30 = vld [vmem:[%s9871_s4 + $0x110] sm:$0xff]  }
 0x151   : > { %7111 = vmatprep.mubr.bf16.mxu0 %v1357_v43  ;;  %v1841_v43 = vpack.c.bf16 %v1794_v47, %v1793_v49  ;;  %v949_v23 = vpack.c.bf16 %v8775_v12, %v8708_v21  ;;  %v7729_v47 = vld [vmem:[%s9871_s4 + $0x118] sm:$0xff]  }
 0x157   : > { %7044 = vmatmul.mubr.bf16.gmra.mxu1 %v947_v31  ;;  %v7727_v31 = vld [vmem:[%s9871_s4 + $0x128] sm:$0xff]  }
 0x158   : > { %7112 = vmatmul.mubr.bf16.gmra.mxu0 %v1358_v57  ;;  %7047 = vmatprep.mubr.bf16.mxu1 %v948_v6  ;;  %v7738_v57 = vld [vmem:[%s9871_s4 + $0x150] sm:$0xff]   ;;  %v10085_v6 = vld [vmem:[#allocation16_spill] sm:$0xff] }
 0x159   : > { %7195 = vmatprep.mubr.bf16.mxu0 %v10078_v55  ;;  %v10086_v55 = vld [vmem:[#allocation19_spill] sm:$0xff] }
 0x15a   : > { %v10087_v49 = vpack.c.bf16 %v10085_v6, %v10086_v55  ;;  %v7737_v6 = vld [vmem:[%s9871_s4 + $0x100] sm:$0xff]   ;;  %v10102_v55 = vld [vmem:[#allocation30_spill] sm:$0xff] }
 0x15f   : > { %7048 = vmatmul.mubr.bf16.gmra.mxu1 %v949_v23 }
 0x160   : > { %7196 = vmatmul.mubr.bf16.vlgmr.msra.gmra.mxu0 %v10079_v34  ;;  %7131 = vmatprep.mubr.bf16.mxu1 %v1841_v43  ;;  %v10089_v43 = vld [vmem:[#allocation9_spill] sm:$0xff]  ;;  %v10090_v34 = vld [vmem:[#allocation11_spill] sm:$0xff] }
 0x161   : > { %7199 = vmatprep.mubr.bf16.mxu0 %v10080_v20  ;;  %7308 = vmatpush3.bf16.msra.mxu0 %v8446_v42  ;;  %v10082_v42 = vpack.c.bf16 %v8276_v32, %v8258_v19  ;;  %v1845_v19 = vpack.c.bf16 %v8270_v26, %v8215_v63  ;;  %v7728_v32 = vld [vmem:[%s9871_s4 + $0x120] sm:$0xff]   ;;  %v10091_v20 = vld [vmem:[#allocation13_spill] sm:$0xff] }
 0x162   : > { %7309 = vmatprep.subr.bf16.mxu0 %v7732_v14 }
 0x165   : > { %7310 = vmatpush3.bf16.msra.mxu0 %v7732_v14  ;;  %v7739_v14 = vld [vmem:[%s9871_s4 + $0x148] sm:$0xff]  }
 0x166   : > { %7311 = vmatprep.subr.bf16.mxu0 %v7734_v37 }
 0x167   : > { %7132 = vmatmul.mubr.bf16.vlgmr.msra.gmra.mxu1 %v1842_v56  ;;  %v10092_v56 = vld [vmem:[#allocation18_spill] sm:$0xff] }
 0x168   : > { %7200 = vmatmul.mubr.bf16.gmra.mxu0 %v10081_v28  ;;  %7244 = vmatpush3.bf16.msra.mxu1 %v8451_v7  ;;  %v10083_v7 = vld [vmem:[#allocation8_spill] sm:$0xff] }
 0x169   : > { %7135 = vmatprep.mubr.bf16.mxu1 %v1843_v40  ;;  %7203 = vmatprep.mubr.bf16.mxu0 %v10082_v42  ;;  %v10084_v1 = vpack.c.bf16 %v8242_v13, %v10083_v7  ;;  %v10088_v13 = vld [vmem:[#allocation10_spill] sm:$0xff]  ;;  %v7740_v28 = vld [vmem:[%s9871_s4 + $0x140] sm:$0xff]   ;;  %v10100_v7 = vld [vmem:[#allocation21_spill] sm:$0xff] }
 0x16a   : > { %7245 = vmatprep.subr.bf16.mxu1 %v7726_v39  ;;  %7312 = vmatpush3.bf16.msra.mxu0 %v7734_v37  ;;  %v1846_v23 = vpack.c.bf16 %v10089_v43, %v10088_v13  ;;  %v1847_v37 = vpack.c.bf16 %v10091_v20, %v10090_v34  ;;  %v10096_v42 = vld [vmem:[#allocation14_spill] sm:$0xff] }
 0x16b   : > { %7313 = vmatprep.subr.bf16.mxu0 %v7735_v29 }
 0x16c   : > { %7246 = vmatpush3.bf16.msra.mxu1 %v7726_v39  ;;  %v10093_v39 = vld [vmem:[#allocation17_spill] sm:$0xff] }
 0x16d   : > { %7247 = vmatprep.subr.bf16.mxu1 %v7727_v31  ;;  %v10094_v40 = vpack.c.bf16 %v10092_v56, %v10093_v39  ;;  %v7747_v56 = vld [vmem:[%s9871_s4 + $0x1f8] sm:$0xff]  }
 0x16e   : > { %7314 = vmatpush3.bf16.msra.mxu0 %v7735_v29  ;;  %v10095_v29 = vld [vmem:[#allocation15_spill] sm:$0xff] }
 0x16f   : > { %7136 = vmatmul.mubr.bf16.gmra.mxu1 %v1844_v61  ;;  %7315 = vmatprep.subr.bf16.mxu0 %v7736_v18  ;;  %v7733_v61 = vld [vmem:[%s9871_s4 + $0x108] sm:$0xff]   ;;  %v10108_v39 = vld [vmem:[#allocation23_spill] sm:$0xff] }
 0x170   : > { %7204 = vmatmul.mubr.bf16.gmra.mxu0 %v10084_v1  ;;  %7139 = vmatprep.mubr.bf16.mxu1 %v1845_v19  ;;  %v10099_v19 = vld [vmem:[#allocation20_spill] sm:$0xff]  ;;  %v10101_v1 = vld [vmem:[#allocation22_spill] sm:$0xff] }
 0x171   : > { %7207 = vmatprep.mubr.bf16.mxu0 %v10087_v49  ;;  %7248 = vmatpush3.bf16.msra.mxu1 %v7727_v31  ;;  %v10097_v31 = vpack.c.bf16 %v10095_v29, %v10096_v42  ;;  %v10103_v49 = vld [vmem:[#allocation27_spill] sm:$0xff]  ;;  %v10110_v29 = vld [vmem:[#allocation24_spill] sm:$0xff]  ;;  %v10111_v42 = vld [vmem:[#allocation33_spill] sm:$0xff] }
 0x172   : > { %7249 = vmatprep.subr.bf16.mxu1 %v7728_v32  ;;  %7316 = vmatpush3.bf16.msra.mxu0 %v7736_v18  ;;  %v10098_v18 = vld [vmem:[#allocation12_spill] sm:$0xff] }
 0x173   : > { %7317 = vmatprep.subr.bf16.mxu0 %v7738_v57 }
 0x175   : > { %7250 = vmatpush3.bf16.msra.mxu1 %v7728_v32  ;;  %v1848_v32 = vpack.c.bf16 %v10099_v19, %v10098_v18 }
 0x176   : > { %7251 = vmatprep.subr.bf16.mxu1 %v7729_v47  ;;  %7318 = vmatpush3.bf16.msra.mxu0 %v7738_v57  ;;  %v1849_v57 = vpack.c.bf16 %v10101_v1, %v10100_v7 }
 0x177   : > { %7140 = vmatmul.mubr.bf16.gmra.mxu1 %v1846_v23  ;;  %7319 = vmatprep.subr.bf16.mxu0 %v7739_v14  ;;  %v10105_v23 = vld [vmem:[#allocation28_spill] sm:$0xff] }
 0x178   : > { %7208 = vmatmul.mubr.bf16.gmra.mxu0 %v10094_v40  ;;  %7143 = vmatprep.mubr.bf16.mxu1 %v1847_v37  ;;  %v10109_v40 = vld [vmem:[#allocation25_spill] sm:$0xff] }
 0x179   : > { %7211 = vmatprep.mubr.bf16.mxu0 %v10097_v31  ;;  %7252 = vmatpush3.bf16.msra.mxu1 %v7729_v47  ;;  %v10104_v47 = vpack.c.bf16 %v10102_v55, %v10103_v49  ;;  %v1851_v31 = vpack.c.bf16 %v10111_v42, %v10110_v29  ;;  %v10115_v55 = vld [vmem:[#allocation34_spill] sm:$0xff]  ;;  %v10116_v49 = vld [vmem:[#allocation29_spill] sm:$0xff] }
 0x17a   : > { %7253 = vmatprep.subr.bf16.mxu1 %v7730_v30  ;;  %7320 = vmatpush3.bf16.msra.mxu0 %v7739_v14  ;;  %v10106_v14 = vld [vmem:[#allocation31_spill] sm:$0xff] }
 0x17b   : > { %7321 = vmatprep.subr.bf16.mxu0 %v7740_v28  ;;  %v10107_v37 = vpack.c.bf16 %v10105_v23, %v10106_v14  ;;  %v10118_v23 = vld [vmem:[#allocation35_spill] sm:$0xff] }
 0x17d   : > { %7254 = vmatpush3.bf16.msra.mxu1 %v7730_v30  ;;  %v8871_v30 = vld [vmem:[%s9871_s4 + $0x1b8] sm:$0xff]  }
 0x17e   : > { %7255 = vmatprep.subr.bf16.mxu1 %v7733_v61  ;;  %7322 = vmatpush3.bf16.msra.mxu0 %v7740_v28  ;;  %v1850_v28 = vpack.c.bf16 %v10109_v40, %v10108_v39 }
 0x17f   : > { %7144 = vmatmul.mubr.bf16.gmra.mxu1 %v1848_v32  ;;  %7435 = vmatprep.subr.bf16.mxu0 %v7747_v56 }
 0x180   : > { %7212 = vmatmul.mubr.bf16.gmra.mxu0 %v10104_v47  ;;  %7147 = vmatprep.mubr.bf16.mxu1 %v1849_v57  ;;  %v10114_v57 = vpack.c.bf16 %v8511_v4, %v8509_v5  ;;  %v1852_v47 = vpack.c.bf16 %v10116_v49, %v10115_v55  ;;  %v10124_v4 = vld [vmem:[#allocation40_spill] sm:$0xff] }
 0x181   : > { %7215 = vmatprep.mubr.bf16.mxu0 %v10107_v37  ;;  %7256 = vmatpush3.bf16.msra.mxu1 %v7733_v61  ;;  %v10112_v61 = vld [vmem:[#allocation26_spill] sm:$0xff] }
 0x182   : > { %7257 = vmatprep.subr.bf16.mxu1 %v7737_v6  ;;  %v10113_v32 = vpack.c.bf16 %v8402_v10, %v10112_v61  ;;  %v10119_v37 = vld [vmem:[#allocation38_spill] sm:$0xff]  ;;  %v10121_v10 = vpack.c.bf16 %v8493_v36, %v8491_v2  ;;  %v10125_v61 = vld [vmem:[#allocation37_spill] sm:$0xff]  ;;  %v10130_v36 = vld [vmem:[#allocation44_spill] sm:$0xff] }
 0x183   : > { %v10120_v25 = vpack.c.bf16 %v8505_v62, %v10119_v37  ;;  %v10127_v62 = vpack.c.bf16 %v8583_v22, %v8591_v51  ;;  %v10136_v22 = vld [vmem:[#allocation49_spill] sm:$0xff] }
 0x185   : > { %7258 = vmatpush3.bf16.msra.mxu1 %v7737_v6  ;;  %v10117_v6 = vld [vmem:[#allocation32_spill] sm:$0xff] }
 0x186   : > { %7371 = vmatprep.subr.bf16.mxu1 %v8871_v30  ;;  %v1853_v14 = vpack.c.bf16 %v10118_v23, %v10117_v6 }
 0x187   : > { %7148 = vmatmul.mubr.bf16.gmra.mxu1 %v1850_v28  ;;  %v10122_v28 = vld [vmem:[#allocation36_spill] sm:$0xff] }
 0x188   : > { %7216 = vmatmul.mubr.bf16.gmra.mxu0 %v10113_v32  ;;  %7151 = vmatprep.mubr.bf16.mxu1 %v1851_v31  ;;  %v10123_v31 = vld [vmem:[#allocation39_spill] sm:$0xff]  ;;  %v1855_v32 = vpack.c.bf16 %v10125_v61, %v10124_v4 }
 0x189   : > { %7219 = vmatprep.mubr.bf16.mxu0 %v10114_v57  ;;  %v1854_v5 = vpack.c.bf16 %v10123_v31, %v10122_v28  ;;  %v10126_v57 = vpack.c.bf16 %v8589_v54, %v8587_v24  ;;  %v10133_v24 = vpack.c.bf16 %v8661_v16, %v8651_v35  ;;  %v10134_v54 = vld [vmem:[#allocation48_spill] sm:$0xff] }
 0x18a   : > { %v10141_v35 = vld [vmem:[#allocation56_spill] sm:$0xff] }
 0x18f   : > { %7152 = vmatmul.mubr.bf16.gmra.mxu1 %v1852_v47  ;;  %v10129_v47 = vld [vmem:[#allocation42_spill] sm:$0xff] }
 0x190   : > { %7220 = vmatmul.mubr.bf16.gmra.mxu0 %v10120_v25  ;;  %7155 = vmatprep.mubr.bf16.mxu1 %v1853_v14  ;;  %v10128_v25 = vld [vmem:[#allocation41_spill] sm:$0xff]  ;;  %v10131_v14 = vld [vmem:[#allocation47_spill] sm:$0xff] }
 0x191   : > { %7223 = vmatprep.mubr.bf16.mxu0 %v10121_v10  ;;  %v1856_v2 = vpack.c.bf16 %v10129_v47, %v10128_v25  ;;  %v1857_v37 = vpack.c.bf16 %v10131_v14, %v10130_v36  ;;  %v10132_v10 = vpack.c.bf16 %v8572_v45, %v8570_v60  ;;  %v10139_v60 = vpack.c.bf16 %v8642_v3, %v8640_v27  ;;  %v2344_v45 = vld [vmem:[#allocation2 + $0x187] sm:$0xff] }
 0x192   : > { %v10144_v27 = vld [vmem:[#allocation53_spill] sm:$0xff] }
 0x193   : > { %v1862_v3 = vpack.c.bf16 %v8675_v38, %v10144_v27 }
 0x197   : > { %7156 = vmatmul.mubr.bf16.gmra.mxu1 %v1854_v5  ;;  %v10135_v5 = vld [vmem:[#allocation46_spill] sm:$0xff] }
 0x198   : > { %7224 = vmatmul.mubr.bf16.gmra.mxu0 %v10126_v57  ;;  %7159 = vmatprep.mubr.bf16.mxu1 %v1855_v32  ;;  %v1858_v51 = vpack.c.bf16 %v10135_v5, %v10134_v54  ;;  %v10137_v32 = vld [vmem:[#allocation50_spill] sm:$0xff] }
 0x199   : > { %7227 = vmatprep.mubr.bf16.mxu0 %v10127_v62  ;;  %v1859_v57 = vpack.c.bf16 %v10137_v32, %v10136_v22  ;;  %v10138_v62 = vpack.c.bf16 %v8653_v0, %v8663_v53  ;;  %v2345_v0 = vld [vmem:[#allocation2 + $0x18f] sm:$0xff]  ;;  %v2346_v53 = vld [vmem:[#allocation2 + $0x197] sm:$0xff] }
 0x19f   : > { %7160 = vmatmul.mubr.bf16.gmra.mxu1 %v1856_v2  ;;  %v10140_v2 = vld [vmem:[#allocation51_spill] sm:$0xff] }
 0x1a0   : > { %7228 = vmatmul.mubr.bf16.gmra.mxu0 %v10132_v10  ;;  %7163 = vmatprep.mubr.bf16.mxu1 %v1857_v37  ;;  %v1860_v16 = vpack.c.bf16 %v8665_v44, %v10140_v2  ;;  %v10142_v37 = vld [vmem:[#allocation52_spill] sm:$0xff] }
 0x1a1   : > { %7231 = vmatprep.mubr.bf16.mxu0 %v10133_v24  ;;  %v1861_v10 = vpack.c.bf16 %v10142_v37, %v10141_v35  ;;  %v2369_v24 = vpack.c.bf16 %v2344_v45, %v8775_v12  ;;  %v10147_v12 = vpack.c.bf16 %v8190_v48, %v8188_v46  ;;  %v10148_v45 = vld [vmem:[#allocation63_spill] sm:$0xff]  ;;  %v10150_v46 = vpack.c.bf16 %v8215_v63, %v8234_v8 }
 0x1a2   : > { %v10152_v63 = vld [vmem:[#allocation43_spill] sm:$0xff] }
 0x1a7   : > { %7164 = vmatmul.mubr.bf16.gmra.mxu1 %v1858_v51  ;;  %v10143_v51 = vpack.c.bf16 %v8708_v21, %v8706_v15  ;;  %v8942_v21 = vld [vmem:[#allocation2 + $0x181] sm:$0xff] }
 0x1a8   : > { %7232 = vmatmul.mubr.bf16.gmra.mxu0 %v10138_v62  ;;  %7167 = vmatprep.mubr.bf16.mxu1 %v1859_v57  ;;  %v2370_v57 = vpack.c.bf16 %v2346_v53, %v2345_v0  ;;  %v10145_v62 = vld [vmem:[#allocation59_spill] sm:$0xff]  ;;  %v2806_v15 = vld [vmem:[#allocation2 + $0x28] sm:$0xff] }
 0x1a9   : > { %7235 = vmatprep.mubr.bf16.mxu0 %v10139_v60  ;;  %v10146_v60 = vld [vmem:[#allocation62_spill] sm:$0xff]  ;;  %v7750_v53 = vld [vmem:[%s9871_s4 + $0x1e8] sm:$0xff]  }
 0x1aa   : > { %v1863_v9 = vpack.c.bf16 %v10146_v60, %v10145_v62 }
 0x1af   : > { %7168 = vmatmul.mubr.bf16.gmra.mxu1 %v1860_v16  ;;  %v1864_v16 = vpack.c.bf16 %v8942_v21, %v10148_v45 }
 0x1b0   : > { %7236 = vmatmul.mubr.bf16.gmra.mxu0 %v10143_v51  ;;  %7171 = vmatprep.mubr.bf16.mxu1 %v1861_v10  ;;  %v2805_v10 = vld [vmem:[#allocation2 + $0x20] sm:$0xff]  ;;  %v7748_v51 = vld [vmem:[%s9871_s4 + $0x1f0] sm:$0xff]  }
 0x1b1   : > { %7239 = vmatprep.mubr.bf16.mxu0 %v2369_v24  ;;  %v2853_v24 = vpack.c.bf16 %v2806_v15, %v2805_v10  ;;  %v10153_v10 = vpack.c.bf16 %v10088_v13, %v8270_v26  ;;  %v8982_v13 = vld [vmem:[#allocation2 + $0x58] sm:$0xff] }
 0x1b7   : > { %7172 = vmatmul.mubr.bf16.gmra.mxu1 %v1862_v3 }
 0x1b8   : > { %7240 = vmatmul.mubr.bf16.gmra.mxu0 %v2370_v57  ;;  %7175 = vmatprep.mubr.bf16.mxu1 %v1863_v9  ;;  %v10149_v9 = vpack.c.bf16 %v8192_v50, %v8208_v58  ;;  %v8958_v57 = vld [vmem:[#allocation2] sm:$0xff]  ;;  %v7742_v58 = vld [vmem:[%s9871_s4 + $0x1b0] sm:$0xff]  }
 0x1b9   : > { %7323 = vmatprep.mubr.bf16.mxu0 %v10147_v12  ;;  %v10151_v12 = vld [vmem:[#allocation45_spill] sm:$0xff]  ;;  %v2855_v8 = vpack.c.bf16 %v8958_v57, %v10152_v63 }
 0x1ba   : > { %v2854_v15 = vpack.c.bf16 %v10151_v12, %v8958_v57 }
 0x1bf   : > { %7176 = vmatmul.mubr.bf16.gmra.mxu1 %v1864_v16  ;;  %v7069_v0 = vpop.f32.mrf.mxu0 }
 0x1c0   : > { %7324 = vmatmul.mubr.bf16.vlgmr.msra.gmra.mxu0 %v10149_v9  ;;  %7259 = vmatprep.mubr.bf16.mxu1 %v2853_v24  ;;  %v7751_v24 = vld [vmem:[%s9871_s4 + $0x1e0] sm:$0xff]  }
 0x1c1   : > { %7327 = vmatprep.mubr.bf16.mxu0 %v10150_v46  ;;  %v1458_v48 = vpop.f32.mrf.mxu0  ;;  %7436 = vmatpush3.bf16.msra.mxu0 %v7747_v56  ;;  %v7743_v46 = vld [vmem:[%s9871_s4 + $0x1a8] sm:$0xff]  }
 0x1c2   : > { %7437 = vmatprep.subr.bf16.mxu0 %v7748_v51 }
 0x1c3   : > { %v7070_v3 = vpop.f32.mrf.mxu0 }
 0x1c5   : > { %v1461_v50 = vpop.f32.mrf.mxu0  ;;  %7438 = vmatpush3.bf16.msra.mxu0 %v7748_v51  ;;  %v10154_v51 = vpack.c.bf16 %v10090_v34, %v10089_v43 }
 0x1c6   : > { %7439 = vmatprep.subr.bf16.mxu0 %v7750_v53 }
 0x1c7   : > { %v7005_v56 = vpop.f32.mrf.mxu1  ;;  %7260 = vmatmul.mubr.bf16.vlgmr.msra.gmra.mxu1 %v2854_v15  ;;  %v7073_v16 = vpop.f32.mrf.mxu0 }
 0x1c8   : > { %7328 = vmatmul.mubr.bf16.gmra.mxu0 %v10153_v10  ;;  %7372 = vmatpush3.bf16.msra.mxu1 %v8871_v30 }
 0x1c9   : > { %7263 = vmatprep.mubr.bf16.mxu1 %v2855_v8  ;;  %v1048_v0 = vpop.f32.mrf.mxu1  ;;  %7331 = vmatprep.mubr.bf16.mxu0 %v10154_v51  ;;  %v1474_v9 = vpop.f32.mrf.mxu0  ;;  %v8986_v8 = vld [vmem:[#allocation2 + $0x50] sm:$0xff] }
 0x1ca   : > { %7373 = vmatprep.subr.bf16.mxu1 %v7742_v58  ;;  %v8980_v26 = vadd.f32 %v1458_v48, %v1048_v0  ;;  %7440 = vmatpush3.bf16.msra.mxu0 %v7750_v53  ;;  %v2856_v34 = vpack.c.bf16 %v8982_v13, %v8986_v8  ;;  %v7752_v48 = vld [vmem:[%s9871_s4 + $0x1d8] sm:$0xff]   ;;  %v10157_v53 = vld [vmem:[#allocation54_spill] sm:$0xff] }
 0x1cb   : > { %v7006_v15 = vpop.f32.mrf.mxu1  ;;  %v7074_v56 = vpop.f32.mrf.mxu0  ;;  %7441 = vmatprep.subr.bf16.mxu0 %v7751_v24  ;;  %v2857_v51 = vpack.c.bf16 %v10157_v53, %v8958_v57 }
 0x1cc   : > { %v8984_v30 = vadd.f32 %v7070_v3, %v7006_v15  ;;  %7374 = vmatpush3.bf16.msra.mxu1 %v7742_v58  ;;  %v7744_v3 = vld [vmem:[%s9871_s4 + $0x1a0] sm:$0xff]  }
 0x1cd   : > { %v1051_v43 = vpop.f32.mrf.mxu1  ;;  %v1477_v10 = vpop.f32.mrf.mxu0  ;;  %7375 = vmatprep.subr.bf16.mxu1 %v7743_v46 }
 0x1ce   : > { %10155 = vst [vmem:[#allocation8_spill] sm:$0xff] %v8984_v30  ;;  %v8993_v0 = vadd.f32 %v1461_v50, %v1051_v43  ;;  %7442 = vmatpush3.bf16.msra.mxu0 %v7751_v24  ;;  %v10158_v10 = vpack.c.bf16 %v10098_v18, %v10091_v20  ;;  %v7754_v50 = vld [vmem:[%s9871_s4 + $0x1d0] sm:$0xff]   ;;  %v7745_v20 = vld [vmem:[%s9871_s4 + $0x198] sm:$0xff]  }
 0x1cf   : > { %v7009_v58 = vpop.f32.mrf.mxu1  ;;  %7264 = vmatmul.mubr.bf16.gmra.mxu1 %v2856_v34  ;;  %7443 = vmatprep.subr.bf16.mxu0 %v7752_v48 }
 0x1d0   : > { %10156 = vst [vmem:[#allocation16_spill] sm:$0xff] %v8993_v0  ;;  %v7077_v15 = vpop.f32.mrf.mxu0  ;;  %7332 = vmatmul.mubr.bf16.gmra.mxu0 %v10158_v10  ;;  %v9006_v43 = vadd.f32 %v7073_v16, %v7009_v58  ;;  %7267 = vmatprep.mubr.bf16.mxu1 %v2857_v51  ;;  %v10159_v0 = vpack.c.bf16 %v10100_v7, %v10099_v19  ;;  %v9016_v16 = vld [vmem:[#allocation2 + $0x80] sm:$0xff]  ;;  %v9018_v51 = vld [vmem:[#allocation2 + $0x88] sm:$0xff]  ;;  %v7746_v10 = vld [vmem:[%s9871_s4 + $0x190] sm:$0xff]  }
 0x1d1   : > { %v1064_v30 = vpop.f32.mrf.mxu1  ;;  %7376 = vmatpush3.bf16.msra.mxu1 %v7743_v46  ;;  %v10161_v46 = vld [vmem:[#allocation55_spill] sm:$0xff] }
 0x1d2   : > { %7335 = vmatprep.mubr.bf16.mxu0 %v10159_v0  ;;  %v1490_v24 = vpop.f32.mrf.mxu0  ;;  %v9011_v34 = vadd.f32 %v1474_v9, %v1064_v30  ;;  %7377 = vmatprep.subr.bf16.mxu1 %v7744_v3  ;;  %v2858_v9 = vpack.c.bf16 %v8958_v57, %v10161_v46  ;;  %v7755_v0 = vld [vmem:[%s9871_s4 + $0x1c8] sm:$0xff]  }
 0x1d3   : > { %7444 = vmatpush3.bf16.msra.mxu0 %v7752_v48  ;;  %v7010_v18 = vpop.f32.mrf.mxu1  ;;  %v2859_v48 = vpack.c.bf16 %v9018_v51, %v9016_v16 }
 0x1d4   : > { %v7078_v58 = vpop.f32.mrf.mxu0  ;;  %7445 = vmatprep.subr.bf16.mxu0 %v7754_v50  ;;  %v9020_v19 = vadd.f32 %v7074_v56, %v7010_v18  ;;  %v10162_v18 = vpack.c.bf16 %v10108_v39, %v10101_v1  ;;  %v7749_v1 = vld [vmem:[%s9871_s4 + $0x188] sm:$0xff]  }
 0x1d5   : > { %v1067_v7 = vpop.f32.mrf.mxu1  ;;  %7378 = vmatpush3.bf16.msra.mxu1 %v7744_v3  ;;  %v7756_v3 = vld [vmem:[%s9871_s4 + $0x1c0] sm:$0xff]  }
 0x1d6   : > { %10160 = vst [vmem:[#allocation19_spill] sm:$0xff] %v9020_v19  ;;  %v1493_v30 = vpop.f32.mrf.mxu0  ;;  %7379 = vmatprep.subr.bf16.mxu1 %v7745_v20  ;;  %v10163_v7 = vpack.c.bf16 %v10110_v29, %v10109_v40  ;;  %v10166_v29 = vld [vmem:[#allocation58_spill] sm:$0xff] }
 0x1d7   : > { %7446 = vmatpush3.bf16.msra.mxu0 %v7754_v50  ;;  %v7013_v56 = vpop.f32.mrf.mxu1  ;;  %7268 = vmatmul.mubr.bf16.gmra.mxu1 %v2858_v9 }
 0x1d8   : > { %v7081_v24 = vpop.f32.mrf.mxu0  ;;  %7336 = vmatmul.mubr.bf16.gmra.mxu0 %v10162_v18  ;;  %v9038_v58 = vadd.f32 %v7077_v15, %v7013_v56  ;;  %7271 = vmatprep.mubr.bf16.mxu1 %v2859_v48  ;;  %v10164_v48 = vld [vmem:[#allocation57_spill] sm:$0xff] }
 0x1d9   : > { %7339 = vmatprep.mubr.bf16.mxu0 %v10163_v7  ;;  %v1080_v19 = vpop.f32.mrf.mxu1  ;;  %7380 = vmatpush3.bf16.msra.mxu1 %v7745_v20  ;;  %v2860_v56 = vpack.c.bf16 %v10164_v48, %v8958_v57  ;;  %v2861_v20 = vpack.c.bf16 %v8958_v57, %v10166_v29  ;;  %v10167_v7 = vpack.c.bf16 %v10115_v55, %v10111_v42  ;;  %v9070_v42 = vld [vmem:[%s9871_s4 + $0x238] sm:$0xff]  }
 0x1da   : > { %v1506_v50 = vpop.f32.mrf.mxu0  ;;  %7447 = vmatprep.subr.bf16.mxu0 %v7755_v0  ;;  %7381 = vmatprep.subr.bf16.mxu1 %v7746_v10  ;;  %v7753_v19 = vld [vmem:[%s9871_s4 + $0x180] sm:$0xff]  }
 0x1db   : > { %7448 = vmatpush3.bf16.msra.mxu0 %v7755_v0  ;;  %v7014_v39 = vpop.f32.mrf.mxu1 }
 0x1dc   : > { %v7082_v9 = vpop.f32.mrf.mxu0  ;;  %7449 = vmatprep.subr.bf16.mxu0 %v7756_v3 }
 0x1dd   : > { %v1083_v15 = vpop.f32.mrf.mxu1  ;;  %7382 = vmatpush3.bf16.msra.mxu1 %v7746_v10 }
 0x1de   : > { %v1509_v24 = vpop.f32.mrf.mxu0  ;;  %v9048_v40 = vadd.f32 %v1493_v30, %v1083_v15  ;;  %7383 = vmatprep.subr.bf16.mxu1 %v7749_v1  ;;  %v10168_v30 = vpack.c.bf16 %v10117_v6, %v10116_v49 }
 0x1df   : > { %7450 = vmatpush3.bf16.msra.mxu0 %v7756_v3  ;;  %v7017_v0 = vpop.f32.mrf.mxu1  ;;  %7272 = vmatmul.mubr.bf16.gmra.mxu1 %v2860_v56  ;;  %v9065_v3 = vld [vmem:[#allocation2 + $0xb8] sm:$0xff] }
 0x1e0   : > { %10165 = vst [vmem:[#allocation10_spill] sm:$0xff] %v9048_v40  ;;  %v7085_v18 = vpop.f32.mrf.mxu0  ;;  %7340 = vmatmul.mubr.bf16.gmra.mxu0 %v10167_v7  ;;  %7275 = vmatprep.mubr.bf16.mxu1 %v2861_v20  ;;  %v9063_v40 = vld [vmem:[#allocation2 + $0xb0] sm:$0xff]  ;;  %v10172_v0 = vld [vmem:[#allocation60_spill] sm:$0xff] }
 0x1e1   : > { %7343 = vmatprep.mubr.bf16.mxu0 %v10168_v30  ;;  %v1096_v10 = vpop.f32.mrf.mxu1  ;;  %7384 = vmatpush3.bf16.msra.mxu1 %v7749_v1  ;;  %v2862_v6 = vpack.c.bf16 %v9065_v3, %v9063_v40  ;;  %v2863_v7 = vpack.c.bf16 %v10172_v0, %v8958_v57 }
 0x1e2   : > { %v1522_v39 = vpop.f32.mrf.mxu0  ;;  %v9061_v15 = vadd.f32 %v1506_v50, %v1096_v10  ;;  %7385 = vmatprep.subr.bf16.mxu1 %v7753_v19 }
 0x1e3   : > { %v7018_v55 = vpop.f32.mrf.mxu1 }
 0x1e4   : > { %10169 = vst [vmem:[#allocation9_spill] sm:$0xff] %v9061_v15  ;;  %v7086_v56 = vpop.f32.mrf.mxu0  ;;  %v9072_v20 = vadd.f32 %v7082_v9, %v7018_v55  ;;  %v10173_v9 = vpack.c.bf16 %v10122_v28, %v10118_v23  ;;  %v10175_v28 = vld [vmem:[#allocation61_spill] sm:$0xff] }
 0x1e5   : > { %v1099_v49 = vpop.f32.mrf.mxu1  ;;  %7386 = vmatpush3.bf16.msra.mxu1 %v7753_v19  ;;  %v10174_v19 = vpack.c.bf16 %v10124_v4, %v10123_v31 }
 0x1e6   : > { %10170 = vst [vmem:[#allocation11_spill] sm:$0xff] %v9072_v20  ;;  %v1525_v50 = vpop.f32.mrf.mxu0  ;;  %v9076_v1 = vadd.f32 %v1509_v24, %v1099_v49  ;;  %7499 = vmatprep.subr.bf16.mxu1 %v9070_v42  ;;  %v9091_v20 = vld [vmem:[#allocation2 + $0xe0] sm:$0xff] }
 0x1e7   : > { %v7021_v30 = vpop.f32.mrf.mxu1  ;;  %7276 = vmatmul.mubr.bf16.gmra.mxu1 %v2862_v6  ;;  %v9093_v6 = vld [vmem:[#allocation2 + $0xe8] sm:$0xff] }
 0x1e8   : > { %10171 = vst [vmem:[#allocation13_spill] sm:$0xff] %v9076_v1  ;;  %v7089_v10 = vpop.f32.mrf.mxu0  ;;  %7344 = vmatmul.mubr.bf16.gmra.mxu0 %v10173_v9  ;;  %v9084_v55 = vadd.f32 %v7085_v18, %v7021_v30  ;;  %7279 = vmatprep.mubr.bf16.mxu1 %v2863_v7  ;;  %v2864_v18 = vpack.c.bf16 %v8958_v57, %v10175_v28 }
 0x1e9   : > { %7347 = vmatprep.mubr.bf16.mxu0 %v10174_v19  ;;  %v1112_v24 = vpop.f32.mrf.mxu1  ;;  %v2865_v31 = vpack.c.bf16 %v9093_v6, %v9091_v20  ;;  %v10176_v30 = vpack.c.bf16 %v10128_v25, %v10125_v61  ;;  %v2867_v61 = vpack.c.bf16 %v8958_v57, %v8720_v33 }
 0x1ea   : > { %v1538_v49 = vpop.f32.mrf.mxu0  ;;  %v9089_v50 = vadd.f32 %v1522_v39, %v1112_v24 }
 0x1eb   : > { %v7022_v1 = vpop.f32.mrf.mxu1 }
 0x1ec   : > { %v7090_v15 = vpop.f32.mrf.mxu0  ;;  %v9095_v0 = vadd.f32 %v7086_v56, %v7022_v1 }
 0x1ed   : > { %v1115_v23 = vpop.f32.mrf.mxu1  ;;  %v10177_v15 = vpack.c.bf16 %v10130_v36, %v10129_v47  ;;  %v10178_v47 = vpack.c.bf16 %v10134_v54, %v10131_v14  ;;  %v10179_v36 = vpack.c.bf16 %v10136_v22, %v10135_v5  ;;  %v2869_v5 = vpack.c.bf16 %v8722_v52, %v8958_v57 }
 0x1ee   : > { %v1541_v7 = vpop.f32.mrf.mxu0  ;;  %v2866_v23 = vpack.c.bf16 %v8718_v41, %v8958_v57 }
 0x1ef   : > { %v7025_v4 = vpop.f32.mrf.mxu1  ;;  %7280 = vmatmul.mubr.bf16.gmra.mxu1 %v2864_v18 }
 0x1f0   : > { %v7093_v39 = vpop.f32.mrf.mxu0  ;;  %7348 = vmatmul.mubr.bf16.gmra.mxu0 %v10176_v30  ;;  %v9104_v9 = vadd.f32 %v7089_v10, %v7025_v4  ;;  %7283 = vmatprep.mubr.bf16.mxu1 %v2865_v31 }
 0x1f1   : > { %7351 = vmatprep.mubr.bf16.mxu0 %v10177_v15  ;;  %v1128_v56 = vpop.f32.mrf.mxu1  ;;  %v9125_v15 = vld [vmem:[#allocation2 + $0x118] sm:$0xff] }
 0x1f2   : > { %v1554_v1 = vpop.f32.mrf.mxu0 }
 0x1f3   : > { %v7026_v19 = vpop.f32.mrf.mxu1 }
 0x1f4   : > { %v7094_v24 = vpop.f32.mrf.mxu0 }
 0x1f5   : > { %v1131_v49 = vpop.f32.mrf.mxu1 }
 0x1f6   : > { %v1557_v18 = vpop.f32.mrf.mxu0  ;;  %v9111_v39 = vadd.f32 %v1541_v7, %v1131_v49  ;;  %v9123_v7 = vld [vmem:[#allocation2 + $0x110] sm:$0xff] }
 0x1f7   : > { %v7029_v25 = vpop.f32.mrf.mxu1  ;;  %7284 = vmatmul.mubr.bf16.gmra.mxu1 %v2866_v23  ;;  %v2868_v14 = vpack.c.bf16 %v9125_v15, %v9123_v7 }
 0x1f8   : > { %v7097_v10 = vpop.f32.mrf.mxu0  ;;  %7352 = vmatmul.mubr.bf16.gmra.mxu0 %v10178_v47  ;;  %7287 = vmatprep.mubr.bf16.mxu1 %v2867_v61  ;;  %v10181_v25 = vpack.c.bf16 %v10140_v2, %v10137_v32  ;;  %v10184_v2 = vld [vmem:[#allocation64_spill] sm:$0xff] }
 0x1f9   : > { %7355 = vmatprep.mubr.bf16.mxu0 %v10179_v36  ;;  %v1144_v31 = vpop.f32.mrf.mxu1 }
 0x1fa   : > { %v1570_v4 = vpop.f32.mrf.mxu0  ;;  %v9121_v30 = vadd.f32 %v1554_v1, %v1144_v31 }
 0x1fb   : > { %v7030_v56 = vpop.f32.mrf.mxu1 }
 0x1fc   : > { %v7098_v19 = vpop.f32.mrf.mxu0  ;;  %v9127_v49 = vadd.f32 %v7094_v24, %v7030_v56  ;;  %v10182_v24 = vpack.c.bf16 %v10141_v35, %v8665_v44 }
 0x1fd   : > { %v1147_v23 = vpop.f32.mrf.mxu1 }
 0x1fe   : > { %v1573_v54 = vpop.f32.mrf.mxu0  ;;  %v9131_v61 = vadd.f32 %v1557_v18, %v1147_v23  ;;  %v9145_v23 = vld [vmem:[#allocation2 + $0x140] sm:$0xff] }
 0x1ff   : > { %v7033_v22 = vpop.f32.mrf.mxu1  ;;  %7288 = vmatmul.mubr.bf16.gmra.mxu1 %v2868_v14  ;;  %v9147_v14 = vld [vmem:[#allocation2 + $0x148] sm:$0xff] }
 0x200   : > { %10180 = vst [vmem:[#allocation18_spill] sm:$0xff] %v9131_v61  ;;  %v7101_v1 = vpop.f32.mrf.mxu0  ;;  %7356 = vmatmul.mubr.bf16.gmra.mxu0 %v10181_v25  ;;  %v9138_v47 = vadd.f32 %v7097_v10, %v7033_v22  ;;  %7291 = vmatprep.mubr.bf16.mxu1 %v2869_v5  ;;  %v2870_v10 = vpack.c.bf16 %v8958_v57, %v10184_v2 }
 0x201   : > { %7359 = vmatprep.mubr.bf16.mxu0 %v10182_v24  ;;  %v1160_v36 = vpop.f32.mrf.mxu1  ;;  %v2871_v44 = vpack.c.bf16 %v9147_v14, %v9145_v23  ;;  %v10185_v22 = vpack.c.bf16 %v10144_v27, %v10142_v37  ;;  %v2873_v37 = vpack.c.bf16 %v8958_v57, %v8730_v59 }
 0x202   : > { %v1586_v18 = vpop.f32.mrf.mxu0  ;;  %v9143_v31 = vadd.f32 %v1570_v4, %v1160_v36 }
 0x203   : > { %v7034_v56 = vpop.f32.mrf.mxu1 }
 0x204   : > { %v7102_v54 = vpop.f32.mrf.mxu0  ;;  %v9149_v61 = vadd.f32 %v7098_v19, %v7034_v56  ;;  %v10186_v19 = vpack.c.bf16 %v10145_v62, %v8675_v38  ;;  %v10187_v62 = vpack.c.bf16 %v10148_v45, %v10146_v60 }
 0x205   : > { %v1163_v32 = vpop.f32.mrf.mxu1  ;;  %v3356_v54 = vld [vmem:[#allocation2 + $0x189] sm:$0xff] }
 0x206   : > { %10183 = vst [vmem:[#allocation17_spill] sm:$0xff] %v9149_v61  ;;  %v1589_v5 = vpop.f32.mrf.mxu0  ;;  %v3381_v27 = vpack.c.bf16 %v3356_v54, %v8942_v21 }
 0x207   : > { %v7037_v35 = vpop.f32.mrf.mxu1  ;;  %7292 = vmatmul.mubr.bf16.gmra.mxu1 %v2870_v10  ;;  %v2872_v10 = vpack.c.bf16 %v8728_v17, %v8958_v57 }
 0x208   : > { %v7105_v4 = vpop.f32.mrf.mxu0  ;;  %7360 = vmatmul.mubr.bf16.gmra.mxu0 %v10185_v22  ;;  %v9158_v25 = vadd.f32 %v7101_v1, %v7037_v35  ;;  %7295 = vmatprep.mubr.bf16.mxu1 %v2871_v44  ;;  %v3358_v22 = vld [vmem:[#allocation2 + $0x199] sm:$0xff] }
 0x209   : > { %7363 = vmatprep.mubr.bf16.mxu0 %v10186_v19  ;;  %v1176_v24 = vpop.f32.mrf.mxu1 }
 0x20a   : > { %v1602_v36 = vpop.f32.mrf.mxu0  ;;  %v9177_v24 = vld [vmem:[#allocation2 + $0x178] sm:$0xff] }
 0x20b   : > { %v7038_v18 = vpop.f32.mrf.mxu1 }
 0x20c   : > { %v7106_v56 = vpop.f32.mrf.mxu0  ;;  %v3357_v18 = vld [vmem:[#allocation2 + $0x191] sm:$0xff] }
 0x20d   : > { %v1179_v32 = vpop.f32.mrf.mxu1 }
 0x20e   : > { %v1605_v4 = vpop.f32.mrf.mxu0  ;;  %v9165_v61 = vadd.f32 %v1589_v5, %v1179_v32  ;;  %v9175_v5 = vld [vmem:[#allocation2 + $0x170] sm:$0xff] }
 0x20f   : > { %v7041_v1 = vpop.f32.mrf.mxu1  ;;  %7296 = vmatmul.mubr.bf16.gmra.mxu1 %v2872_v10  ;;  %v2874_v60 = vpack.c.bf16 %v9177_v24, %v9175_v5 }
 0x210   : > { %v7109_v38 = vpop.f32.mrf.mxu0  ;;  %7364 = vmatmul.mubr.bf16.gmra.mxu0 %v10187_v62  ;;  %7299 = vmatprep.mubr.bf16.mxu1 %v2873_v37  ;;  %v3382_v37 = vpack.c.bf16 %v3358_v22, %v3357_v18  ;;  %v3818_v22 = vld [vmem:[#allocation2 + $0x3f] sm:$0xff] }
 0x211   : > { %7367 = vmatprep.mubr.bf16.mxu0 %v3381_v27  ;;  %v1192_v44 = vpop.f32.mrf.mxu1 }
 0x212   : > { %v1618_v35 = vpop.f32.mrf.mxu0  ;;  %v9173_v19 = vadd.f32 %v1602_v36, %v1192_v44  ;;  %v2875_v36 = vpack.c.bf16 %v8746_v11, %v8958_v57 }
 0x213   : > { %v7042_v21 = vpop.f32.mrf.mxu1 }
 0x214   : > { %v7110_v54 = vpop.f32.mrf.mxu0  ;;  %v9179_v32 = vadd.f32 %v7106_v56, %v7042_v21  ;;  %v10191_v56 = vpack.c.bf16 %v10152_v63, %v10151_v12  ;;  %v4373_v63 = vpack.c.bf16 %v8958_v57, %v8982_v13  ;;  %v7758_v13 = vld [vmem:[%s9871_s4 + $0x230] sm:$0xff]  }
 0x215   : > { %v1195_v10 = vpop.f32.mrf.mxu1 }
 0x216   : > { %10188 = vst [vmem:[#allocation15_spill] sm:$0xff] %v9179_v32  ;;  %v1621_v45 = vpop.f32.mrf.mxu0  ;;  %v9183_v27 = vadd.f32 %v1605_v4, %v1195_v10 }
 0x217   : > { %v7045_v1 = vpop.f32.mrf.mxu1  ;;  %7300 = vmatmul.mubr.bf16.gmra.mxu1 %v2874_v60  ;;  %v10194_v60 = vld [vmem:[#allocation65_spill] sm:$0xff] }
 0x218   : > { %10189 = vst [vmem:[#allocation14_spill] sm:$0xff] %v9183_v27  ;;  %v7113_v62 = vpop.f32.mrf.mxu0  ;;  %7368 = vmatmul.mubr.bf16.gmra.mxu0 %v3382_v37  ;;  %v9187_v44 = vadd.f32 %v7109_v38, %v7045_v1  ;;  %7303 = vmatprep.mubr.bf16.mxu1 %v2875_v36  ;;  %v2876_v37 = vpack.c.bf16 %v8958_v57, %v10194_v60  ;;  %v3817_v38 = vld [vmem:[#allocation2 + $0x37] sm:$0xff] }
 0x219   : > { %7451 = vmatprep.mubr.bf16.mxu0 %v10191_v56  ;;  %v1208_v21 = vpop.f32.mrf.mxu1  ;;  %v4372_v36 = vpack.c.bf16 %v8986_v8, %v8958_v57  ;;  %v3865_v12 = vpack.c.bf16 %v3818_v22, %v3817_v38  ;;  %v3819_v8 = vld [vmem:[#allocation2 + $0x47] sm:$0xff] }
 0x21a   : > { %10190 = vst [vmem:[#allocation12_spill] sm:$0xff] %v9187_v44  ;;  %v1634_v32 = vpop.f32.mrf.mxu0  ;;  %v9192_v45 = vadd.f32 %v1618_v35, %v1208_v21  ;;  %v3820_v21 = vld [vmem:[#allocation2 + $0x4f] sm:$0xff] }
 0x21b   : > { %v7046_v4 = vpop.f32.mrf.mxu1  ;;  %v3866_v38 = vpack.c.bf16 %v3820_v21, %v3819_v8  ;;  %v3823_v21 = vld [vmem:[#allocation2 + $0x67] sm:$0xff] }
 0x21c   : > { %10192 = vst [vmem:[#allocation20_spill] sm:$0xff] %v9192_v45  ;;  %v7114_v18 = vpop.f32.mrf.mxu0  ;;  %v9194_v10 = vadd.f32 %v7110_v54, %v7046_v4 }
 0x21d   : > { %v1211_v27 = vpop.f32.mrf.mxu1  ;;  %v3821_v18 = vld [vmem:[#allocation2 + $0x57] sm:$0xff] }
 0x21e   : > { %10193 = vst [vmem:[#allocation21_spill] sm:$0xff] %v9194_v10  ;;  %v1637_v1 = vpop.f32.mrf.mxu0  ;;  %v3822_v10 = vld [vmem:[#allocation2 + $0x5f] sm:$0xff] }
 0x21f   : > { %v7049_v35 = vpop.f32.mrf.mxu1  ;;  %7304 = vmatmul.mubr.bf16.gmra.mxu1 %v2876_v37 }
 0x220   : > { %v7197_v32 = vpop.f32.mrf.mxu0  ;;  %7452 = vmatmul.mubr.bf16.vlgmr.msra.gmra.mxu0 %v4372_v36  ;;  %v9202_v56 = vadd.f32 %v7113_v62, %v7049_v35  ;;  %7387 = vmatprep.mubr.bf16.mxu1 %v3865_v12  ;;  %v3867_v62 = vpack.c.bf16 %v3822_v10, %v3821_v18  ;;  %v4375_v35 = vpack.c.bf16 %v9016_v16, %v8958_v57  ;;  %v7759_v10 = vld [vmem:[%s9871_s4 + $0x228] sm:$0xff]   ;;  %v10197_v16 = vld [vmem:[#allocation8_spill] sm:$0xff] }
 0x221   : > { %7455 = vmatprep.mubr.bf16.mxu0 %v4373_v63  ;;  %v1224_v54 = vpop.f32.mrf.mxu1  ;;  %v10196_v63 = vpack.c.bf16 %v10161_v46, %v10157_v53  ;;  %v3826_v46 = vld [vmem:[#allocation2 + $0x7f] sm:$0xff] }
 0x222   : > { %v2470_v27 = vpop.f32.mrf.mxu0 }
 0x223   : > { %v7050_v4 = vpop.f32.mrf.mxu1 }
 0x224   : > { %v7198_v45 = vpop.f32.mrf.mxu0  ;;  %v3824_v4 = vld [vmem:[#allocation2 + $0x6f] sm:$0xff] }
 0x225   : > { %v1227_v22 = vpop.f32.mrf.mxu1 }
 0x226   : > { %v2473_v44 = vpop.f32.mrf.mxu0  ;;  %v9207_v37 = vadd.f32 %v1637_v1, %v1227_v22 }
 0x227   : > { %v7133_v36 = vpop.f32.mrf.mxu1  ;;  %7388 = vmatmul.mubr.bf16.vlgmr.msra.gmra.mxu1 %v3866_v38  ;;  %v3868_v38 = vpack.c.bf16 %v3824_v4, %v3823_v21 }
 0x228   : > { %10195 = vst [vmem:[#allocation22_spill] sm:$0xff] %v9207_v37  ;;  %v7201_v12 = vpop.f32.mrf.mxu0  ;;  %7456 = vmatmul.mubr.bf16.gmra.mxu0 %v10196_v63  ;;  %7500 = vmatpush3.bf16.msra.mxu1 %v9070_v42  ;;  %v4376_v63 = vpack.c.bf16 %v8958_v57, %v9018_v51  ;;  %v10199_v51 = vpack.c.bf16 %v10166_v29, %v10164_v48  ;;  %v10200_v29 = vld [vmem:[#allocation19_spill] sm:$0xff] }
 0x229   : > { %7391 = vmatprep.mubr.bf16.mxu1 %v3867_v62  ;;  %v1964_v32 = vpop.f32.mrf.mxu1  ;;  %7459 = vmatprep.mubr.bf16.mxu0 %v4375_v35  ;;  %v3825_v62 = vld [vmem:[#allocation2 + $0x77] sm:$0xff] }
 0x22a   : > { %v2486_v54 = vpop.f32.mrf.mxu0  ;;  %7501 = vmatprep.subr.bf16.mxu1 %v7758_v13  ;;  %v2203_v1 = vadd.f32 %v1964_v32, %v8980_v26  ;;  %v10198_v26 = vld [vmem:[#allocation16_spill] sm:$0xff]  ;;  %v3869_v37 = vpack.c.bf16 %v3826_v46, %v3825_v62 }
 0x22b   : > { %v7134_v53 = vpop.f32.mrf.mxu1 }
 0x22c   : > { %v7202_v18 = vpop.f32.mrf.mxu0  ;;  %v9219_v8 = vadd.f32 %v2470_v27, %v2203_v1  ;;  %v2206_v42 = vadd.f32 %v7134_v53, %v10197_v16  ;;  %7502 = vmatpush3.bf16.msra.mxu1 %v7758_v13  ;;  %v7760_v27 = vld [vmem:[%s9871_s4 + $0x220] sm:$0xff]  }
 0x22d   : > { %v1967_v22 = vpop.f32.mrf.mxu1  ;;  %7503 = vmatprep.subr.bf16.mxu1 %v7759_v10 }
 0x22e   : > { %v2489_v36 = vpop.f32.mrf.mxu0  ;;  %v9224_v35 = vadd.f32 %v7198_v45, %v2206_v42  ;;  %v2204_v32 = vadd.f32 %v1967_v22, %v10198_v26  ;;  %v3827_v42 = vld [vmem:[#allocation2 + $0x87] sm:$0xff]  ;;  %v3828_v22 = vld [vmem:[#allocation2 + $0x8f] sm:$0xff] }
 0x22f   : > { %v7137_v1 = vpop.f32.mrf.mxu1  ;;  %7392 = vmatmul.mubr.bf16.gmra.mxu1 %v3868_v38  ;;  %v3830_v38 = vld [vmem:[#allocation2 + $0x9f] sm:$0xff] }
 0x230   : > { %v7205_v13 = vpop.f32.mrf.mxu0  ;;  %7460 = vmatmul.mubr.bf16.gmra.mxu0 %v4376_v63  ;;  %v9230_v21 = vadd.f32 %v2473_v44, %v2204_v32  ;;  %v2209_v4 = vadd.f32 %v7137_v1, %v9006_v43  ;;  %7395 = vmatprep.mubr.bf16.mxu1 %v3869_v37  ;;  %v7761_v44 = vld [vmem:[%s9871_s4 + $0x218] sm:$0xff]   ;;  %v4379_v1 = vpack.c.bf16 %v8958_v57, %v9065_v3  ;;  %v7763_v3 = vld [vmem:[%s9871_s4 + $0x208] sm:$0xff]  }
 0x231   : > { %7463 = vmatprep.mubr.bf16.mxu0 %v10199_v51  ;;  %v1980_v45 = vpop.f32.mrf.mxu1  ;;  %7504 = vmatpush3.bf16.msra.mxu1 %v7759_v10  ;;  %v3829_v37 = vld [vmem:[#allocation2 + $0x97] sm:$0xff] }
 0x232   : > { %v2502_v53 = vpop.f32.mrf.mxu0  ;;  %v9236_v46 = vadd.f32 %v7201_v12, %v2209_v4  ;;  %v2207_v16 = vadd.f32 %v1980_v45, %v9011_v34  ;;  %7505 = vmatprep.subr.bf16.mxu1 %v7760_v27  ;;  %v3870_v12 = vpack.c.bf16 %v3828_v22, %v3827_v42  ;;  %v4378_v34 = vpack.c.bf16 %v9063_v40, %v8958_v57  ;;  %v3833_v42 = vld [vmem:[#allocation2 + $0xb7] sm:$0xff]  ;;  %v3834_v22 = vld [vmem:[#allocation2 + $0xbf] sm:$0xff] }
 0x233   : > { %v7138_v43 = vpop.f32.mrf.mxu1  ;;  %v3871_v32 = vpack.c.bf16 %v3830_v38, %v3829_v37  ;;  %v3832_v53 = vld [vmem:[#allocation2 + $0xaf] sm:$0xff]  ;;  %v3831_v37 = vld [vmem:[#allocation2 + $0xa7] sm:$0xff] }
 0x234   : > { %v7206_v62 = vpop.f32.mrf.mxu0  ;;  %v9242_v48 = vadd.f32 %v2486_v54, %v2207_v16  ;;  %v2210_v36 = vadd.f32 %v7138_v43, %v10200_v29  ;;  %v7762_v54 = vld [vmem:[%s9871_s4 + $0x210] sm:$0xff]  }
 0x235   : > { %v1983_v10 = vpop.f32.mrf.mxu1  ;;  %7506 = vmatpush3.bf16.msra.mxu1 %v7760_v27  ;;  %v10201_v29 = vld [vmem:[#allocation10_spill] sm:$0xff] }
 0x236   : > { %v2505_v63 = vpop.f32.mrf.mxu0  ;;  %v9247_v26 = vadd.f32 %v7202_v18, %v2210_v36  ;;  %7507 = vmatprep.subr.bf16.mxu1 %v7761_v44  ;;  %v7764_v10 = vld [vmem:[%s9871_s4 + $0x200] sm:$0xff]  }
 0x237   : > { %v7141_v4 = vpop.f32.mrf.mxu1  ;;  %7396 = vmatmul.mubr.bf16.gmra.mxu1 %v3870_v12 }
 0x238   : > { %v7209_v51 = vpop.f32.mrf.mxu0  ;;  %7464 = vmatmul.mubr.bf16.gmra.mxu0 %v4378_v34  ;;  %v2213_v45 = vadd.f32 %v7141_v4, %v9038_v58  ;;  %7399 = vmatprep.mubr.bf16.mxu1 %v3871_v32  ;;  %v3872_v58 = vpack.c.bf16 %v3832_v53, %v3831_v37  ;;  %v10202_v32 = vld [vmem:[#allocation60_spill] sm:$0xff]  ;;  %v3836_v53 = vld [vmem:[#allocation2 + $0xcf] sm:$0xff] }
 0x239   : > { %7467 = vmatprep.mubr.bf16.mxu0 %v4379_v1  ;;  %v1996_v40 = vpop.f32.mrf.mxu1  ;;  %7508 = vmatpush3.bf16.msra.mxu1 %v7761_v44  ;;  %v3873_v44 = vpack.c.bf16 %v3834_v22, %v3833_v42  ;;  %v10203_v1 = vpack.c.bf16 %v10175_v28, %v10202_v32  ;;  %v3837_v42 = vld [vmem:[#allocation2 + $0xd7] sm:$0xff]  ;;  %v3838_v22 = vld [vmem:[#allocation2 + $0xdf] sm:$0xff] }
 0x23a   : > { %v2518_v18 = vpop.f32.mrf.mxu0  ;;  %v9255_v27 = vadd.f32 %v7205_v13, %v2213_v45  ;;  %7509 = vmatprep.subr.bf16.mxu1 %v7762_v54  ;;  %v4381_v13 = vpack.c.bf16 %v9091_v20, %v8958_v57  ;;  %v10204_v20 = vld [vmem:[#allocation9_spill] sm:$0xff]  ;;  %v10205_v28 = vld [vmem:[#allocation11_spill] sm:$0xff]  ;;  %v3875_v32 = vpack.c.bf16 %v3838_v22, %v3837_v42 }
 0x23b   : > { %v7142_v16 = vpop.f32.mrf.mxu1  ;;  %v3835_v40 = vld [vmem:[#allocation2 + $0xc7] sm:$0xff]  ;;  %v3841_v22 = vld [vmem:[#allocation2 + $0xf7] sm:$0xff] }
 0x23c   : > { %v7210_v43 = vpop.f32.mrf.mxu0 }
 0x23d   : > { %v1999_v38 = vpop.f32.mrf.mxu1  ;;  %7510 = vmatpush3.bf16.msra.mxu1 %v7762_v54 }
 0x23e   : > { %v2521_v62 = vpop.f32.mrf.mxu0  ;;  %v2212_v36 = vadd.f32 %v1999_v38, %v10201_v29  ;;  %7511 = vmatprep.subr.bf16.mxu1 %v7763_v3  ;;  %v3874_v29 = vpack.c.bf16 %v3836_v53, %v3835_v40  ;;  %v3839_v53 = vld [vmem:[#allocation2 + $0xe7] sm:$0xff] }
 0x23f   : > { %v7145_v12 = vpop.f32.mrf.mxu1  ;;  %7400 = vmatmul.mubr.bf16.gmra.mxu1 %v3872_v58 }
 0x240   : > { %v7213_v34 = vpop.f32.mrf.mxu0  ;;  %7468 = vmatmul.mubr.bf16.gmra.mxu0 %v10203_v1  ;;  %v9269_v4 = vadd.f32 %v2505_v63, %v2212_v36  ;;  %7403 = vmatprep.mubr.bf16.mxu1 %v3873_v44  ;;  %v4382_v44 = vpack.c.bf16 %v8958_v57, %v9093_v6 }
 0x241   : > { %7471 = vmatprep.mubr.bf16.mxu0 %v4381_v13  ;;  %v2012_v54 = vpop.f32.mrf.mxu1  ;;  %7512 = vmatpush3.bf16.msra.mxu1 %v7763_v3  ;;  %v10206_v13 = vld [vmem:[#allocation13_spill] sm:$0xff] }
 0x242   : > { %v2534_v51 = vpop.f32.mrf.mxu0  ;;  %v2215_v45 = vadd.f32 %v2012_v54, %v10204_v20  ;;  %7513 = vmatprep.subr.bf16.mxu1 %v7764_v10 }
 0x243   : > { %v7146_v16 = vpop.f32.mrf.mxu1 }
 0x244   : > { %v7214_v37 = vpop.f32.mrf.mxu0  ;;  %v9272_v38 = vadd.f32 %v2518_v18, %v2215_v45  ;;  %v2218_v58 = vadd.f32 %v7146_v16, %v10205_v28  ;;  %v10207_v45 = vpack.c.bf16 %v8720_v33, %v8718_v41  ;;  %v3840_v16 = vld [vmem:[#allocation2 + $0xef] sm:$0xff]  ;;  %v3842_v28 = vld [vmem:[#allocation2 + $0xff] sm:$0xff]  ;;  %v4384_v33 = vpack.c.bf16 %v9123_v7, %v8958_v57 }
 0x245   : > { %v2015_v63 = vpop.f32.mrf.mxu1  ;;  %7514 = vmatpush3.bf16.msra.mxu1 %v7764_v10  ;;  %v3844_v7 = vld [vmem:[#allocation2 + $0x10f] sm:$0xff] }
 0x246   : > { %v2537_v36 = vpop.f32.mrf.mxu0  ;;  %v9277_v3 = vadd.f32 %v7210_v43, %v2218_v58  ;;  %v2216_v12 = vadd.f32 %v2015_v63, %v10206_v13 }
 0x247   : > { %v7149_v1 = vpop.f32.mrf.mxu1  ;;  %7404 = vmatmul.mubr.bf16.gmra.mxu1 %v3874_v29  ;;  %v3876_v29 = vpack.c.bf16 %v3840_v16, %v3839_v53  ;;  %v3877_v36 = vpack.c.bf16 %v3842_v28, %v3841_v22 }
 0x248   : > { %v7217_v54 = vpop.f32.mrf.mxu0  ;;  %7472 = vmatmul.mubr.bf16.gmra.mxu0 %v4382_v44  ;;  %v9280_v18 = vadd.f32 %v2521_v62, %v2216_v12  ;;  %v2221_v20 = vadd.f32 %v7149_v1, %v9084_v55  ;;  %7407 = vmatprep.mubr.bf16.mxu1 %v3875_v32  ;;  %v3843_v1 = vld [vmem:[#allocation2 + $0x107] sm:$0xff] }
 0x249   : > { %7475 = vmatprep.mubr.bf16.mxu0 %v10207_v45  ;;  %v2028_v6 = vpop.f32.mrf.mxu1  ;;  %v3846_v45 = vld [vmem:[#allocation2 + $0x11f] sm:$0xff] }
 0x24a   : > { %v2550_v10 = vpop.f32.mrf.mxu0  ;;  %v9286_v43 = vadd.f32 %v7213_v34, %v2221_v20  ;;  %v2219_v40 = vadd.f32 %v2028_v6, %v9089_v50  ;;  %v4385_v50 = vpack.c.bf16 %v8958_v57, %v9125_v15  ;;  %v3845_v20 = vld [vmem:[#allocation2 + $0x117] sm:$0xff]  ;;  %v3878_v15 = vpack.c.bf16 %v3844_v7, %v3843_v1 }
 0x24b   : > { %v7150_v42 = vpop.f32.mrf.mxu1  ;;  %v3879_v16 = vpack.c.bf16 %v3846_v45, %v3845_v20  ;;  %v10209_v1 = vld [vmem:[#allocation18_spill] sm:$0xff] }
 0x24c   : > { %v7218_v62 = vpop.f32.mrf.mxu0  ;;  %v9289_v58 = vadd.f32 %v2534_v51, %v2219_v40  ;;  %v2222_v55 = vadd.f32 %v7150_v42, %v9095_v0 }
 0x24d   : > { %v2031_v63 = vpop.f32.mrf.mxu1 }
 0x24e   : > { %v2553_v41 = vpop.f32.mrf.mxu0  ;;  %v9294_v34 = vadd.f32 %v7214_v37, %v2222_v55 }
 0x24f   : > { %v7153_v44 = vpop.f32.mrf.mxu1  ;;  %7408 = vmatmul.mubr.bf16.gmra.mxu1 %v3876_v29  ;;  %v3848_v29 = vld [vmem:[#allocation2 + $0x12f] sm:$0xff] }
 0x250   : > { %v7221_v13 = vpop.f32.mrf.mxu0  ;;  %7476 = vmatmul.mubr.bf16.gmra.mxu0 %v4384_v33  ;;  %v2225_v51 = vadd.f32 %v7153_v44, %v9104_v9  ;;  %7411 = vmatprep.mubr.bf16.mxu1 %v3877_v36  ;;  %v4387_v9 = vpack.c.bf16 %v9145_v23, %v8958_v57  ;;  %v3849_v36 = vld [vmem:[#allocation2 + $0x137] sm:$0xff]  ;;  %v3850_v23 = vld [vmem:[#allocation2 + $0x13f] sm:$0xff] }
 0x251   : > { %7479 = vmatprep.mubr.bf16.mxu0 %v4385_v50  ;;  %v2044_v0 = vpop.f32.mrf.mxu1  ;;  %v3881_v7 = vpack.c.bf16 %v3850_v23, %v3849_v36 }
 0x252   : > { %v2566_v12 = vpop.f32.mrf.mxu0  ;;  %v9299_v32 = vadd.f32 %v7217_v54, %v2225_v51  ;;  %v10208_v54 = vpack.c.bf16 %v10184_v2, %v8722_v52  ;;  %v4388_v51 = vpack.c.bf16 %v8958_v57, %v9147_v14 }
 0x253   : > { %v7154_v37 = vpop.f32.mrf.mxu1 }
 0x254   : > { %v7222_v6 = vpop.f32.mrf.mxu0 }
 0x255   : > { %v2047_v10 = vpop.f32.mrf.mxu1 }
 0x256   : > { %v2569_v40 = vpop.f32.mrf.mxu0  ;;  %v2224_v53 = vadd.f32 %v2047_v10, %v9111_v39  ;;  %v3847_v39 = vld [vmem:[#allocation2 + $0x127] sm:$0xff] }
 0x257   : > { %v7157_v42 = vpop.f32.mrf.mxu1  ;;  %7412 = vmatmul.mubr.bf16.gmra.mxu1 %v3878_v15  ;;  %v3880_v2 = vpack.c.bf16 %v3848_v29, %v3847_v39 }
 0x258   : > { %v7225_v22 = vpop.f32.mrf.mxu0  ;;  %7480 = vmatmul.mubr.bf16.gmra.mxu0 %v10208_v54  ;;  %v9307_v28 = vadd.f32 %v2553_v41, %v2224_v53  ;;  %7415 = vmatprep.mubr.bf16.mxu1 %v3879_v16  ;;  %v3851_v53 = vld [vmem:[#allocation2 + $0x147] sm:$0xff]  ;;  %v3852_v16 = vld [vmem:[#allocation2 + $0x14f] sm:$0xff]  ;;  %v3853_v42 = vld [vmem:[#allocation2 + $0x157] sm:$0xff] }
 0x259   : > { %7483 = vmatprep.mubr.bf16.mxu0 %v4387_v9  ;;  %v2060_v62 = vpop.f32.mrf.mxu1  ;;  %v3854_v54 = vld [vmem:[#allocation2 + $0x15f] sm:$0xff]  ;;  %v3882_v29 = vpack.c.bf16 %v3852_v16, %v3851_v53  ;;  %v3859_v16 = vld [vmem:[#allocation2 + $0x187] sm:$0xff] }
 0x25a   : > { %v2582_v55 = vpop.f32.mrf.mxu0  ;;  %v2227_v63 = vadd.f32 %v2060_v62, %v9121_v30 }
 0x25b   : > { %v7158_v33 = vpop.f32.mrf.mxu1 }
 0x25c   : > { %v7226_v50 = vpop.f32.mrf.mxu0  ;;  %v9310_v44 = vadd.f32 %v2566_v12, %v2227_v63  ;;  %v2230_v13 = vadd.f32 %v7158_v33, %v9127_v49  ;;  %v10210_v49 = vpack.c.bf16 %v8730_v59, %v8728_v17  ;;  %v4390_v59 = vpack.c.bf16 %v9175_v5, %v8958_v57  ;;  %v3856_v5 = vld [vmem:[#allocation2 + $0x16f] sm:$0xff] }
 0x25d   : > { %v2063_v52 = vpop.f32.mrf.mxu1  ;;  %v4391_v33 = vpack.c.bf16 %v8958_v57, %v9177_v24  ;;  %v4393_v24 = vpack.c.bf16 %v8958_v57, %v8958_v57 }
 0x25e   : > { %v2585_v41 = vpop.f32.mrf.mxu0  ;;  %v9315_v0 = vadd.f32 %v7222_v6, %v2230_v13  ;;  %v2228_v30 = vadd.f32 %v2063_v52, %v10209_v1  ;;  %v3858_v1 = vld [vmem:[#allocation2 + $0x17f] sm:$0xff] }
 0x25f   : > { %v7161_v37 = vpop.f32.mrf.mxu1  ;;  %7416 = vmatmul.mubr.bf16.gmra.mxu1 %v3880_v2  ;;  %v3855_v41 = vld [vmem:[#allocation2 + $0x167] sm:$0xff] }
 0x260   : > { %v7229_v20 = vpop.f32.mrf.mxu0  ;;  %7484 = vmatmul.mubr.bf16.gmra.mxu0 %v4388_v51  ;;  %v9318_v45 = vadd.f32 %v2569_v40, %v2228_v30  ;;  %v2233_v12 = vadd.f32 %v7161_v37, %v9138_v47  ;;  %7419 = vmatprep.mubr.bf16.mxu1 %v3881_v7  ;;  %v10211_v47 = vld [vmem:[#allocation17_spill] sm:$0xff]  ;;  %v3857_v51 = vld [vmem:[#allocation2 + $0x177] sm:$0xff]  ;;  %v3884_v37 = vpack.c.bf16 %v3856_v5, %v3855_v41 }
 0x261   : > { %7487 = vmatprep.mubr.bf16.mxu0 %v10210_v49  ;;  %v2076_v10 = vpop.f32.mrf.mxu1  ;;  %v3885_v49 = vpack.c.bf16 %v3858_v1, %v3857_v51  ;;  %v3864_v41 = vld [vmem:[#allocation2 + $0x1af] sm:$0xff]  ;;  %v10216_v1 = vld [vmem:[#allocation20_spill] sm:$0xff] }
 0x262   : > { %v2598_v14 = vpop.f32.mrf.mxu0  ;;  %v9324_v6 = vadd.f32 %v7225_v22, %v2233_v12  ;;  %v2231_v15 = vadd.f32 %v2076_v10, %v9143_v31  ;;  %v3883_v31 = vpack.c.bf16 %v3854_v54, %v3853_v42  ;;  %v3861_v54 = vld [vmem:[#allocation2 + $0x197] sm:$0xff] }
 0x263   : > { %v7162_v9 = vpop.f32.mrf.mxu1  ;;  %v10212_v14 = vpack.c.bf16 %v10194_v60, %v8746_v11 }
 0x264   : > { %v7230_v40 = vpop.f32.mrf.mxu0  ;;  %v9327_v62 = vadd.f32 %v2582_v55, %v2231_v15  ;;  %v2234_v63 = vadd.f32 %v7162_v9, %v10211_v47  ;;  %v3860_v9 = vld [vmem:[#allocation2 + $0x18f] sm:$0xff] }
 0x265   : > { %v2079_v39 = vpop.f32.mrf.mxu1 }
 0x266   : > { %v9330_v17 = vpop.f32.mrf.mxu0  ;;  %v9334_v22 = vadd.f32 %v7226_v50, %v2234_v63  ;;  %v10213_v63 = vld [vmem:[#allocation15_spill] sm:$0xff] }
 0x267   : > { %v7165_v36 = vpop.f32.mrf.mxu1  ;;  %7420 = vmatmul.mubr.bf16.gmra.mxu1 %v3882_v29 }
 0x268   : > { %v7233_v23 = vpop.f32.mrf.mxu0  ;;  %7488 = vmatmul.mubr.bf16.gmra.mxu0 %v4390_v59  ;;  %v2237_v55 = vadd.f32 %v7165_v36, %v9158_v25  ;;  %7423 = vmatprep.mubr.bf16.mxu1 %v3883_v31  ;;  %v3886_v59 = vpack.c.bf16 %v3860_v9, %v3859_v16  ;;  %v10214_v31 = vld [vmem:[#allocation14_spill] sm:$0xff] }
 0x269   : > { %7491 = vmatprep.mubr.bf16.mxu0 %v4391_v33  ;;  %v2092_v13 = vpop.f32.mrf.mxu1 }
 0x26a   : > { %v2614_v52 = vpop.f32.mrf.mxu0  ;;  %v9339_v2 = vadd.f32 %v7229_v20, %v2237_v55  ;;  %v10215_v55 = vld [vmem:[#allocation12_spill] sm:$0xff] }
 0x26b   : > { %v7166_v50 = vpop.f32.mrf.mxu1 }
 0x26c   : > { %v7234_v30 = vpop.f32.mrf.mxu0 }
 0x26d   : > { %v2095_v7 = vpop.f32.mrf.mxu1 }
 0x26e   : > { %v9343_v12 = vpop.f32.mrf.mxu0  ;;  %v9346_v25 = vadd.f32 %v2095_v7, %v9165_v61  ;;  %v3862_v61 = vld [vmem:[#allocation2 + $0x19f] sm:$0xff] }
 0x26f   : > { %v7169_v10 = vpop.f32.mrf.mxu1  ;;  %7424 = vmatmul.mubr.bf16.gmra.mxu1 %v3884_v37  ;;  %v3887_v36 = vpack.c.bf16 %v3862_v61, %v3861_v54 }
 0x270   : > { %v7237_v20 = vpop.f32.mrf.mxu0  ;;  %7492 = vmatmul.mubr.bf16.gmra.mxu0 %v10212_v14  ;;  %7427 = vmatprep.mubr.bf16.mxu1 %v3885_v49  ;;  %v4829_v49 = vld [vmem:[#allocation2 + $0x39] sm:$0xff]  ;;  %v4830_v10 = vld [vmem:[#allocation2 + $0x41] sm:$0xff] }
 0x271   : > { %7495 = vmatprep.mubr.bf16.mxu0 %v4393_v24  ;;  %v2108_v15 = vpop.f32.mrf.mxu1  ;;  %v4877_v54 = vpack.c.bf16 %v4830_v10, %v4829_v49  ;;  %v4836_v49 = vld [vmem:[#allocation2 + $0x71] sm:$0xff] }
 0x272   : > { %v2630_v53 = vpop.f32.mrf.mxu0  ;;  %v2239_v57 = vadd.f32 %v2108_v15, %v9173_v19 }
 0x273   : > { %v7170_v42 = vpop.f32.mrf.mxu1 }
 0x274   : > { %v7238_v40 = vpop.f32.mrf.mxu0  ;;  %v9352_v47 = vadd.f32 %v2614_v52, %v2239_v57  ;;  %v2242_v39 = vadd.f32 %v7170_v42, %v10213_v63  ;;  %v3863_v52 = vld [vmem:[#allocation2 + $0x1a7] sm:$0xff] }
 0x275   : > { %v2111_v29 = vpop.f32.mrf.mxu1  ;;  %v3888_v37 = vpack.c.bf16 %v3864_v41, %v3863_v52  ;;  %v10217_v57 = vld [vmem:[#allocation21_spill] sm:$0xff]  ;;  %v10218_v41 = vld [vmem:[#allocation22_spill] sm:$0xff] }
 0x276   : > { %v2633_v11 = vpop.f32.mrf.mxu0  ;;  %v9355_v60 = vadd.f32 %v7234_v30, %v2242_v39  ;;  %v9358_v33 = vadd.f32 %v2111_v29, %v10214_v31  ;;  %v4833_v31 = vld [vmem:[#allocation2 + $0x59] sm:$0xff] }
 0x277   : > { %v7173_v19 = vpop.f32.mrf.mxu1  ;;  %7428 = vmatmul.mubr.bf16.gmra.mxu1 %v3886_v59 }
 0x278   : > { %v7241_v23 = vpop.f32.mrf.mxu0  ;;  %7496 = vmatmul.mubr.bf16.gmra.mxu0 %v4393_v24  ;;  %v2245_v13 = vadd.f32 %v7173_v19, %v10215_v55  ;;  %7431 = vmatprep.mubr.bf16.mxu1 %v3887_v36  ;;  %v4831_v19 = vld [vmem:[#allocation2 + $0x49] sm:$0xff] }
 0x279   : > { %v2124_v5 = vpop.f32.mrf.mxu1 }
 0x27a   : > { %v2646_v50 = vpop.f32.mrf.mxu0  ;;  %v9361_v51 = vadd.f32 %v7237_v20, %v2245_v13  ;;  %v2243_v30 = vadd.f32 %v2124_v5, %v10216_v1 }
 0x27b   : > { %v7174_v7 = vpop.f32.mrf.mxu1 }
 0x27c   : > { %v7242_v14 = vpop.f32.mrf.mxu0  ;;  %v9364_v15 = vadd.f32 %v2630_v53, %v2243_v30  ;;  %v2246_v24 = vadd.f32 %v7174_v7, %v10217_v57  ;;  %v4832_v53 = vld [vmem:[#allocation2 + $0x51] sm:$0xff]  ;;  %v4838_v57 = vld [vmem:[#allocation2 + $0x81] sm:$0xff] }
 0x27d   : > { %v2127_v16 = vpop.f32.mrf.mxu1  ;;  %v4878_v13 = vpack.c.bf16 %v4832_v53, %v4831_v19  ;;  %v4837_v14 = vld [vmem:[#allocation2 + $0x79] sm:$0xff] }
 0x27e   : > { %v9367_v9 = vpop.f32.mrf.mxu0  ;;  %v9369_v42 = vadd.f32 %v7238_v40, %v2246_v24  ;;  %v4834_v40 = vld [vmem:[#allocation2 + $0x61] sm:$0xff] }
 0x27f   : > { %v7177_v61 = vpop.f32.mrf.mxu1  ;;  %7432 = vmatmul.mubr.bf16.gmra.mxu1 %v3888_v37  ;;  %v4879_v50 = vpack.c.bf16 %v4834_v40, %v4833_v31  ;;  %v4835_v37 = vld [vmem:[#allocation2 + $0x69] sm:$0xff] }
 0x280   : > { %v7325_v20 = vpop.f32.mrf.mxu0  ;;  %v2249_v63 = vadd.f32 %v7177_v61, %v9202_v56  ;;  %7515 = vmatprep.mubr.bf16.mxu1 %v4877_v54  ;;  %v4839_v40 = vld [vmem:[#allocation2 + $0x89] sm:$0xff] }
 0x281   : > { %v2140_v39 = vpop.f32.mrf.mxu1  ;;  %v4880_v20 = vpack.c.bf16 %v4836_v49, %v4835_v37 }
 0x282   : > { %v3482_v29 = vpop.f32.mrf.mxu0  ;;  %v9372_v59 = vadd.f32 %v7241_v23, %v2249_v63 }
 0x283   : > { %v7178_v11 = vpop.f32.mrf.mxu1 }
 0x284   : > { %v7326_v36 = vpop.f32.mrf.mxu0  ;;  %v4881_v11 = vpack.c.bf16 %v4838_v57, %v4837_v14 }
 0x285   : > { %v2143_v55 = vpop.f32.mrf.mxu1 }
 0x286   : > { %v9374_v52 = vpop.f32.mrf.mxu0  ;;  %v9377_v5 = vadd.f32 %v2143_v55, %v10218_v41  ;;  %v4840_v41 = vld [vmem:[#allocation2 + $0x91] sm:$0xff] }
 0x287   : > { %v7261_v56 = vpop.f32.mrf.mxu1  ;;  %7516 = vmatmul.mubr.bf16.vlgmr.msra.gmra.mxu1 %v4878_v13  ;;  %v4882_v49 = vpack.c.bf16 %v4840_v41, %v4839_v40 }
 0x288   : > { %v7329_v1 = vpop.f32.mrf.mxu0  ;;  %7519 = vmatprep.mubr.bf16.mxu1 %v4879_v50  ;;  %v4841_v50 = vld [vmem:[#allocation2 + $0x99] sm:$0xff]  ;;  %v4842_v56 = vld [vmem:[#allocation2 + $0xa1] sm:$0xff] }
 0x289   : > { %v2976_v23 = vpop.f32.mrf.mxu1  ;;  %v4883_v14 = vpack.c.bf16 %v4842_v56, %v4841_v50 }
 0x28a   : > { %v3498_v30 = vpop.f32.mrf.mxu0  ;;  %v3215_v7 = vadd.f32 %v2976_v23, %v9219_v8 }
 0x28b   : > { %v7262_v10 = vpop.f32.mrf.mxu1 }
 0x28c   : > { %v7330_v24 = vpop.f32.mrf.mxu0  ;;  %v9380_v16 = vadd.f32 %v3482_v29, %v3215_v7  ;;  %v3218_v54 = vadd.f32 %v7262_v10, %v9224_v35 }
 0x28d   : > { %v2979_v61 = vpop.f32.mrf.mxu1 }
 0x28e   : > { %v3501_v63 = vpop.f32.mrf.mxu0  ;;  %v9383_v39 = vadd.f32 %v7326_v36, %v3218_v54  ;;  %v9386_v53 = vadd.f32 %v2979_v61, %v9230_v21 }
 0x28f   : > { %v7265_v8 = vpop.f32.mrf.mxu1  ;;  %7520 = vmatmul.mubr.bf16.gmra.mxu1 %v4880_v20  ;;  %v4844_v63 = vld [vmem:[#allocation2 + $0xb1] sm:$0xff] }
 0x290   : > { %v7333_v31 = vpop.f32.mrf.mxu0  ;;  %v3221_v19 = vadd.f32 %v7265_v8, %v9236_v46  ;;  %7523 = vmatprep.mubr.bf16.mxu1 %v4881_v11  ;;  %v4846_v8 = vld [vmem:[#allocation2 + $0xc1] sm:$0xff] }
 0x291   : > { %v2992_v55 = vpop.f32.mrf.mxu1 }
 0x292   : > { %v3514_v29 = vpop.f32.mrf.mxu0  ;;  %v9389_v13 = vadd.f32 %v7329_v1, %v3221_v19  ;;  %v3219_v35 = vadd.f32 %v2992_v55, %v9242_v48 }
 0x293   : > { %v7266_v36 = vpop.f32.mrf.mxu1 }
 0x294   : > { %v7334_v21 = vpop.f32.mrf.mxu0  ;;  %v9392_v23 = vadd.f32 %v3498_v30, %v3219_v35  ;;  %v3222_v7 = vadd.f32 %v7266_v36, %v9247_v26  ;;  %v4843_v30 = vld [vmem:[#allocation2 + $0xa9] sm:$0xff]  ;;  %v4845_v26 = vld [vmem:[#allocation2 + $0xb9] sm:$0xff] }
 0x295   : > { %v2995_v37 = vpop.f32.mrf.mxu1  ;;  %v4885_v40 = vpack.c.bf16 %v4846_v8, %v4845_v26  ;;  %v4847_v21 = vld [vmem:[#allocation2 + $0xc9] sm:$0xff] }
 0x296   : > { %v3517_v46 = vpop.f32.mrf.mxu0  ;;  %v9395_v10 = vadd.f32 %v7330_v24, %v3222_v7  ;;  %v4884_v24 = vpack.c.bf16 %v4844_v63, %v4843_v30  ;;  %v4848_v7 = vld [vmem:[#allocation2 + $0xd1] sm:$0xff] }
 0x297   : > { %v7269_v1 = vpop.f32.mrf.mxu1  ;;  %7524 = vmatmul.mubr.bf16.gmra.mxu1 %v4882_v49  ;;  %v4849_v49 = vld [vmem:[#allocation2 + $0xd9] sm:$0xff] }
 0x298   : > { %v7337_v57 = vpop.f32.mrf.mxu0  ;;  %v3225_v48 = vadd.f32 %v7269_v1, %v9255_v27  ;;  %7527 = vmatprep.mubr.bf16.mxu1 %v4883_v14  ;;  %v4850_v14 = vld [vmem:[#allocation2 + $0xe1] sm:$0xff] }
 0x299   : > { %v3008_v54 = vpop.f32.mrf.mxu1 }
 0x29a   : > { %v3530_v61 = vpop.f32.mrf.mxu0  ;;  %v9398_v20 = vadd.f32 %v7333_v31, %v3225_v48  ;;  %v4886_v54 = vpack.c.bf16 %v4848_v7, %v4847_v21 }
 0x29b   : > { %v7270_v11 = vpop.f32.mrf.mxu1 }
 0x29c   : > { %v7338_v19 = vpop.f32.mrf.mxu0  ;;  %v4887_v11 = vpack.c.bf16 %v4850_v14, %v4849_v49 }
 0x29d   : > { %v3011_v55 = vpop.f32.mrf.mxu1 }
 0x29e   : > { %v3533_v29 = vpop.f32.mrf.mxu0  ;;  %v3224_v35 = vadd.f32 %v3011_v55, %v9269_v4 }
 0x29f   : > { %v7273_v41 = vpop.f32.mrf.mxu1  ;;  %7528 = vmatmul.mubr.bf16.gmra.mxu1 %v4884_v24 }
 0x2a0   : > { %v7341_v27 = vpop.f32.mrf.mxu0  ;;  %v9401_v36 = vadd.f32 %v3517_v46, %v3224_v35  ;;  %7531 = vmatprep.mubr.bf16.mxu1 %v4885_v40  ;;  %v4851_v40 = vld [vmem:[#allocation2 + $0xe9] sm:$0xff] }
 0x2a1   : > { %v3024_v31 = vpop.f32.mrf.mxu1 }
 0x2a2   : > { %v3546_v50 = vpop.f32.mrf.mxu0  ;;  %v3227_v56 = vadd.f32 %v3024_v31, %v9272_v38  ;;  %v4853_v31 = vld [vmem:[#allocation2 + $0xf9] sm:$0xff] }
 0x2a3   : > { %v7274_v37 = vpop.f32.mrf.mxu1 }
 0x2a4   : > { %v7342_v1 = vpop.f32.mrf.mxu0  ;;  %v9404_v57 = vadd.f32 %v3530_v61, %v3227_v56  ;;  %v3230_v4 = vadd.f32 %v7274_v37, %v9277_v3  ;;  %v4854_v56 = vld [vmem:[#allocation2 + $0x101] sm:$0xff] }
 0x2a5   : > { %v3027_v48 = vpop.f32.mrf.mxu1  ;;  %v4889_v49 = vpack.c.bf16 %v4854_v56, %v4853_v31 }
 0x2a6   : > { %v3549_v30 = vpop.f32.mrf.mxu0  ;;  %v9407_v46 = vadd.f32 %v7338_v19, %v3230_v4  ;;  %v3228_v63 = vadd.f32 %v3027_v48, %v9280_v18  ;;  %v4852_v19 = vld [vmem:[#allocation2 + $0xf1] sm:$0xff] }
 0x2a7   : > { %v7277_v26 = vpop.f32.mrf.mxu1  ;;  %7532 = vmatmul.mubr.bf16.gmra.mxu1 %v4886_v54  ;;  %v7765_v18 = vld [vmem:[%s9874_s7 + $0x38] sm:$0xff]   ;;  %v4888_v7 = vpack.c.bf16 %v4852_v19, %v4851_v40 }
 0x2a8   : > { %v7345_v38 = vpop.f32.mrf.mxu0  ;;  %v9410_v8 = vadd.f32 %v3533_v29, %v3228_v63  ;;  %v3233_v55 = vadd.f32 %v7277_v26, %v9286_v43  ;;  %7535 = vmatprep.mubr.bf16.mxu1 %v4887_v11  ;;  %7563 = vmatprep.subr.bf16.mxu0 %v7765_v18  ;;  %v4856_v63 = vld [vmem:[#allocation2 + $0x111] sm:$0xff]  ;;  %v4857_v26 = vld [vmem:[#allocation2 + $0x119] sm:$0xff] }
 0x2a9   : > { %v3040_v61 = vpop.f32.mrf.mxu1  ;;  %7611 = vmatprep.subr.bf16.mxu1 %v7765_v18  ;;  %7564 = vmatpush3.bf16.msra.mxu0 %v7765_v18 }
 0x2aa   : > { %v3562_v24 = vpop.f32.mrf.mxu0  ;;  %v9413_v35 = vadd.f32 %v7341_v27, %v3233_v55  ;;  %v3231_v3 = vadd.f32 %v3040_v61, %v9289_v58  ;;  %7619 = vmatpush3.bf16.msra.mxu1 %v7765_v18  ;;  %v4858_v55 = vld [vmem:[#allocation2 + $0x121] sm:$0xff] }
 0x2ab   : > { %v7278_v41 = vpop.f32.mrf.mxu1  ;;  %v4891_v19 = vpack.c.bf16 %v4858_v55, %v4857_v26 }
 0x2ac   : > { %v7346_v29 = vpop.f32.mrf.mxu0  ;;  %v9419_v21 = vadd.f32 %v3546_v50, %v3231_v3  ;;  %v3234_v43 = vadd.f32 %v7278_v41, %v9294_v34  ;;  %v4855_v34 = vld [vmem:[#allocation2 + $0x109] sm:$0xff] }
 0x2ad   : > { %v3043_v27 = vpop.f32.mrf.mxu1 }
 0x2ae   : > { %v3565_v37 = vpop.f32.mrf.mxu0  ;;  %v9422_v58 = vadd.f32 %v7342_v1, %v3234_v43  ;;  %v4890_v1 = vpack.c.bf16 %v4856_v63, %v4855_v34  ;;  %v4859_v43 = vld [vmem:[#allocation2 + $0x129] sm:$0xff] }
 0x2af   : > { %v7281_v14 = vpop.f32.mrf.mxu1  ;;  %7536 = vmatmul.mubr.bf16.gmra.mxu1 %v4888_v7  ;;  %v4861_v7 = vld [vmem:[#allocation2 + $0x139] sm:$0xff] }
 0x2b0   : > { %v7349_v4 = vpop.f32.mrf.mxu0  ;;  %v3237_v48 = vadd.f32 %v7281_v14, %v9299_v32  ;;  %7539 = vmatprep.mubr.bf16.mxu1 %v4889_v49  ;;  %v7766_v32 = vld [vmem:[%s9874_s7 + $0x30] sm:$0xff]   ;;  %v4862_v49 = vld [vmem:[#allocation2 + $0x141] sm:$0xff] }
 0x2b1   : > { %v3056_v50 = vpop.f32.mrf.mxu1  ;;  %7565 = vmatprep.subr.bf16.mxu0 %v7766_v32  ;;  %7612 = vmatprep.subr.bf16.mxu1 %v7766_v32  ;;  %v4893_v26 = vpack.c.bf16 %v4862_v49, %v4861_v7 }
 0x2b2   : > { %v3578_v54 = vpop.f32.mrf.mxu0  ;;  %v9425_v30 = vadd.f32 %v7345_v38, %v3237_v48  ;;  %7566 = vmatpush3.bf16.msra.mxu0 %v7766_v32  ;;  %7620 = vmatpush3.bf16.msra.mxu1 %v7766_v32  ;;  %v4864_v32 = vld [vmem:[#allocation2 + $0x151] sm:$0xff] }
 0x2b3   : > { %v7282_v11 = vpop.f32.mrf.mxu1 }
 0x2b4   : > { %v7350_v61 = vpop.f32.mrf.mxu0 }
 0x2b5   : > { %v3059_v24 = vpop.f32.mrf.mxu1 }
 0x2b6   : > { %v3581_v3 = vpop.f32.mrf.mxu0  ;;  %v3236_v40 = vadd.f32 %v3059_v24, %v9307_v28  ;;  %v4860_v28 = vld [vmem:[#allocation2 + $0x131] sm:$0xff] }
 0x2b7   : > { %v7285_v18 = vpop.f32.mrf.mxu1  ;;  %7540 = vmatmul.mubr.bf16.gmra.mxu1 %v4890_v1  ;;  %v4892_v50 = vpack.c.bf16 %v4860_v28, %v4859_v43 }
 0x2b8   : > { %v7353_v38 = vpop.f32.mrf.mxu0  ;;  %v9431_v41 = vadd.f32 %v3565_v37, %v3236_v40  ;;  %7543 = vmatprep.mubr.bf16.mxu1 %v4891_v19 }
 0x2b9   : > { %v3072_v31 = vpop.f32.mrf.mxu1 }
 0x2ba   : > { %v3594_v56 = vpop.f32.mrf.mxu0  ;;  %v3239_v29 = vadd.f32 %v3072_v31, %v9310_v44  ;;  %v4866_v31 = vld [vmem:[#allocation2 + $0x161] sm:$0xff] }
 0x2bb   : > { %v7286_v27 = vpop.f32.mrf.mxu1 }
 0x2bc   : > { %v7354_v14 = vpop.f32.mrf.mxu0  ;;  %v9434_v4 = vadd.f32 %v3578_v54, %v3239_v29  ;;  %v3242_v37 = vadd.f32 %v7286_v27, %v9315_v0  ;;  %v7767_v0 = vld [vmem:[%s9874_s7 + $0x28] sm:$0xff]  }
 0x2bd   : > { %v3075_v48 = vpop.f32.mrf.mxu1  ;;  %7567 = vmatprep.subr.bf16.mxu0 %v7767_v0  ;;  %7613 = vmatprep.subr.bf16.mxu1 %v7767_v0 }
 0x2be   : > { %v3597_v34 = vpop.f32.mrf.mxu0  ;;  %v9437_v63 = vadd.f32 %v7350_v61, %v3242_v37  ;;  %v3240_v11 = vadd.f32 %v3075_v48, %v9318_v45  ;;  %v4863_v45 = vld [vmem:[#allocation2 + $0x149] sm:$0xff]  ;;  %7568 = vmatpush3.bf16.msra.mxu0 %v7767_v0  ;;  %7621 = vmatpush3.bf16.msra.mxu1 %v7767_v0 }
 0x2bf   : > { %v7289_v44 = vpop.f32.mrf.mxu1  ;;  %7544 = vmatmul.mubr.bf16.gmra.mxu1 %v4892_v50  ;;  %v4894_v27 = vpack.c.bf16 %v4864_v32, %v4863_v45  ;;  %v7768_v50 = vld [vmem:[%s9874_s7 + $0x20] sm:$0xff]  }
 0x2c0   : > { %v7357_v55 = vpop.f32.mrf.mxu0  ;;  %v9440_v24 = vadd.f32 %v3581_v3, %v3240_v11  ;;  %v3245_v1 = vadd.f32 %v7289_v44, %v9324_v6  ;;  %7547 = vmatprep.mubr.bf16.mxu1 %v4893_v26  ;;  %v4865_v3 = vld [vmem:[#allocation2 + $0x159] sm:$0xff]  ;;  %v4868_v26 = vld [vmem:[#allocation2 + $0x171] sm:$0xff]  ;;  %7569 = vmatprep.subr.bf16.mxu0 %v7768_v50 }
 0x2c1   : > { %v3088_v54 = vpop.f32.mrf.mxu1  ;;  %7614 = vmatprep.subr.bf16.mxu1 %v7768_v50  ;;  %v4869_v44 = vld [vmem:[#allocation2 + $0x179] sm:$0xff] }
 0x2c2   : > { %v3610_v40 = vpop.f32.mrf.mxu0  ;;  %v9446_v19 = vadd.f32 %v7353_v38, %v3245_v1  ;;  %v3243_v61 = vadd.f32 %v3088_v54, %v9327_v62  ;;  %v4895_v62 = vpack.c.bf16 %v4866_v31, %v4865_v3  ;;  %v4870_v1 = vld [vmem:[#allocation2 + $0x181] sm:$0xff]  ;;  %7570 = vmatpush3.bf16.msra.mxu0 %v7768_v50  ;;  %7622 = vmatpush3.bf16.msra.mxu1 %v7768_v50  ;;  %v4873_v31 = vld [vmem:[#allocation2 + $0x199] sm:$0xff] }
 0x2c3   : > { %v7290_v18 = vpop.f32.mrf.mxu1  ;;  %v4897_v32 = vpack.c.bf16 %v4870_v1, %v4869_v44  ;;  %v7770_v1 = vld [vmem:[%s9874_s7 + $0x10] sm:$0xff]  }
 0x2c4   : > { %v7358_v29 = vpop.f32.mrf.mxu0  ;;  %v9449_v6 = vadd.f32 %v3594_v56, %v3243_v61  ;;  %v3246_v43 = vadd.f32 %v7290_v18, %v9334_v22  ;;  %v4867_v22 = vld [vmem:[#allocation2 + $0x169] sm:$0xff] }
 0x2c5   : > { %v3091_v28 = vpop.f32.mrf.mxu1  ;;  %v4896_v40 = vpack.c.bf16 %v4868_v26, %v4867_v22  ;;  %v4874_v29 = vld [vmem:[#allocation2 + $0x1a1] sm:$0xff] }
 0x2c6   : > { %v3613_v38 = vpop.f32.mrf.mxu0  ;;  %v9452_v7 = vadd.f32 %v7354_v14, %v3246_v43 }
 0x2c7   : > { %v7293_v49 = vpop.f32.mrf.mxu1  ;;  %7548 = vmatmul.mubr.bf16.gmra.mxu1 %v4894_v27 }
 0x2c8   : > { %v7361_v37 = vpop.f32.mrf.mxu0  ;;  %v3249_v48 = vadd.f32 %v7293_v49, %v9339_v2  ;;  %7551 = vmatprep.mubr.bf16.mxu1 %v4895_v62  ;;  %v2742_v2 = vadd.f32 %v9330_v17, %v9346_v25  ;;  %v4871_v62 = vld [vmem:[#allocation2 + $0x189] sm:$0xff]  ;;  %v4872_v49 = vld [vmem:[#allocation2 + $0x191] sm:$0xff] }
 0x2c9   : > { %v3104_v56 = vpop.f32.mrf.mxu1  ;;  %v7769_v17 = vld [vmem:[%s9874_s7 + $0x18] sm:$0xff]  }
 0x2ca   : > { %v3626_v34 = vpop.f32.mrf.mxu0  ;;  %v9458_v11 = vadd.f32 %v7357_v55, %v3249_v48  ;;  %v4899_v48 = vpack.c.bf16 %v4874_v29, %v4873_v31  ;;  %7571 = vmatprep.subr.bf16.mxu0 %v7769_v17  ;;  %7615 = vmatprep.subr.bf16.mxu1 %v7769_v17 }
 0x2cb   : > { %v7294_v14 = vpop.f32.mrf.mxu1  ;;  %7572 = vmatpush3.bf16.msra.mxu0 %v7769_v17  ;;  %7623 = vmatpush3.bf16.msra.mxu1 %v7769_v17 }
 0x2cc   : > { %v7362_v0 = vpop.f32.mrf.mxu0  ;;  %7573 = vmatprep.subr.bf16.mxu0 %v7770_v1  ;;  %7616 = vmatprep.subr.bf16.mxu1 %v7770_v1 }
 0x2cd   : > { %v3107_v54 = vpop.f32.mrf.mxu1 }
 0x2ce   : > { %v3629_v61 = vpop.f32.mrf.mxu0  ;;  %v3248_v45 = vadd.f32 %v3107_v54, %v2742_v2  ;;  %v4876_v54 = vld [vmem:[#allocation2 + $0x1b1] sm:$0xff] }
 0x2cf   : > { %v7297_v55 = vpop.f32.mrf.mxu1  ;;  %7552 = vmatmul.mubr.bf16.gmra.mxu1 %v4896_v40  ;;  %7574 = vmatpush3.bf16.msra.mxu0 %v7770_v1 }
 0x2d0   : > { %v7365_v18 = vpop.f32.mrf.mxu0  ;;  %v9462_v3 = vadd.f32 %v3613_v38, %v3248_v45  ;;  %7555 = vmatprep.mubr.bf16.mxu1 %v4897_v32  ;;  %v2746_v38 = vadd.f32 %v9343_v12, %v9358_v33  ;;  %v7771_v55 = vld [vmem:[%s9874_s7 + $0x8] sm:$0xff]   ;;  %7624 = vmatpush3.bf16.msra.mxu1 %v7770_v1 }
 0x2d1   : > { %v3120_v43 = vpop.f32.mrf.mxu1  ;;  %7575 = vmatprep.subr.bf16.mxu0 %v7771_v55  ;;  %7617 = vmatprep.subr.bf16.mxu1 %v7771_v55 }
 0x2d2   : > { %v3642_v28 = vpop.f32.mrf.mxu0  ;;  %v3251_v27 = vadd.f32 %v3120_v43, %v9352_v47  ;;  %v4898_v47 = vpack.c.bf16 %v4872_v49, %v4871_v62 }
 0x2d3   : > { %v7298_v25 = vpop.f32.mrf.mxu1  ;;  %7576 = vmatpush3.bf16.msra.mxu0 %v7771_v55 }
 0x2d4   : > { %v7366_v37 = vpop.f32.mrf.mxu0  ;;  %v9470_v50 = vadd.f32 %v3626_v34, %v3251_v27  ;;  %v3254_v56 = vadd.f32 %v7298_v25, %v9355_v60  ;;  %v4875_v34 = vld [vmem:[#allocation2 + $0x1a9] sm:$0xff]  ;;  %7625 = vmatpush3.bf16.msra.mxu1 %v7771_v55 }
 0x2d5   : > { %v3123_v22 = vpop.f32.mrf.mxu1  ;;  %v4900_v31 = vpack.c.bf16 %v4876_v54, %v4875_v34 }
 0x2d6   : > { %v3645_v26 = vpop.f32.mrf.mxu0  ;;  %v9473_v14 = vadd.f32 %v7362_v0, %v3254_v56  ;;  %v3252_v44 = vadd.f32 %v3123_v22, %v2746_v38  ;;  %v2754_v56 = vadd.f32 %v9367_v9, %v9377_v5 }
 0x2d7   : > { %v7301_v2 = vpop.f32.mrf.mxu1  ;;  %7556 = vmatmul.mubr.bf16.gmra.mxu1 %v4898_v47 }
 0x2d8   : > { %v7369_v12 = vpop.f32.mrf.mxu0  ;;  %v9478_v33 = vadd.f32 %v3629_v61, %v3252_v44  ;;  %v3257_v60 = vadd.f32 %v7301_v2, %v9361_v51  ;;  %7559 = vmatprep.mubr.bf16.mxu1 %v4899_v48 }
 0x2d9   : > { %v3136_v40 = vpop.f32.mrf.mxu1 }
 0x2da   : > { %v3658_v45 = vpop.f32.mrf.mxu0  ;;  %v9481_v0 = vadd.f32 %v7365_v18, %v3257_v60  ;;  %v3255_v32 = vadd.f32 %v3136_v40, %v9364_v15  ;;  %v7772_v15 = vld [vmem:[%s9874_s7] sm:$0xff]   ;;  %v3722_v40 = vadd.f32 %v9374_v52, %v9386_v53 }
 0x2db   : > { %v7302_v61 = vpop.f32.mrf.mxu1  ;;  %7577 = vmatprep.subr.bf16.mxu0 %v7772_v15  ;;  %7618 = vmatprep.subr.bf16.mxu1 %v7772_v15 }
 0x2dc   : > { %v7370_v51 = vpop.f32.mrf.mxu0  ;;  %v9487_v29 = vadd.f32 %v3642_v28, %v3255_v32  ;;  %v3258_v43 = vadd.f32 %v7302_v61, %v9369_v42  ;;  %7578 = vmatpush3.bf16.msra.mxu0 %v7772_v15  ;;  %7626 = vmatpush3.bf16.msra.mxu1 %v7772_v15 }
 0x2dd   : > { %v3139_v27 = vpop.f32.mrf.mxu1 }
 0x2de   : > { %v3661_v62 = vpop.f32.mrf.mxu0  ;;  %v9490_v18 = vadd.f32 %v7366_v37, %v3258_v43 }
 0x2df   : > { %v7305_v49 = vpop.f32.mrf.mxu1  ;;  %7560 = vmatmul.mubr.bf16.gmra.mxu1 %v4900_v31 }
 0x2e0   : > { %v7453_v17 = vpop.f32.mrf.mxu0  ;;  %v3261_v28 = vadd.f32 %v7305_v49, %v9372_v59 }
 0x2e1   : > { %v3152_v42 = vpop.f32.mrf.mxu1 }
 0x2e2   : > { %v4494_v25 = vpop.f32.mrf.mxu0  ;;  %v9496_v48 = vadd.f32 %v7369_v12, %v3261_v28 }
 0x2e3   : > { %v7306_v37 = vpop.f32.mrf.mxu1 }
 0x2e4   : > { %v7454_v38 = vpop.f32.mrf.mxu0 }
 0x2e5   : > { %v3155_v22 = vpop.f32.mrf.mxu1 }
 0x2e6   : > { %v4497_v47 = vpop.f32.mrf.mxu0  ;;  %v3260_v26 = vadd.f32 %v3155_v22, %v2754_v56 }
 0x2e7   : > { %v7389_v44 = vpop.f32.mrf.mxu1 }
 0x2e8   : > { %v7457_v1 = vpop.f32.mrf.mxu0  ;;  %v9500_v2 = vadd.f32 %v3661_v62, %v3260_v26 }
 0x2e9   : > { %v3988_v59 = vpop.f32.mrf.mxu1 }
 0x2ea   : > { %v4510_v60 = vpop.f32.mrf.mxu0  ;;  %v4227_v34 = vadd.f32 %v3988_v59, %v9380_v16 }
 0x2eb   : > { %v7390_v54 = vpop.f32.mrf.mxu1 }
 0x2ec   : > { %v7458_v12 = vpop.f32.mrf.mxu0  ;;  %v9505_v45 = vadd.f32 %v4494_v25, %v4227_v34  ;;  %v4230_v9 = vadd.f32 %v7390_v54, %v9383_v39 }
 0x2ed   : > { %v3991_v5 = vpop.f32.mrf.mxu1 }
 0x2ee   : > { %v4513_v32 = vpop.f32.mrf.mxu0  ;;  %v9508_v55 = vadd.f32 %v7454_v38, %v4230_v9  ;;  %v4228_v61 = vadd.f32 %v3991_v5, %v3722_v40 }
 0x2ef   : > { %v7393_v31 = vpop.f32.mrf.mxu1 }
 0x2f0   : > { %v7461_v51 = vpop.f32.mrf.mxu0  ;;  %v9510_v43 = vadd.f32 %v4497_v47, %v4228_v61  ;;  %v4233_v16 = vadd.f32 %v7393_v31, %v9389_v13 }
 0x2f1   : > { %v4004_v27 = vpop.f32.mrf.mxu1 }
 0x2f2   : > { %v4526_v62 = vpop.f32.mrf.mxu0  ;;  %v9513_v15 = vadd.f32 %v7457_v1, %v4233_v16  ;;  %v4231_v52 = vadd.f32 %v4004_v27, %v9392_v23 }
 0x2f3   : > { %v7394_v53 = vpop.f32.mrf.mxu1 }
 0x2f4   : > { %v7462_v49 = vpop.f32.mrf.mxu0  ;;  %v9516_v39 = vadd.f32 %v4510_v60, %v4231_v52  ;;  %v4234_v17 = vadd.f32 %v7394_v53, %v9395_v10 }
 0x2f5   : > { %v4007_v28 = vpop.f32.mrf.mxu1 }
 0x2f6   : > { %v4529_v42 = vpop.f32.mrf.mxu0  ;;  %v9519_v25 = vadd.f32 %v7458_v12, %v4234_v17 }
 0x2f7   : > { %v7397_v37 = vpop.f32.mrf.mxu1 }
 0x2f8   : > { %v7465_v38 = vpop.f32.mrf.mxu0  ;;  %v4237_v13 = vadd.f32 %v7397_v37, %v9398_v20 }
 0x2f9   : > { %v4020_v56 = vpop.f32.mrf.mxu1 }
 0x2fa   : > { %v4542_v22 = vpop.f32.mrf.mxu0  ;;  %v9522_v47 = vadd.f32 %v7461_v51, %v4237_v13 }
 0x2fb   : > { %v7398_v26 = vpop.f32.mrf.mxu1 }
 0x2fc   : > { %v7466_v23 = vpop.f32.mrf.mxu0 }
 0x2fd   : > { %v4023_v44 = vpop.f32.mrf.mxu1 }
 0x2fe   : > { %v4545_v1 = vpop.f32.mrf.mxu0  ;;  %v4236_v59 = vadd.f32 %v4023_v44, %v9401_v36 }
 0x2ff   : > { %v7401_v60 = vpop.f32.mrf.mxu1 }
 0x300   : > { %v7469_v10 = vpop.f32.mrf.mxu0  ;;  %v9525_v34 = vadd.f32 %v4529_v42, %v4236_v59 }
 0x301   : > { %v4036_v54 = vpop.f32.mrf.mxu1 }
 0x302   : > { %v4558_v12 = vpop.f32.mrf.mxu0  ;;  %v4239_v40 = vadd.f32 %v4036_v54, %v9404_v57 }
 0x303   : > { %v7402_v9 = vpop.f32.mrf.mxu1 }
 0x304   : > { %v7470_v20 = vpop.f32.mrf.mxu0  ;;  %v9528_v5 = vadd.f32 %v4542_v22, %v4239_v40  ;;  %v4242_v32 = vadd.f32 %v7402_v9, %v9407_v46 }
 0x305   : > { %v4039_v61 = vpop.f32.mrf.mxu1 }
 0x306   : > { %v4561_v31 = vpop.f32.mrf.mxu0  ;;  %v9531_v51 = vadd.f32 %v7466_v23, %v4242_v32  ;;  %v4240_v36 = vadd.f32 %v4039_v61, %v9410_v8 }
 0x307   : > { %v7405_v16 = vpop.f32.mrf.mxu1 }
 0x308   : > { %v7473_v27 = vpop.f32.mrf.mxu0  ;;  %v9534_v62 = vadd.f32 %v4545_v1, %v4240_v36  ;;  %v4245_v52 = vadd.f32 %v7405_v16, %v9413_v35 }
 0x309   : > { %v4052_v53 = vpop.f32.mrf.mxu1 }
 0x30a   : > { %v4574_v57 = vpop.f32.mrf.mxu0  ;;  %v9537_v49 = vadd.f32 %v7469_v10, %v4245_v52  ;;  %v4243_v17 = vadd.f32 %v4052_v53, %v9419_v21 }
 0x30b   : > { %v7406_v28 = vpop.f32.mrf.mxu1 }
 0x30c   : > { %v7474_v46 = vpop.f32.mrf.mxu0  ;;  %v9540_v42 = vadd.f32 %v4558_v12, %v4243_v17  ;;  %v4246_v37 = vadd.f32 %v7406_v28, %v9422_v58 }
 0x30d   : > { %v4055_v38 = vpop.f32.mrf.mxu1 }
 0x30e   : > { %v4577_v8 = vpop.f32.mrf.mxu0  ;;  %v9543_v13 = vadd.f32 %v7470_v20, %v4246_v37 }
 0x30f   : > { %v7409_v56 = vpop.f32.mrf.mxu1 }
 0x310   : > { %v7477_v22 = vpop.f32.mrf.mxu0  ;;  %v4249_v35 = vadd.f32 %v7409_v56, %v9425_v30 }
 0x311   : > { %v4068_v26 = vpop.f32.mrf.mxu1 }
 0x312   : > { %v4590_v23 = vpop.f32.mrf.mxu0  ;;  %v9546_v44 = vadd.f32 %v7473_v27, %v4249_v35 }
 0x313   : > { %v7410_v1 = vpop.f32.mrf.mxu1 }
 0x314   : > { %v7478_v21 = vpop.f32.mrf.mxu0 }
 0x315   : > { %v4071_v59 = vpop.f32.mrf.mxu1 }
 0x316   : > { %v4593_v60 = vpop.f32.mrf.mxu0  ;;  %v4248_v10 = vadd.f32 %v4071_v59, %v9431_v41 }
 0x317   : > { %v7413_v54 = vpop.f32.mrf.mxu1 }
 0x318   : > { %v7481_v58 = vpop.f32.mrf.mxu0  ;;  %v9549_v12 = vadd.f32 %v4577_v8, %v4248_v10 }
 0x319   : > { %v4084_v40 = vpop.f32.mrf.mxu1 }
 0x31a   : > { %v4606_v9 = vpop.f32.mrf.mxu0  ;;  %v4251_v20 = vadd.f32 %v4084_v40, %v9434_v4 }
 0x31b   : > { %v7414_v32 = vpop.f32.mrf.mxu1 }
 0x31c   : > { %v7482_v30 = vpop.f32.mrf.mxu0  ;;  %v9552_v61 = vadd.f32 %v4590_v23, %v4251_v20  ;;  %v4254_v31 = vadd.f32 %v7414_v32, %v9437_v63 }
 0x31d   : > { %v4087_v36 = vpop.f32.mrf.mxu1 }
 0x31e   : > { %v4609_v16 = vpop.f32.mrf.mxu0  ;;  %v9555_v27 = vadd.f32 %v7478_v21, %v4254_v31  ;;  %v4252_v41 = vadd.f32 %v4087_v36, %v9440_v24 }
 0x31f   : > { %v7417_v52 = vpop.f32.mrf.mxu1 }
 0x320   : > { %v7485_v53 = vpop.f32.mrf.mxu0  ;;  %v9558_v57 = vadd.f32 %v4593_v60, %v4252_v41  ;;  %v4257_v17 = vadd.f32 %v7417_v52, %v9446_v19 }
 0x321   : > { %v4100_v28 = vpop.f32.mrf.mxu1 }
 0x322   : > { %v4622_v4 = vpop.f32.mrf.mxu0  ;;  %v9561_v46 = vadd.f32 %v7481_v58, %v4257_v17  ;;  %v4255_v37 = vadd.f32 %v4100_v28, %v9449_v6 }
 0x323   : > { %v7418_v38 = vpop.f32.mrf.mxu1 }
 0x324   : > { %v7486_v63 = vpop.f32.mrf.mxu0  ;;  %v9564_v8 = vadd.f32 %v4606_v9, %v4255_v37  ;;  %v4258_v56 = vadd.f32 %v7418_v38, %v9452_v7 }
 0x325   : > { %v4103_v22 = vpop.f32.mrf.mxu1 }
 0x326   : > { %v4625_v24 = vpop.f32.mrf.mxu0  ;;  %v9567_v35 = vadd.f32 %v7482_v30, %v4258_v56 }
 0x327   : > { %v7421_v26 = vpop.f32.mrf.mxu1 }
 0x328   : > { %v7489_v23 = vpop.f32.mrf.mxu0  ;;  %v4261_v19 = vadd.f32 %v7421_v26, %v9458_v11 }
 0x329   : > { %v4116_v1 = vpop.f32.mrf.mxu1 }
 0x32a   : > { %v4638_v21 = vpop.f32.mrf.mxu0  ;;  %v9570_v59 = vadd.f32 %v7485_v53, %v4261_v19 }
 0x32b   : > { %v7422_v60 = vpop.f32.mrf.mxu1 }
 0x32c   : > { %v7490_v6 = vpop.f32.mrf.mxu0 }
 0x32d   : > { %v4119_v10 = vpop.f32.mrf.mxu1 }
 0x32e   : > { %v4641_v54 = vpop.f32.mrf.mxu0  ;;  %v4260_v58 = vadd.f32 %v4119_v10, %v9462_v3 }
 0x32f   : > { %v7425_v40 = vpop.f32.mrf.mxu1 }
 0x330   : > { %v7493_v7 = vpop.f32.mrf.mxu0  ;;  %v9573_v9 = vadd.f32 %v4625_v24, %v4260_v58 }
 0x331   : > { %v4132_v20 = vpop.f32.mrf.mxu1 }
 0x332   : > { %v4654_v32 = vpop.f32.mrf.mxu0  ;;  %v4263_v30 = vadd.f32 %v4132_v20, %v9470_v50 }
 0x333   : > { %v7426_v31 = vpop.f32.mrf.mxu1 }
 0x334   : > { %v7494_v11 = vpop.f32.mrf.mxu0  ;;  %v9576_v36 = vadd.f32 %v4638_v21, %v4263_v30  ;;  %v4266_v16 = vadd.f32 %v7426_v31, %v9473_v14 }
 0x335   : > { %v4135_v41 = vpop.f32.mrf.mxu1 }
 0x336   : > { %v4657_v52 = vpop.f32.mrf.mxu0  ;;  %v9579_v53 = vadd.f32 %v7490_v6, %v4266_v16  ;;  %v4264_v3 = vadd.f32 %v4135_v41, %v9478_v33 }
 0x337   : > { %v7429_v17 = vpop.f32.mrf.mxu1 }
 0x338   : > { %v7497_v28 = vpop.f32.mrf.mxu0  ;;  %v9582_v4 = vadd.f32 %v4641_v54, %v4264_v3  ;;  %v4269_v37 = vadd.f32 %v7429_v17, %v9481_v0 }
 0x339   : > { %v4148_v38 = vpop.f32.mrf.mxu1 }
 0x33a   : > { %v4670_v50 = vpop.f32.mrf.mxu0  ;;  %v9585_v63 = vadd.f32 %v7493_v7, %v4269_v37  ;;  %v4267_v56 = vadd.f32 %v4148_v38, %v9487_v29  ;;  %v9609_v7 = vld [vmem:[%s9873_s6] ss:$0 sm:$0xff] }
 0x33b   : > { %v7430_v22 = vpop.f32.mrf.mxu1 }
 0x33c   : > { %v7498_v14 = vpop.f32.mrf.mxu0  ;;  %v9588_v24 = vadd.f32 %v4654_v32, %v4267_v56  ;;  %v4270_v26 = vadd.f32 %v7430_v22, %v9490_v18  ;;  %v9602_v18 = vld [vmem:[%s9872_s5] ss:$0 sm:$0xff] }
 0x33d   : > { %v4151_v23 = vpop.f32.mrf.mxu1 }
 0x33e   : > { %v9591_v33 = vadd.f32 %v7494_v11, %v4270_v26 }
 0x33f   : > { %v7433_v19 = vpop.f32.mrf.mxu1 }
 0x340   : > { %v4273_v1 = vadd.f32 %v7433_v19, %v9496_v48 }
 0x341   : > { %v4164_v21 = vpop.f32.mrf.mxu1 }
 0x342   : > { %v9594_v0 = vadd.f32 %v7497_v28, %v4273_v1 }
 0x343   : > { %v7434_v60 = vpop.f32.mrf.mxu1 }
 0x345   : > { %v4167_v6 = vpop.f32.mrf.mxu1 }
 0x346   : > { %v9597_v10 = vadd.f32 %v4167_v6, %v9500_v2 }
 0x347   : > { %v7517_v29 = vpop.f32.mrf.mxu1 }
 0x349   : > { %v5000_v54 = vpop.f32.mrf.mxu1 }
 0x34a   : > { %v5239_v58 = vadd.f32 %v5000_v54, %v9505_v45 }
 0x34b   : > { %v7518_v40 = vpop.f32.mrf.mxu1 }
 0x34c   : > { %v5374_v48 = vmul.f32 %v9602_v18, %v5239_v58  ;;  %v5242_v2 = vadd.f32 %v7518_v40, %v9508_v55 }
 0x34d   : > { %v5003_v20 = vpop.f32.mrf.mxu1 }
 0x34e   : > { %v5240_v32 = vadd.f32 %v5003_v20, %v9510_v43  ;;  %v5413_v30 = vadd.f32 %v9609_v7, %v5374_v48  ;;  %v5376_v11 = vmul.f32 %v9602_v18, %v5242_v2 }
 0x34f   : > { %v7521_v31 = vpop.f32.mrf.mxu1 }
 0x350   : > { %v5375_v45 = vmul.f32 %v9602_v18, %v5240_v32  ;;  %v5245_v16 = vadd.f32 %v7521_v31, %v9513_v15  ;;  %v5445_v55 = vmax.f32 %v5413_v30, 0.0  ;;  %v5415_v43 = vadd.f32 %v9609_v7, %v5376_v11 }
 0x351   : > { %v5016_v41 = vpop.f32.mrf.mxu1 }
 0x352   : > { %v5414_v52 = vadd.f32 %v9609_v7, %v5375_v45  ;;  %v5378_v3 = vmul.f32 %v9602_v18, %v5245_v16  ;;  %v5243_v17 = vadd.f32 %v5016_v41, %v9516_v39  ;;  %v5447_v19 = vmax.f32 %v5415_v43, 0.0 }
 0x353   : > { %v7522_v28 = vpop.f32.mrf.mxu1 }
 0x354   : > { %v5446_v37 = vmax.f32 %v5414_v52, 0.0  ;;  %v5377_v38 = vmul.f32 %v9602_v18, %v5243_v17  ;;  %v5246_v50 = vadd.f32 %v7522_v28, %v9519_v25  ;;  %v5417_v22 = vadd.f32 %v9609_v7, %v5378_v3 }
 0x355   : > { %v5019_v56 = vpop.f32.mrf.mxu1 }
 0x356   : > { %v5416_v15 = vadd.f32 %v9609_v7, %v5377_v38  ;;  %v5379_v14 = vmul.f32 %v9602_v18, %v5246_v50  ;;  %v5541_v26 = vpack.c.bf16 %v5446_v37, %v5445_v55  ;;  %v5449_v6 = vmax.f32 %v5417_v22, 0.0 }
 0x357   : > { %v7525_v23 = vpop.f32.mrf.mxu1 }
 0x358   : > { %v5448_v39 = vmax.f32 %v5416_v15, 0.0  ;;  %v5418_v1 = vadd.f32 %v9609_v7, %v5379_v14  ;;  %v5249_v21 = vadd.f32 %v7525_v23, %v9522_v47  ;;  %7579 = vmatprep.mubr.bf16.mxu0 %v5541_v26 }
 0x359   : > { %v5032_v60 = vpop.f32.mrf.mxu1 }
 0x35a   : > { %v5542_v29 = vpack.c.bf16 %v5448_v39, %v5447_v19  ;;  %v5450_v25 = vmax.f32 %v5418_v1, 0.0  ;;  %v5381_v58 = vmul.f32 %v9602_v18, %v5249_v21 }
 0x35b   : > { %v7526_v54 = vpop.f32.mrf.mxu1 }
 0x35c   : > { %7580 = vmatmul.mubr.bf16.vlgmr.msra.gmra.mxu0 %v5542_v29  ;;  %v5543_v40 = vpack.c.bf16 %v5450_v25, %v5449_v6  ;;  %v5420_v32 = vadd.f32 %v9609_v7, %v5381_v58 }
 0x35d   : > { %v5035_v48 = vpop.f32.mrf.mxu1 }
 0x35e   : > { %v5248_v2 = vadd.f32 %v5035_v48, %v9525_v34  ;;  %7583 = vmatprep.mubr.bf16.mxu0 %v5543_v40  ;;  %v5452_v16 = vmax.f32 %v5420_v32, 0.0 }
 0x35f   : > { %v7529_v20 = vpop.f32.mrf.mxu1 }
 0x360   : > { %v5380_v30 = vmul.f32 %v9602_v18, %v5248_v2 }
 0x361   : > { %v5048_v47 = vpop.f32.mrf.mxu1 }
 0x362   : > { %v5419_v31 = vadd.f32 %v9609_v7, %v5380_v30  ;;  %v5251_v11 = vadd.f32 %v5048_v47, %v9528_v5 }
 0x363   : > { %v7530_v45 = vpop.f32.mrf.mxu1 }
 0x364   : > { %v5451_v41 = vmax.f32 %v5419_v31, 0.0  ;;  %v5382_v52 = vmul.f32 %v9602_v18, %v5251_v11  ;;  %v5254_v3 = vadd.f32 %v7530_v45, %v9531_v51 }
 0x365   : > { %v5051_v17 = vpop.f32.mrf.mxu1 }
 0x366   : > { %v5544_v34 = vpack.c.bf16 %v5452_v16, %v5451_v41  ;;  %v5252_v55 = vadd.f32 %v5051_v17, %v9534_v62  ;;  %v5421_v28 = vadd.f32 %v9609_v7, %v5382_v52  ;;  %v5384_v37 = vmul.f32 %v9602_v18, %v5254_v3 }
 0x367   : > { %v7533_v43 = vpop.f32.mrf.mxu1 }
 0x368   : > { %v5383_v38 = vmul.f32 %v9602_v18, %v5252_v55  ;;  %v5257_v5 = vadd.f32 %v7533_v43, %v9537_v49  ;;  %7584 = vmatmul.mubr.bf16.gmra.mxu0 %v5544_v34  ;;  %v5453_v15 = vmax.f32 %v5421_v28, 0.0  ;;  %v5423_v62 = vadd.f32 %v9609_v7, %v5384_v37 }
 0x369   : > { %v5064_v50 = vpop.f32.mrf.mxu1 }
 0x36a   : > { %v5422_v56 = vadd.f32 %v9609_v7, %v5383_v38  ;;  %v5386_v22 = vmul.f32 %v9602_v18, %v5257_v5  ;;  %v5255_v51 = vadd.f32 %v5064_v50, %v9540_v42  ;;  %v5455_v29 = vmax.f32 %v5423_v62, 0.0 }
 0x36b   : > { %v7534_v14 = vpop.f32.mrf.mxu1 }
 0x36c   : > { %v5454_v26 = vmax.f32 %v5422_v56, 0.0  ;;  %v5385_v23 = vmul.f32 %v9602_v18, %v5255_v51  ;;  %v5258_v19 = vadd.f32 %v7534_v14, %v9543_v13  ;;  %v5425_v49 = vadd.f32 %v9609_v7, %v5386_v22 }
 0x36d   : > { %v5067_v39 = vpop.f32.mrf.mxu1 }
 0x36e   : > { %v5424_v1 = vadd.f32 %v9609_v7, %v5385_v23  ;;  %v5387_v21 = vmul.f32 %v9602_v18, %v5258_v19  ;;  %v5545_v60 = vpack.c.bf16 %v5454_v26, %v5453_v15  ;;  %v5457_v40 = vmax.f32 %v5425_v49, 0.0 }
 0x36f   : > { %v7537_v6 = vpop.f32.mrf.mxu1 }
 0x370   : > { %v5456_v42 = vmax.f32 %v5424_v1, 0.0  ;;  %v5426_v25 = vadd.f32 %v9609_v7, %v5387_v21  ;;  %v5261_v54 = vadd.f32 %v7537_v6, %v9546_v44  ;;  %7587 = vmatprep.mubr.bf16.mxu0 %v5545_v60 }
 0x371   : > { %v5080_v58 = vpop.f32.mrf.mxu1 }
 0x372   : > { %v5546_v48 = vpack.c.bf16 %v5456_v42, %v5455_v29  ;;  %v5458_v13 = vmax.f32 %v5426_v25, 0.0  ;;  %v5389_v20 = vmul.f32 %v9602_v18, %v5261_v54 }
 0x373   : > { %v7538_v2 = vpop.f32.mrf.mxu1 }
 0x374   : > { %7588 = vmatmul.mubr.bf16.gmra.mxu0 %v5546_v48  ;;  %v5547_v32 = vpack.c.bf16 %v5458_v13, %v5457_v40  ;;  %v5428_v11 = vadd.f32 %v9609_v7, %v5389_v20 }
 0x375   : > { %v5083_v30 = vpop.f32.mrf.mxu1 }
 0x376   : > { %v5260_v47 = vadd.f32 %v5083_v30, %v9549_v12  ;;  %7591 = vmatprep.mubr.bf16.mxu0 %v5547_v32  ;;  %v5460_v3 = vmax.f32 %v5428_v11, 0.0 }
 0x377   : > { %v7541_v31 = vpop.f32.mrf.mxu1 }
 0x378   : > { %v5388_v45 = vmul.f32 %v9602_v18, %v5260_v47 }
 0x379   : > { %v5096_v44 = vpop.f32.mrf.mxu1 }
 0x37a   : > { %v5427_v16 = vadd.f32 %v9609_v7, %v5388_v45  ;;  %v5263_v41 = vadd.f32 %v5096_v44, %v9552_v61 }
 0x37b   : > { %v7542_v52 = vpop.f32.mrf.mxu1 }
 0x37c   : > { %v5459_v17 = vmax.f32 %v5427_v16, 0.0  ;;  %v5390_v34 = vmul.f32 %v9602_v18, %v5263_v41  ;;  %v5266_v55 = vadd.f32 %v7542_v52, %v9555_v27 }
 0x37d   : > { %v5099_v28 = vpop.f32.mrf.mxu1 }
 0x37e   : > { %v5548_v12 = vpack.c.bf16 %v5460_v3, %v5459_v17  ;;  %v5264_v43 = vadd.f32 %v5099_v28, %v9558_v57  ;;  %v5429_v37 = vadd.f32 %v9609_v7, %v5390_v34  ;;  %v5392_v5 = vmul.f32 %v9602_v18, %v5266_v55 }
 0x37f   : > { %v7545_v38 = vpop.f32.mrf.mxu1 }
 0x380   : > { %v5391_v50 = vmul.f32 %v9602_v18, %v5264_v43  ;;  %v5269_v61 = vadd.f32 %v7545_v38, %v9561_v46  ;;  %7592 = vmatmul.mubr.bf16.gmra.mxu0 %v5548_v12  ;;  %v5461_v15 = vmax.f32 %v5429_v37, 0.0  ;;  %v5431_v57 = vadd.f32 %v9609_v7, %v5392_v5 }
 0x381   : > { %v5112_v56 = vpop.f32.mrf.mxu1 }
 0x382   : > { %v5430_v22 = vadd.f32 %v9609_v7, %v5391_v50  ;;  %v5394_v51 = vmul.f32 %v9602_v18, %v5269_v61  ;;  %v5267_v27 = vadd.f32 %v5112_v56, %v9564_v8  ;;  %v5463_v60 = vmax.f32 %v5431_v57, 0.0 }
 0x383   : > { %v7546_v14 = vpop.f32.mrf.mxu1 }
 0x384   : > { %v5462_v62 = vmax.f32 %v5430_v22, 0.0  ;;  %v5393_v26 = vmul.f32 %v9602_v18, %v5267_v27  ;;  %v5270_v23 = vadd.f32 %v7546_v14, %v9567_v35  ;;  %v5433_v46 = vadd.f32 %v9609_v7, %v5394_v51 }
 0x385   : > { %v5115_v19 = vpop.f32.mrf.mxu1 }
 0x386   : > { %v5432_v39 = vadd.f32 %v9609_v7, %v5393_v26  ;;  %v5395_v49 = vmul.f32 %v9602_v18, %v5270_v23  ;;  %v5549_v1 = vpack.c.bf16 %v5462_v62, %v5461_v15  ;;  %v5465_v25 = vmax.f32 %v5433_v46, 0.0  ;;  %v4673_v23 = vpop.f32.mrf.mxu0 }
 0x387   : > { %v7549_v21 = vpop.f32.mrf.mxu1 }
 0x388   : > { %v5464_v8 = vmax.f32 %v5432_v39, 0.0  ;;  %v5434_v6 = vadd.f32 %v9609_v7, %v5395_v49  ;;  %v5273_v29 = vadd.f32 %v7549_v21, %v9570_v59  ;;  %7595 = vmatprep.mubr.bf16.mxu0 %v5549_v1  ;;  %v4778_v1 = vadd.f32 %v4673_v23, %v9597_v10  ;;  %v9708_v10 = vld [vmem:[%s9875_s8] ss:$0 sm:$0xff] }
 0x389   : > { %v5128_v42 = vpop.f32.mrf.mxu1 }
 0x38a   : > { %v5550_v54 = vpack.c.bf16 %v5464_v8, %v5463_v60  ;;  %v5466_v35 = vmax.f32 %v5434_v6, 0.0  ;;  %v5397_v40 = vmul.f32 %v9602_v18, %v5273_v29 }
 0x38b   : > { %v7550_v58 = vpop.f32.mrf.mxu1 }
 0x38c   : > { %7596 = vmatmul.mubr.bf16.gmra.mxu0 %v5550_v54  ;;  %v5551_v48 = vpack.c.bf16 %v5466_v35, %v5465_v25  ;;  %v5436_v32 = vadd.f32 %v9609_v7, %v5397_v40  ;;  %v9713_v40 = vld [vmem:[%s9876_s9] ss:$0 sm:$0xff] }
 0x38d   : > { %v5131_v13 = vpop.f32.mrf.mxu1 }
 0x38e   : > { %v5272_v2 = vadd.f32 %v5131_v13, %v9573_v9  ;;  %7599 = vmatprep.mubr.bf16.mxu0 %v5551_v48  ;;  %v5468_v45 = vmax.f32 %v5436_v32, 0.0 }
 0x38f   : > { %v7553_v20 = vpop.f32.mrf.mxu1 }
 0x390   : > { %v5396_v30 = vmul.f32 %v9602_v18, %v5272_v2 }
 0x391   : > { %v5144_v59 = vpop.f32.mrf.mxu1 }
 0x392   : > { %v5435_v47 = vadd.f32 %v9609_v7, %v5396_v30  ;;  %v5275_v31 = vadd.f32 %v5144_v59, %v9576_v36  ;;  %v7791_v30 = vld [vmem:[%s7990_s21] sm:$0xff]  }
 0x393   : > { %v7554_v11 = vpop.f32.mrf.mxu1  ;;  %v5860_v59 = vunpack.c.l.bf16 %v7791_v30 }
 0x394   : > { %v5467_v44 = vmax.f32 %v5435_v47, 0.0  ;;  %v5398_v16 = vmul.f32 %v9602_v18, %v5275_v31  ;;  %v5278_v41 = vadd.f32 %v7554_v11, %v9579_v53 }
 0x395   : > { %v5147_v52 = vpop.f32.mrf.mxu1 }
 0x396   : > { %v5552_v9 = vpack.c.bf16 %v5468_v45, %v5467_v44  ;;  %v5276_v3 = vadd.f32 %v5147_v52, %v9582_v4  ;;  %v5437_v17 = vadd.f32 %v9609_v7, %v5398_v16  ;;  %v5400_v55 = vmul.f32 %v9602_v18, %v5278_v41 }
 0x397   : > { %v7557_v34 = vpop.f32.mrf.mxu1  ;;  %v5861_v44 = vunpack.c.h.bf16 %v7791_v30 }
 0x398   : > { %v5399_v28 = vmul.f32 %v9602_v18, %v5276_v3  ;;  %v5281_v36 = vadd.f32 %v7557_v34, %v9585_v63  ;;  %7600 = vmatmul.mubr.bf16.gmra.mxu0 %v5552_v9  ;;  %v5469_v38 = vmax.f32 %v5437_v17, 0.0  ;;  %v5439_v4 = vadd.f32 %v9609_v7, %v5400_v55 }
 0x399   : > { %v5160_v12 = vpop.f32.mrf.mxu1 }
 0x39a   : > { %v5438_v43 = vadd.f32 %v9609_v7, %v5399_v28  ;;  %v5402_v37 = vmul.f32 %v9602_v18, %v5281_v36  ;;  %v5279_v53 = vadd.f32 %v5160_v12, %v9588_v24  ;;  %v5471_v57 = vmax.f32 %v5439_v4, 0.0 }
 0x39b   : > { %v7558_v5 = vpop.f32.mrf.mxu1 }
 0x39c   : > { %v5470_v50 = vmax.f32 %v5438_v43, 0.0  ;;  %v5401_v61 = vmul.f32 %v9602_v18, %v5279_v53  ;;  %v5282_v56 = vadd.f32 %v7558_v5, %v9591_v33  ;;  %v5441_v63 = vadd.f32 %v9609_v7, %v5402_v37  ;;  %v7792_v5 = vld [vmem:[%s7990_s21 + $0x18] sm:$0xff]  }
 0x39d   : > { %v5163_v22 = vpop.f32.mrf.mxu1  ;;  %v5866_v4 = vunpack.c.l.bf16 %v7792_v5 }
 0x39e   : > { %v5440_v51 = vadd.f32 %v9609_v7, %v5401_v61  ;;  %v5403_v27 = vmul.f32 %v9602_v18, %v5282_v56  ;;  %v5553_v15 = vpack.c.bf16 %v5470_v50, %v5469_v38  ;;  %v5473_v46 = vmax.f32 %v5441_v63, 0.0  ;;  %v7793_v63 = vld [vmem:[%s7990_s21 + $0x10] sm:$0xff]  }
 0x39f   : > { %v7561_v14 = vpop.f32.mrf.mxu1 }
 0x3a0   : > { %v5472_v24 = vmax.f32 %v5440_v51, 0.0  ;;  %v5442_v62 = vadd.f32 %v9609_v7, %v5403_v27  ;;  %v5285_v26 = vadd.f32 %v7561_v14, %v9594_v0  ;;  %7603 = vmatprep.mubr.bf16.mxu1 %v5553_v15  ;;  %v5864_v51 = vunpack.c.l.bf16 %v7793_v63 }
 0x3a1   : > { %v5176_v19 = vpop.f32.mrf.mxu1  ;;  %v5867_v27 = vunpack.c.h.bf16 %v7792_v5  ;;  %v7797_v5 = vld [vmem:[%s7990_s21 + $0x30] sm:$0xff]  }
 0x3a2   : > { %v5554_v33 = vpack.c.bf16 %v5472_v24, %v5471_v57  ;;  %v5474_v39 = vmax.f32 %v5442_v62, 0.0  ;;  %v5405_v21 = vmul.f32 %v9602_v18, %v5285_v26  ;;  %v5865_v24 = vunpack.c.h.bf16 %v7793_v63 }
 0x3a3   : > { %v7562_v49 = vpop.f32.mrf.mxu1  ;;  %v5873_v63 = vunpack.c.h.bf16 %v7797_v5 }
 0x3a4   : > { %7604 = vmatmul.mubr.bf16.vlgmr.msra.gmra.mxu1 %v5554_v33  ;;  %v5555_v60 = vpack.c.bf16 %v5474_v39, %v5473_v46  ;;  %v5444_v29 = vadd.f32 %v9609_v7, %v5405_v21 }
 0x3a5   : > { %v5179_v8 = vpop.f32.mrf.mxu1 }
 0x3a6   : > { %v5284_v6 = vadd.f32 %v5179_v8, %v4778_v1  ;;  %7607 = vmatprep.mubr.bf16.mxu1 %v5555_v60  ;;  %v5476_v25 = vmax.f32 %v5444_v29, 0.0 }
 0x3a8   : > { %v5404_v0 = vmul.f32 %v9602_v18, %v5284_v6 }
 0x3aa   : > { %v5443_v42 = vadd.f32 %v9609_v7, %v5404_v0  ;;  %v7790_v7 = vld [vmem:[%s7990_s21 + $0x8] sm:$0xff]  }
 0x3ab   : > { %v5862_v13 = vunpack.c.l.bf16 %v7790_v7  ;;  %v5863_v47 = vunpack.c.h.bf16 %v7790_v7 }
 0x3ac   : > { %v5475_v54 = vmax.f32 %v5443_v42, 0.0  ;;  %v7794_v42 = vld [vmem:[%s7990_s21 + $0x28] sm:$0xff]  }
 0x3ae   : > { %v5556_v35 = vpack.c.bf16 %v5476_v25, %v5475_v54  ;;  %v5870_v25 = vunpack.c.l.bf16 %v7794_v42 }
 0x3b0   : > { %7608 = vmatmul.mubr.bf16.gmra.mxu1 %v5556_v35 }
 0x41c   : > { %v7581_v58 = vpop.f32.mrf.mxu0 }
 0x41d   : > { %v5791_v18 = vmul.f32 %v7581_v58, %v9708_v10 }
 0x41e   : > { %v5655_v48 = vpop.f32.mrf.mxu0 }
 0x41f   : > { %v5830_v2 = vadd.f32 %v9713_v40, %v5791_v18  ;;  %v5789_v20 = vmul.f32 %v9708_v10, %v5655_v48  ;;  %v7795_v48 = vld [vmem:[%s7990_s21 + $0x20] sm:$0xff]  }
 0x420   : > { %v7582_v32 = vpop.f32.mrf.mxu0  ;;  %v5868_v7 = vunpack.c.l.bf16 %v7795_v48  ;;  %v5869_v30 = vunpack.c.h.bf16 %v7795_v48 }
 0x421   : > { %v5828_v31 = vadd.f32 %v9713_v40, %v5789_v20  ;;  %v5792_v11 = vmul.f32 %v7582_v32, %v9708_v10  ;;  %v5894_v16 = vadd.f32 %v5862_v13, %v5830_v2  ;;  %v5871_v13 = vunpack.c.h.bf16 %v7794_v42  ;;  %v7799_v42 = vld [vmem:[%s7990_s21 + $0x40] sm:$0xff]  }
 0x422   : > { %v5658_v45 = vpop.f32.mrf.mxu0  ;;  %v5877_v48 = vunpack.c.h.bf16 %v7799_v42 }
 0x423   : > { %v5831_v41 = vadd.f32 %v9713_v40, %v5792_v11  ;;  %v5790_v52 = vmul.f32 %v9708_v10, %v5658_v45  ;;  %v5892_v9 = vadd.f32 %v5860_v59, %v5828_v31  ;;  %v5926_v34 = vmax.f32 %v5894_v16, 0.0 }
 0x425   : > { %v5895_v3 = vadd.f32 %v5863_v47, %v5831_v41  ;;  %v5829_v17 = vadd.f32 %v9713_v40, %v5790_v52  ;;  %v5924_v12 = vmax.f32 %v5892_v9, 0.0 }
 0x427   : > { %v5927_v55 = vmax.f32 %v5895_v3, 0.0  ;;  %v5893_v28 = vadd.f32 %v5861_v44, %v5829_v17 }
 0x428   : > { %v7585_v36 = vpop.f32.mrf.mxu0 }
 0x429   : > { %v6516_v43 = vpack.c.bf16 %v5927_v55, %v5926_v34  ;;  %v5925_v37 = vmax.f32 %v5893_v28, 0.0  ;;  %v5795_v53 = vmul.f32 %v7585_v36, %v9708_v10  ;;  %v7796_v36 = vld [vmem:[%s7990_s21 + $0x38] sm:$0xff]  }
 0x42a   : > { %v5671_v38 = vpop.f32.mrf.mxu0 }
 0x42b   : > { %6588 = vst [vmem:[%s9730_s29 + $0x8] sm:$0xff] %v6516_v43   ;;  %v6511_v50 = vpack.c.bf16 %v5925_v37, %v5924_v12  ;;  %v5834_v61 = vadd.f32 %v9713_v40, %v5795_v53  ;;  %v5793_v56 = vmul.f32 %v9708_v10, %v5671_v38  ;;  %v5874_v12 = vunpack.c.l.bf16 %v7796_v36 }
 0x42c   : > { %v7586_v22 = vpop.f32.mrf.mxu0 }
 0x42d   : > { %6512 = vst [vmem:[%s9730_s29] sm:$0xff] %v6511_v50   ;;  %v5832_v15 = vadd.f32 %v9713_v40, %v5793_v56  ;;  %v5796_v14 = vmul.f32 %v7586_v22, %v9708_v10  ;;  %v5898_v62 = vadd.f32 %v5866_v4, %v5834_v61  ;;  %v5872_v4 = vunpack.c.l.bf16 %v7797_v5 }
 0x42e   : > { %v5674_v57 = vpop.f32.mrf.mxu0  ;;  %v5875_v50 = vunpack.c.h.bf16 %v7796_v36  ;;  %v7801_v36 = vld [vmem:[%s7990_s21 + $0x50] sm:$0xff]  }
 0x42f   : > { %v5835_v26 = vadd.f32 %v9713_v40, %v5796_v14  ;;  %v5794_v23 = vmul.f32 %v9708_v10, %v5674_v57  ;;  %v5896_v19 = vadd.f32 %v5864_v51, %v5832_v15  ;;  %v5930_v39 = vmax.f32 %v5898_v62, 0.0 }
 0x430   : > { %v5881_v5 = vunpack.c.h.bf16 %v7801_v36 }
 0x431   : > { %v5899_v46 = vadd.f32 %v5867_v27, %v5835_v26  ;;  %v5833_v33 = vadd.f32 %v9713_v40, %v5794_v23  ;;  %v5928_v60 = vmax.f32 %v5896_v19, 0.0 }
 0x433   : > { %v5931_v49 = vmax.f32 %v5899_v46, 0.0  ;;  %v5897_v1 = vadd.f32 %v5865_v24, %v5833_v33 }
 0x434   : > { %v7589_v21 = vpop.f32.mrf.mxu0 }
 0x435   : > { %v6526_v8 = vpack.c.bf16 %v5931_v49, %v5930_v39  ;;  %v5929_v6 = vmax.f32 %v5897_v1, 0.0  ;;  %v5799_v29 = vmul.f32 %v7589_v21, %v9708_v10  ;;  %v7798_v21 = vld [vmem:[%s7990_s21 + $0x48] sm:$0xff]  }
 0x436   : > { %v5687_v0 = vpop.f32.mrf.mxu0 }
 0x437   : > { %6590 = vst [vmem:[%s9730_s29 + $0x18] sm:$0xff] %v6526_v8   ;;  %v6521_v54 = vpack.c.bf16 %v5929_v6, %v5928_v60  ;;  %v5838_v35 = vadd.f32 %v9713_v40, %v5799_v29  ;;  %v5797_v58 = vmul.f32 %v9708_v10, %v5687_v0  ;;  %v5878_v60 = vunpack.c.l.bf16 %v7798_v21 }
 0x438   : > { %v7590_v18 = vpop.f32.mrf.mxu0 }
 0x439   : > { %6589 = vst [vmem:[%s9730_s29 + $0x10] sm:$0xff] %v6521_v54   ;;  %v5836_v2 = vadd.f32 %v9713_v40, %v5797_v58  ;;  %v5800_v20 = vmul.f32 %v7590_v18, %v9708_v10  ;;  %v5902_v59 = vadd.f32 %v5870_v25, %v5838_v35  ;;  %v5876_v25 = vunpack.c.l.bf16 %v7799_v42 }
 0x43a   : > { %v5690_v32 = vpop.f32.mrf.mxu0  ;;  %v5879_v54 = vunpack.c.h.bf16 %v7798_v21  ;;  %v7803_v21 = vld [vmem:[%s7990_s21 + $0x60] sm:$0xff]  }
 0x43b   : > { %v5839_v47 = vadd.f32 %v9713_v40, %v5800_v20  ;;  %v5798_v31 = vmul.f32 %v9708_v10, %v5690_v32  ;;  %v5900_v11 = vadd.f32 %v5868_v7, %v5836_v2  ;;  %v5934_v16 = vmax.f32 %v5902_v59, 0.0 }
 0x43c   : > { %v5885_v42 = vunpack.c.h.bf16 %v7803_v21 }
 0x43d   : > { %v5903_v45 = vadd.f32 %v5871_v13, %v5839_v47  ;;  %v5837_v44 = vadd.f32 %v9713_v40, %v5798_v31  ;;  %v5932_v3 = vmax.f32 %v5900_v11, 0.0 }
 0x43f   : > { %v5935_v41 = vmax.f32 %v5903_v45, 0.0  ;;  %v5901_v52 = vadd.f32 %v5869_v30, %v5837_v44 }
 0x440   : > { %v7593_v9 = vpop.f32.mrf.mxu0 }
 0x441   : > { %v6536_v17 = vpack.c.bf16 %v5935_v41, %v5934_v16  ;;  %v5933_v34 = vmax.f32 %v5901_v52, 0.0  ;;  %v5803_v55 = vmul.f32 %v7593_v9, %v9708_v10  ;;  %v7800_v9 = vld [vmem:[%s7990_s21 + $0x58] sm:$0xff]  }
 0x442   : > { %v5703_v28 = vpop.f32.mrf.mxu0 }
 0x443   : > { %6592 = vst [vmem:[%s9730_s29 + $0x28] sm:$0xff] %v6536_v17   ;;  %v6531_v43 = vpack.c.bf16 %v5933_v34, %v5932_v3  ;;  %v5842_v37 = vadd.f32 %v9713_v40, %v5803_v55  ;;  %v5801_v53 = vmul.f32 %v9708_v10, %v5703_v28  ;;  %v5882_v3 = vunpack.c.l.bf16 %v7800_v9 }
 0x444   : > { %v7594_v38 = vpop.f32.mrf.mxu0 }
 0x445   : > { %6591 = vst [vmem:[%s9730_s29 + $0x20] sm:$0xff] %v6531_v43   ;;  %v5840_v61 = vadd.f32 %v9713_v40, %v5801_v53  ;;  %v5804_v56 = vmul.f32 %v7594_v38, %v9708_v10  ;;  %v5906_v51 = vadd.f32 %v5874_v12, %v5842_v37  ;;  %v5880_v12 = vunpack.c.l.bf16 %v7801_v36 }
 0x446   : > { %v5706_v22 = vpop.f32.mrf.mxu0  ;;  %v5883_v43 = vunpack.c.h.bf16 %v7800_v9  ;;  %v7805_v9 = vld [vmem:[%s7990_s21 + $0x70] sm:$0xff]  }
 0x447   : > { %v5843_v27 = vadd.f32 %v9713_v40, %v5804_v56  ;;  %v5802_v15 = vmul.f32 %v9708_v10, %v5706_v22  ;;  %v5904_v14 = vadd.f32 %v5872_v4, %v5840_v61  ;;  %v5938_v62 = vmax.f32 %v5906_v51, 0.0 }
 0x448   : > { %v5889_v36 = vunpack.c.h.bf16 %v7805_v9 }
 0x449   : > { %v5907_v57 = vadd.f32 %v5875_v50, %v5843_v27  ;;  %v5841_v24 = vadd.f32 %v9713_v40, %v5802_v15  ;;  %v5936_v46 = vmax.f32 %v5904_v14, 0.0 }
 0x44b   : > { %v5939_v26 = vmax.f32 %v5907_v57, 0.0  ;;  %v5905_v23 = vadd.f32 %v5873_v63, %v5841_v24 }
 0x44c   : > { %v7597_v19 = vpop.f32.mrf.mxu0 }
 0x44d   : > { %v6546_v33 = vpack.c.bf16 %v5939_v26, %v5938_v62  ;;  %v5937_v39 = vmax.f32 %v5905_v23, 0.0  ;;  %v5807_v49 = vmul.f32 %v7597_v19, %v9708_v10  ;;  %v7802_v19 = vld [vmem:[%s7990_s21 + $0x68] sm:$0xff]  }
 0x44e   : > { %v5719_v1 = vpop.f32.mrf.mxu0 }
 0x44f   : > { %6594 = vst [vmem:[%s9730_s29 + $0x38] sm:$0xff] %v6546_v33   ;;  %v6541_v8 = vpack.c.bf16 %v5937_v39, %v5936_v46  ;;  %v5846_v6 = vadd.f32 %v9713_v40, %v5807_v49  ;;  %v5805_v29 = vmul.f32 %v9708_v10, %v5719_v1  ;;  %v5886_v46 = vunpack.c.l.bf16 %v7802_v19 }
 0x450   : > { %v7598_v0 = vpop.f32.mrf.mxu0 }
 0x451   : > { %6593 = vst [vmem:[%s9730_s29 + $0x30] sm:$0xff] %v6541_v8   ;;  %v5844_v35 = vadd.f32 %v9713_v40, %v5805_v29  ;;  %v5808_v58 = vmul.f32 %v7598_v0, %v9708_v10  ;;  %v5910_v7 = vadd.f32 %v5878_v60, %v5846_v6  ;;  %v5884_v60 = vunpack.c.l.bf16 %v7803_v21 }
 0x452   : > { %v5722_v18 = vpop.f32.mrf.mxu0  ;;  %v5887_v8 = vunpack.c.h.bf16 %v7802_v19 }
 0x453   : > { %v5847_v13 = vadd.f32 %v9713_v40, %v5808_v58  ;;  %v5806_v2 = vmul.f32 %v9708_v10, %v5722_v18  ;;  %v5908_v20 = vadd.f32 %v5876_v25, %v5844_v35  ;;  %v5942_v59 = vmax.f32 %v5910_v7, 0.0 }
 0x455   : > { %v5911_v32 = vadd.f32 %v5879_v54, %v5847_v13  ;;  %v5845_v30 = vadd.f32 %v9713_v40, %v5806_v2  ;;  %v5940_v45 = vmax.f32 %v5908_v20, 0.0 }
 0x457   : > { %v5943_v47 = vmax.f32 %v5911_v32, 0.0  ;;  %v5909_v31 = vadd.f32 %v5877_v48, %v5845_v30 }
 0x458   : > { %v7601_v11 = vpop.f32.mrf.mxu0 }
 0x459   : > { %v6556_v44 = vpack.c.bf16 %v5943_v47, %v5942_v59  ;;  %v5941_v16 = vmax.f32 %v5909_v31, 0.0  ;;  %v5811_v41 = vmul.f32 %v7601_v11, %v9708_v10  ;;  %v7804_v11 = vld [vmem:[%s7990_s21 + $0x78] sm:$0xff]   ;;  %s6507_s21 = sshll.u32 %s7949_s17, 11  ;;  %s7806_s17 = scalar_lea.vmem %s9821_s30, 2048 }
 0x45a   : > { %v5735_v52 = vpop.f32.mrf.mxu0  ;;  %s9819_s18 = scalar_lea.hbm %s9877_s10, %s6507_s21  ;;  %p7807_p11 = scmp.ne.s32.totalorder %s9821_s30, %s7806_s17 }
 0x45b   : > { %6596 = vst [vmem:[%s9730_s29 + $0x48] sm:$0xff] %v6556_v44   ;;  %v6551_v17 = vpack.c.bf16 %v5941_v16, %v5940_v45  ;;  %v5850_v34 = vadd.f32 %v9713_v40, %v5811_v41  ;;  %v5809_v55 = vmul.f32 %v9708_v10, %v5735_v52  ;;  %v5890_v45 = vunpack.c.l.bf16 %v7804_v11  ;;  %p7814_p1 = scmp.lt.s32.totalorder %s7812_s28, %s7806_s17 }
 0x45c   : > { %v7602_v28 = vpop.f32.mrf.mxu0  ;;  %p7808_p12 = pnand %p7807_p11, %p7966_p5 }
 0x45d   : > { %6595 = vst [vmem:[%s9730_s29 + $0x40] sm:$0xff] %v6551_v17   ;;  %v5848_v37 = vadd.f32 %v9713_v40, %v5809_v55  ;;  %v5812_v53 = vmul.f32 %v7602_v28, %v9708_v10  ;;  %v5914_v4 = vadd.f32 %v5882_v3, %v5850_v34  ;;  %v5888_v3 = vunpack.c.l.bf16 %v7805_v9  ;;  %p7815_p2 = por %p7814_p1, %p7813_p0 }
 0x45e   : > { %v5738_v38 = vpop.f32.mrf.mxu0  ;;  %v5891_v17 = vunpack.c.h.bf16 %v7804_v11  ;;  %p7809_p13 = pneg %p7808_p12 }
 0x45f   : > { %v5851_v50 = vadd.f32 %v9713_v40, %v5812_v53  ;;  %v5810_v61 = vmul.f32 %v9708_v10, %v5738_v38  ;;  %v5912_v56 = vadd.f32 %v5880_v12, %v5848_v37  ;;  %v5946_v51 = vmax.f32 %v5914_v4, 0.0 }
 0x460   : > { %p7816_p3 = pnand %p7815_p2, %p7809_p13 }
 0x461   : > { %v5915_v22 = vadd.f32 %v5883_v43, %v5851_v50  ;;  %v5849_v63 = vadd.f32 %v9713_v40, %v5810_v61  ;;  %v5944_v57 = vmax.f32 %v5912_v56, 0.0 }
 0x463   : > { %v5947_v27 = vmax.f32 %v5915_v22, 0.0  ;;  %v5913_v15 = vadd.f32 %v5881_v5, %v5849_v63 }
 0x464   : > { %v7605_v14 = vpop.f32.mrf.mxu1 }
 0x465   : > { %v6566_v24 = vpack.c.bf16 %v5947_v27, %v5946_v51  ;;  %v5945_v62 = vmax.f32 %v5913_v15, 0.0  ;;  %v5815_v26 = vmul.f32 %v7605_v14, %v9708_v10 }
 0x466   : > { %v5751_v23 = vpop.f32.mrf.mxu1 }
 0x467   : > { %6598 = vst [vmem:[%s9730_s29 + $0x58] sm:$0xff] %v6566_v24   ;;  %v6561_v33 = vpack.c.bf16 %v5945_v62, %v5944_v57  ;;  %v5854_v39 = vadd.f32 %v9713_v40, %v5815_v26  ;;  %v5813_v49 = vmul.f32 %v9708_v10, %v5751_v23 }
 0x468   : > { %v7606_v1 = vpop.f32.mrf.mxu1 }
 0x469   : > { %6597 = vst [vmem:[%s9730_s29 + $0x50] sm:$0xff] %v6561_v33   ;;  %v5852_v6 = vadd.f32 %v9713_v40, %v5813_v49  ;;  %v5816_v29 = vmul.f32 %v7606_v1, %v9708_v10  ;;  %v5918_v25 = vadd.f32 %v5886_v46, %v5854_v39 }
 0x46a   : > { %v5754_v0 = vpop.f32.mrf.mxu1 }
 0x46b   : > { %v5855_v54 = vadd.f32 %v9713_v40, %v5816_v29  ;;  %v5814_v35 = vmul.f32 %v9708_v10, %v5754_v0  ;;  %v5916_v58 = vadd.f32 %v5884_v60, %v5852_v6  ;;  %v5950_v7 = vmax.f32 %v5918_v25, 0.0 }
 0x46d   : > { %v5919_v18 = vadd.f32 %v5887_v8, %v5855_v54  ;;  %v5853_v48 = vadd.f32 %v9713_v40, %v5814_v35  ;;  %v5948_v32 = vmax.f32 %v5916_v58, 0.0 }
 0x46f   : > { %v5951_v13 = vmax.f32 %v5919_v18, 0.0  ;;  %v5917_v2 = vadd.f32 %v5885_v42, %v5853_v48 }
 0x470   : > { %v7609_v20 = vpop.f32.mrf.mxu1 }
 0x471   : > { %v6576_v30 = vpack.c.bf16 %v5951_v13, %v5950_v7  ;;  %v5949_v59 = vmax.f32 %v5917_v2, 0.0  ;;  %v5819_v47 = vmul.f32 %v7609_v20, %v9708_v10 }
 0x472   : > { %v5767_v31 = vpop.f32.mrf.mxu1 }
 0x473   : > { %6600 = vst [vmem:[%s9730_s29 + $0x68] sm:$0xff] %v6576_v30   ;;  %v6571_v44 = vpack.c.bf16 %v5949_v59, %v5948_v32  ;;  %v5858_v16 = vadd.f32 %v9713_v40, %v5819_v47  ;;  %v5817_v41 = vmul.f32 %v9708_v10, %v5767_v31 }
 0x474   : > { %v7610_v52 = vpop.f32.mrf.mxu1 }
 0x475   : > { %6599 = vst [vmem:[%s9730_s29 + $0x60] sm:$0xff] %v6571_v44   ;;  %v5856_v34 = vadd.f32 %v9713_v40, %v5817_v41  ;;  %v5820_v55 = vmul.f32 %v7610_v52, %v9708_v10  ;;  %v5922_v12 = vadd.f32 %v5890_v45, %v5858_v16 }
 0x476   : > { %v5770_v28 = vpop.f32.mrf.mxu1 }
 0x477   : > { %v5859_v43 = vadd.f32 %v9713_v40, %v5820_v55  ;;  %v5818_v37 = vmul.f32 %v9708_v10, %v5770_v28  ;;  %v5920_v53 = vadd.f32 %v5888_v3, %v5856_v34  ;;  %v5954_v4 = vmax.f32 %v5922_v12, 0.0 }
 0x479   : > { %v5923_v38 = vadd.f32 %v5891_v17, %v5859_v43  ;;  %v5857_v5 = vadd.f32 %v9713_v40, %v5818_v37  ;;  %v5952_v56 = vmax.f32 %v5920_v53, 0.0 }
 0x47b   : > { %v5955_v50 = vmax.f32 %v5923_v38, 0.0  ;;  %v5921_v61 = vadd.f32 %v5889_v36, %v5857_v5 }
 0x47d   : > { %v6586_v22 = vpack.c.bf16 %v5955_v50, %v5954_v4  ;;  %v5953_v63 = vmax.f32 %v5921_v61, 0.0 }
 0x47f   : > { %6602 = vst [vmem:[%s9730_s29 + $0x78] sm:$0xff] %v6586_v22   ;;  %v6581_v10 = vpack.c.bf16 %v5953_v63, %v5952_v56 }
 0x481   : > { %6601 = vst [vmem:[%s9730_s29 + $0x70] sm:$0xff] %v6581_v10  }
 0x482   : > { %7819 = shalt.err (!%p7816_p3)
}
 0x483   : > { %s7820_s27 = scalar_lea.hbm %s9819_s18, 2048  ;;  %s7824_s11 = scalar_lea.hbm %s9877_s10, 4096 }
 0x484   : > { %p7821_p4 = scmp.ne.s32.totalorder %s9819_s18, %s7820_s27  ;;  %p7825_p9 = scmp.lt.s32.totalorder %s9819_s18, %s9877_s10 }
 0x485   : > { %p7826_p10 = scmp.lt.s32.totalorder %s7824_s11, %s7820_s27 }
 0x486   : > { %p7822_p7 = pnand %p7821_p4, %p7966_p5 }
 0x487   : > { %p7827_p11 = por %p7826_p10, %p7825_p9 }
 0x488   : > { %p7823_p8 = pneg %p7822_p7 }
 0x48a   : > { %p7828_p12 = pnand %p7827_p11, %p7823_p8 }
 0x48c   : > { %7831 = shalt.err (!%p7828_p12)
}
 0x48d   : > { %s7871_s17 = smov 64   ;;  %s7872_s26 = smov 4  }
 0x48e   : > { %7627 = dma.vmem_to_hbm [thread:$0]  (%p7966_p5), %s9821_s30, 2048, %s9819_s18, %s9827_s20, %s7871_s17, %s7871_s17, %s7872_s26  }
 0x48f PF: > { %p7633_p13 = scmp.ge.s32.totalorder %s7866_s16, 2  ;;  %s6145_s28 = sand.u32 1, %s7854_s13  }
 0x490   : > { %s6146_s27 = scalar_lea.sflag [#allocation6], %s6145_s28 }
 0x491   : > { %p7630_p0 = pnand %p7633_p13, %p7970_p6 }
 0x493   : > { %p7631_p1 = pneg %p7630_p0 }
 0x495   : > { %7849 = dma.done.wait (%p7631_p1), %s6146_s27, 2048  }
 0x496   : > { %7851 = vsyncadd (%p7631_p1), %s6146_s27, 4294965248  ;;  %p20_p2 = scmp.ge.s32.totalorder %s7953_s19, 4   ;;  %s10219_s13 = smov %s7858_s14 }
 0x497   : > { %s10220_s14 = smov %s7862_s15  ;;  %s10221_s15 = smov %s7964_s22 }
 0x498   : > { %s10222_s16 = smov %s7953_s19  ;;  %22 = sbr.rel (!%p20_p2) target bundleno = 3 (0x3), region = 103 }
 0x49d   :  { %6151 = vsyncpa [#allocation6], 1 }
 0x49e   :  { %6153 = vsyncpa [#allocation6 + $0x1], 1 }

</bundles_post_ra>
